<compile_context>
chip_gen: v7x
topology: tpu7x:2x2x1
jax: 0.10.0
libtpu: 0.0.40
codegen_flags: <defaults>
</compile_context>

<pallas_src>
import numpy as np
import jax
import jax.numpy as jnp
from jax import lax
from jax.experimental import pallas as pl
from jax.experimental.pallas import tpu as pltpu

BN_EPS = 1e-5
BATCH_ALIGN = 16          # bf16 sublane packing: keep batch tiles 16-row aligned
KT_CAP = 4096             # max K slice per grid step -> conv1 weight slice <= 4 MiB bf16
VMEM_BUDGET = 40 << 20    # per-step VMEM target (fits v7x 64 MiB with headroom)


def _cdiv(a, b):
    return -(-a // b)


def _round_up(x, m):
    return _cdiv(x, m) * m


def _make_pool_matrix(H, W, k, s):
    """AvgPool2d(k, stride=s, padding=0) as a (Ho*Wo, H*W) matrix.
    count_include_pad is irrelevant since padding=0."""
    Ho = (H - k) // s + 1
    Wo = (W - k) // s + 1
    M = np.zeros((Ho * Wo, H * W), np.float32)
    inv = 1.0 / float(k * k)
    for ho in range(Ho):
        for wo in range(Wo):
            p = ho * Wo + wo
            for dh in range(k):
                for dw in range(k):
                    M[p, (ho * s + dh) * W + (wo * s + dw)] = inv
    return M


def _aux_head_kernel(x_ref, w1_ref, b1_ref, w2_ref, wl_ref, bl_ref, o_ref, acc_ref):
    """One (batch-tile, K-tile) grid step.

    x_ref : (TB, Kt)       bf16  NCHW-flat input slice (column index c*49 + s)
    w1_ref: (Kt, 512)      bf16  fused AvgPool(5,2)+Conv1x1(+BN scale) weight slice
    b1_ref: (1, 512)       f32   folded BN shift
    w2_ref: (512, 768)     bf16  Conv2d(128,768,2) as a matmul
    wl_ref: (768, NC_pad)  bf16  classifier weight (lane-padded)
    bl_ref: (1, NC_pad)    f32   classifier bias
    o_ref : (TB, NC_pad)         logits tile (written on the last K step only)
    acc_ref:(TB, 512)      f32   conv1 accumulator, lives across the K grid axis
    """
    k = pl.program_id(1)

    @pl.when(k == 0)
    def _init():
        acc_ref[...] = jnp.zeros_like(acc_ref)

    # ReLU in bf16, then the fused pool+conv1(+BN scale) matmul (f32 accumulate).
    x = jnp.maximum(x_ref[...], 0)
    acc_ref[...] += jnp.dot(x, w1_ref[...], preferred_element_type=jnp.float32)

    @pl.when(k == pl.num_programs(1) - 1)
    def _epilogue():
        y = jnp.maximum(acc_ref[...] + b1_ref[...], 0.0)           # BN shift + ReLU
        h = jnp.dot(y.astype(jnp.bfloat16), w2_ref[...],
                    preferred_element_type=jnp.float32)            # conv2x2 -> (TB, 768)
        h = jnp.maximum(h, 0.0)                                    # ReLU
        logits = jnp.dot(h.astype(jnp.bfloat16), wl_ref[...],
                         preferred_element_type=jnp.float32) + bl_ref[...]
        o_ref[...] = logits.astype(o_ref.dtype)


def _vmem_bytes(TB, Kt, NC_pad, out_bytes):
    """Conservative per-step VMEM estimate (constants counted double-buffered)."""
    return (2 * TB * Kt * 2            # x tile (bf16)
            + 2 * Kt * 512 * 2         # fused conv1 weight slice (bf16)
            + 2 * 512 * 4              # BN shift
            + 2 * 512 * 768 * 2        # conv2 weight
            + 2 * 768 * NC_pad * 2     # classifier weight
            + 2 * NC_pad * 4           # classifier bias
            + 2 * TB * NC_pad * out_bytes   # output tile
            + TB * 512 * 4)            # accumulator scratch


def _choose_tiles(N, K0, NC_pad, out_bytes, batch_tile):
    # K (= 49*C) tiling: pad to a 128 multiple (MXU-aligned K) and split so the
    # streamed conv1-weight slice stays small; nk == 1 for small C.
    K_pad0 = _round_up(K0, 128)
    nk = max(1, _cdiv(K_pad0, KT_CAP))
    Kt = _round_up(_cdiv(K_pad0, nk), 128)
    K_pad = Kt * nk

    # Batch tiling: pad only to 16 rows (not a fixed TB), keep >= 2 grid steps
    # when there is enough work (v7x megacore), shrink the tile on VMEM pressure.
    N_al = _round_up(N, BATCH_ALIGN)
    nb_min = 2 if N_al >= 2 * BATCH_ALIGN else 1

    def mk(cap):
        nb = max(_cdiv(N_al, max(cap, BATCH_ALIGN)), nb_min)
        TB = _round_up(_cdiv(N_al, nb), BATCH_ALIGN)
        return TB, nb

    cap = max(batch_tile, BATCH_ALIGN)
    TB, nb = mk(cap)
    while cap > BATCH_ALIGN and _vmem_bytes(TB, Kt, NC_pad, out_bytes) > VMEM_BUDGET:
        cap //= 2
        TB, nb = mk(cap)
    return TB, nb, Kt, nk, K_pad


def auxiliary_head_forward(x_nchw, params, batch_tile=1024, logits_dtype=None):
    """x_nchw: (N, C, 7, 7) float32.  Returns (N, num_classes) logits.

    logits_dtype=None -> bf16 when the lane-padded class count is large (>=512,
    e.g. ImageNet 1000 -> 1024), float32 otherwise.
    """
    N, C, H, W = x_nchw.shape
    assert H == 7 and W == 7, "forward only type-checks for 7x7 input (see header note)"
    w1, bn_g, bn_b, bn_m, bn_v, w2, wl, bl = (
        params["w1"], params["bn_gamma"], params["bn_beta"],
        params["bn_mean"], params["bn_var"], params["w2"],
        params["wl"], params["bl"])
    NC = wl.shape[0]
    NC_pad = _round_up(NC, 128)                    # lane-dense (unmasked) logit stores
    if logits_dtype is None:
        logits_dtype = jnp.bfloat16 if NC_pad >= 512 else jnp.float32
    out_bytes = jnp.dtype(logits_dtype).itemsize

    K0 = H * W * C
    TB, nb, Kt, nk, K_pad = _choose_tiles(N, K0, NC_pad, out_bytes, batch_tile)
    N_pad = TB * nb

    # ---- x: NCHW-flat (column index c*49 + s) -- free reshape, no transpose.
    # One cast(+pad) pass to bf16 (fuses under a caller-side jit; ideally the
    # producer would already emit bf16). ----
    x2 = x_nchw.reshape(N, K0).astype(jnp.bfloat16)
    if (N_pad, K_pad) != (N, K0):
        x2 = jnp.pad(x2, ((0, N_pad - N), (0, K_pad - K0)))

    # ---- weight folding (done once; in a real model these are precomputed) ----
    # BN (eval mode) folded into conv1: w1' = w1 * scale, shift = beta - mean*scale
    scale = bn_g * lax.rsqrt(bn_v + BN_EPS)                            # (128,)
    shift = bn_b - bn_m * scale                                        # (128,)
    w1g = jnp.transpose(w1.reshape(128, C), (1, 0)) * scale[None, :]   # (C, 128)

    # Fuse AvgPool(5,2) with conv1 in NCHW-flat row order:
    #   Wf[c*49 + s, p*128 + o] = P[p, s] * w1g[c, o]
    P = jnp.asarray(_make_pool_matrix(H, W, 5, 2))                     # (4, 49)
    w1_fused = jnp.einsum("ps,co->cspo", P, w1g).reshape(K0, 4 * 128)
    w1_fused = jnp.pad(w1_fused, ((0, K_pad - K0), (0, 0))).astype(jnp.bfloat16)
    b1 = jnp.tile(shift, 4).reshape(1, 4 * 128)                        # column = p*128 + o

    # Conv2d(128, 768, 2) on the 2x2 map == one matmul; row index p*128 + c.
    w2_mat = jnp.transpose(w2, (2, 3, 1, 0)).reshape(4 * 128, 768).astype(jnp.bfloat16)

    # Classifier, zero-padded to NC_pad lanes.
    wl_mat = jnp.zeros((768, NC_pad), jnp.float32).at[:, :NC].set(wl.T).astype(jnp.bfloat16)
    bl_mat = jnp.zeros((1, NC_pad), jnp.float32).at[:, :NC].set(bl[None, :])

    est = _vmem_bytes(TB, Kt, NC_pad, out_bytes)

    def call(single_buffer_consts):
        def const_spec(shape):
            if single_buffer_consts:
                # Grid-invariant operands: single-buffer to halve their VMEM.
                return pl.BlockSpec(shape, lambda b, k: (0, 0),
                                    pipeline_mode=pl.Buffered(1))
            return pl.BlockSpec(shape, lambda b, k: (0, 0))

        return pl.pallas_call(
            _aux_head_kernel,
            out_shape=jax.ShapeDtypeStruct((N_pad, NC_pad), logits_dtype),
            grid_spec=pltpu.PrefetchScalarGridSpec(
                num_scalar_prefetch=0,
                grid=(nb, nk),                                        # (batch, K reduction)
                in_specs=[
                    pl.BlockSpec((TB, Kt), lambda b, k: (b, k)),      # x tile
                    pl.BlockSpec((Kt, 4 * 128), lambda b, k: (k, 0)), # fused conv1 slice
                    const_spec((1, 4 * 128)),                         # BN shift
                    const_spec((4 * 128, 768)),                       # conv2 weight
                    const_spec((768, NC_pad)),                        # classifier weight
                    const_spec((1, NC_pad)),                          # classifier bias
                ],
                out_specs=pl.BlockSpec((TB, NC_pad), lambda b, k: (b, 0)),
                scratch_shapes=[pltpu.VMEM((TB, 4 * 128), jnp.float32)],
            ),
            compiler_params=pltpu.CompilerParams(
                dimension_semantics=("parallel", "arbitrary"),
                vmem_limit_bytes=int(max(est + (8 << 20), 16 << 20)),
            ),
        )(x2, w1_fused, b1, w2_mat, wl_mat, bl_mat)

    try:
        out = call(True)
    except Exception:  # pragma: no cover - JAX builds without pipeline_mode/Buffered(1)
        out = call(False)
    return out[:N, :NC]


def reference_forward(x, params):
    """Pure-JAX f32 reference (NCHW), mirrors the PyTorch forward (BN eval mode)."""
    w1, bn_g, bn_b, bn_m, bn_v, w2, wl, bl = (
        params["w1"], params["bn_gamma"], params["bn_beta"],
        params["bn_mean"], params["bn_var"], params["w2"],
        params["wl"], params["bl"])
    N, C, H, W = x.shape
    r = jnp.maximum(x, 0.0)
    Ho, Wo = (H - 5) // 2 + 1, (W - 5) // 2 + 1
    pooled = jnp.stack(
        [jnp.stack([r[:, :, ho * 2:ho * 2 + 5, wo * 2:wo * 2 + 5].mean(axis=(2, 3))
                    for wo in range(Wo)], axis=-1) for ho in range(Ho)],
        axis=-2)                                                   # (N, C, Ho, Wo)
    z = jnp.einsum("nchw,kc->nkhw", pooled, w1.reshape(128, C))
    z = (z - bn_m[None, :, None, None]) / jnp.sqrt(bn_v[None, :, None, None] + BN_EPS)
    z = z * bn_g[None, :, None, None] + bn_b[None, :, None, None]
    y = jnp.maximum(z, 0.0)                                        # (N, 128, 2, 2)
    h = jnp.einsum("nchw,ochw->no", y, w2)                         # conv 2x2 valid
    h = jnp.maximum(h, 0.0)
    return h @ wl.T + bl


def init_params(key, C, num_classes):
    ks = jax.random.split(key, 8)
    return {
        "w1": 0.1 * jax.random.normal(ks[0], (128, C, 1, 1), jnp.float32),
        "bn_gamma": 1.0 + 0.05 * jax.random.normal(ks[1], (128,), jnp.float32),
        "bn_beta": 0.05 * jax.random.normal(ks[2], (128,), jnp.float32),
        "bn_mean": 0.05 * jax.random.normal(ks[3], (128,), jnp.float32),
        "bn_var": 1.0 + 0.1 * jax.random.uniform(ks[4], (128,), jnp.float32),
        "w2": 0.05 * jax.random.normal(ks[5], (768, 128, 2, 2), jnp.float32),
        "wl": 0.05 * jax.random.normal(ks[6], (num_classes, 768), jnp.float32),
        "bl": 0.05 * jax.random.normal(ks[7], (num_classes,), jnp.float32),
    }


if __name__ == "__main__":
    key = jax.random.PRNGKey(0)
    k_x, k_p, k_x2, k_p2 = jax.random.split(key, 4)

    # --- Small config (C=16, 7x7 input, 10 classes): single grid step, f32 logits.
    N, C, H, W, NCLS = 2, 16, 7, 7, 10
    x = jax.random.normal(k_x, (N, C, H, W), jnp.float32)
    params = init_params(k_p, C, NCLS)
    out = jax.block_until_ready(auxiliary_head_forward(x, params))
    ref = jax.block_until_ready(reference_forward(x, params))
    assert out.shape == (N, NCLS)
    # bf16 matmul operands with f32 accumulation -> modest tolerance vs f32 ref
    np.testing.assert_allclose(np.asarray(out, dtype=np.float32), np.asarray(ref),
                               rtol=2e-2, atol=2e-2)

    # --- Realistic ImageNet aux-head config (C=768, 1000 classes): exercises the
    # K-tiled accumulator path (grid over 49*C), 2 batch steps, bf16 logits.
    N2, C2, NCLS2 = 32, 768, 1000
    x_big = jax.random.normal(k_x2, (N2, C2, H, W), jnp.float32)
    params_big = init_params(k_p2, C2, NCLS2)
    out_big = jax.block_until_ready(auxiliary_head_forward(x_big, params_big))
    ref_big = jax.block_until_ready(reference_forward(x_big, params_big))
    assert out_big.shape == (N2, NCLS2)
    np.testing.assert_allclose(np.asarray(out_big.astype(jnp.float32)),
                               np.asarray(ref_big), rtol=3e-2, atol=3e-2)

    print("KERNEL_OK")
</pallas_src>

<mosaic_0001>
module attributes {stable_mosaic.version = 11 : i64} {
  func.func @_aux_head_kernel(%arg0: i32, %arg1: i32, %arg2: memref<16x896xbf16, #tpu.memory_space<vmem>>, %arg3: memref<896x512xbf16, #tpu.memory_space<vmem>>, %arg4: memref<1x512xf32, #tpu.memory_space<vmem>>, %arg5: memref<512x768xbf16, #tpu.memory_space<vmem>>, %arg6: memref<768x128xbf16, #tpu.memory_space<vmem>>, %arg7: memref<1x128xf32, #tpu.memory_space<vmem>>, %arg8: memref<16x128xf32, #tpu.memory_space<vmem>>, %arg9: memref<16x512xf32, #tpu.memory_space<vmem>>) attributes {dimension_semantics = [#tpu.dimension_semantics<parallel>, #tpu.dimension_semantics<arbitrary>], iteration_bounds = array<i64: 1, 1>, scalar_prefetch = 0 : i64, scratch_operands = 1 : i64, tpu.core_type = #tpu.core_type<tc>, window_params = [{transform_indices = @transform_0, window_bounds = array<i64: 16, 896>}, {transform_indices = @transform_1, window_bounds = array<i64: 896, 512>}, {pipeline_mode = #tpu.pipeline_mode<synchronous>, transform_indices = @transform_2, window_bounds = array<i64: 1, 512>}, {pipeline_mode = #tpu.pipeline_mode<synchronous>, transform_indices = @transform_3, window_bounds = array<i64: 512, 768>}, {pipeline_mode = #tpu.pipeline_mode<synchronous>, transform_indices = @transform_4, window_bounds = array<i64: 768, 128>}, {pipeline_mode = #tpu.pipeline_mode<synchronous>, transform_indices = @transform_5, window_bounds = array<i64: 1, 128>}, {transform_indices = @transform_6, window_bounds = array<i64: 16, 128>}]} {
    %c0_i32 = arith.constant 0 : i32
    %0 = arith.cmpi eq, %arg1, %c0_i32 : i32
    %1 = arith.extui %0 : i1 to i32
    %c0_i32_0 = arith.constant 0 : i32
    %2 = arith.cmpi ne, %1, %c0_i32_0 : i32
    scf.if %2 {
      %cst_11 = arith.constant 0.000000e+00 : f32
      %14 = vector.broadcast %cst_11 : f32 to vector<16x512xf32>
      %c0_12 = arith.constant 0 : index
      %c0_13 = arith.constant 0 : index
      %15 = vector.load %arg9[%c0_12, %c0_13] : memref<16x512xf32, #tpu.memory_space<vmem>>, vector<16x512xf32>
      tpu.vector_store %arg9[%c0_12, %c0_13], %14 {strides = array<i32>} : memref<16x512xf32, #tpu.memory_space<vmem>>, vector<16x512xf32>,
    } else {
    }
    %c0 = arith.constant 0 : index
    %c0_1 = arith.constant 0 : index
    %3 = vector.load %arg2[%c0, %c0_1] : memref<16x896xbf16, #tpu.memory_space<vmem>>, vector<16x896xbf16>
    %cst = arith.constant 0.000000e+00 : bf16
    %4 = vector.broadcast %cst : bf16 to vector<16x896xbf16>
    %5 = arith.maximumf %3, %4 : vector<16x896xbf16>
    %c0_2 = arith.constant 0 : index
    %c0_3 = arith.constant 0 : index
    %6 = vector.load %arg9[%c0_2, %c0_3] : memref<16x512xf32, #tpu.memory_space<vmem>>, vector<16x512xf32>
    %c0_4 = arith.constant 0 : index
    %c0_5 = arith.constant 0 : index
    %7 = vector.load %arg3[%c0_4, %c0_5] : memref<896x512xbf16, #tpu.memory_space<vmem>>, vector<896x512xbf16>
    %cst_6 = arith.constant dense<0.000000e+00> : vector<16x512xf32>
    %8 = tpu.matmul %5, %7, %cst_6 {dimension_numbers = #tpu.dot_dimension_numbers<[1], [0], [0], [1], [0, 0, 1, 1], [], []>} : vector<16x896xbf16>, vector<896x512xbf16>, vector<16x512xf32> -> vector<16x512xf32>
    %9 = arith.addf %6, %8 : vector<16x512xf32>
    %c0_7 = arith.constant 0 : index
    %c0_8 = arith.constant 0 : index
    %10 = vector.load %arg9[%c0_7, %c0_8] : memref<16x512xf32, #tpu.memory_space<vmem>>, vector<16x512xf32>
    tpu.vector_store %arg9[%c0_7, %c0_8], %9 {strides = array<i32>} : memref<16x512xf32, #tpu.memory_space<vmem>>, vector<16x512xf32>,
    %c0_i32_9 = arith.constant 0 : i32
    %11 = arith.cmpi eq, %arg1, %c0_i32_9 : i32
    %12 = arith.extui %11 : i1 to i32
    %c0_i32_10 = arith.constant 0 : i32
    %13 = arith.cmpi ne, %12, %c0_i32_10 : i32
    scf.if %13 {
      %c0_11 = arith.constant 0 : index
      %c0_12 = arith.constant 0 : index
      %14 = vector.load %arg9[%c0_11, %c0_12] : memref<16x512xf32, #tpu.memory_space<vmem>>, vector<16x512xf32>
      %c0_13 = arith.constant 0 : index
      %c0_14 = arith.constant 0 : index
      %15 = vector.load %arg4[%c0_13, %c0_14] : memref<1x512xf32, #tpu.memory_space<vmem>>, vector<1x512xf32>
      %16 = vector.broadcast %15 : vector<1x512xf32> to vector<16x512xf32>
      %17 = arith.addf %14, %16 : vector<16x512xf32>
      %cst_15 = arith.constant 0.000000e+00 : f32
      %18 = vector.broadcast %cst_15 : f32 to vector<16x512xf32>
      %19 = arith.maximumf %17, %18 : vector<16x512xf32>
      %20 = arith.truncf %19 : vector<16x512xf32> to vector<16x512xbf16>
      %c0_16 = arith.constant 0 : index
      %c0_17 = arith.constant 0 : index
      %21 = vector.load %arg5[%c0_16, %c0_17] : memref<512x768xbf16, #tpu.memory_space<vmem>>, vector<512x768xbf16>
      %cst_18 = arith.constant dense<0.000000e+00> : vector<16x768xf32>
      %22 = tpu.matmul %20, %21, %cst_18 {dimension_numbers = #tpu.dot_dimension_numbers<[1], [0], [0], [1], [0, 0, 1, 1], [], []>} : vector<16x512xbf16>, vector<512x768xbf16>, vector<16x768xf32> -> vector<16x768xf32>
      %cst_19 = arith.constant 0.000000e+00 : f32
      %23 = vector.broadcast %cst_19 : f32 to vector<16x768xf32>
      %24 = arith.maximumf %22, %23 : vector<16x768xf32>
      %25 = arith.truncf %24 : vector<16x768xf32> to vector<16x768xbf16>
      %c0_20 = arith.constant 0 : index
      %c0_21 = arith.constant 0 : index
      %26 = vector.load %arg6[%c0_20, %c0_21] : memref<768x128xbf16, #tpu.memory_space<vmem>>, vector<768x128xbf16>
      %cst_22 = arith.constant dense<0.000000e+00> : vector<16x128xf32>
      %27 = tpu.matmul %25, %26, %cst_22 {dimension_numbers = #tpu.dot_dimension_numbers<[1], [0], [0], [1], [0, 0, 1, 1], [], []>} : vector<16x768xbf16>, vector<768x128xbf16>, vector<16x128xf32> -> vector<16x128xf32>
      %c0_23 = arith.constant 0 : index
      %c0_24 = arith.constant 0 : index
      %28 = vector.load %arg7[%c0_23, %c0_24] : memref<1x128xf32, #tpu.memory_space<vmem>>, vector<1x128xf32>
      %29 = vector.broadcast %28 : vector<1x128xf32> to vector<16x128xf32>
      %30 = arith.addf %27, %29 : vector<16x128xf32>
      %c0_25 = arith.constant 0 : index
      %c0_26 = arith.constant 0 : index
      %31 = vector.load %arg8[%c0_25, %c0_26] : memref<16x128xf32, #tpu.memory_space<vmem>>, vector<16x128xf32>
      tpu.vector_store %arg8[%c0_25, %c0_26], %30 {strides = array<i32>} : memref<16x128xf32, #tpu.memory_space<vmem>>, vector<16x128xf32>,
    } else {
    }
    return
  }
  func.func @transform_0(%arg0: i32, %arg1: i32) -> (i32, i32) {
    %c0_i32 = arith.constant 0 : i32
    return %arg0, %arg1 : i32, i32
  }
  func.func @transform_1(%arg0: i32, %arg1: i32) -> (i32, i32) {
    %c0_i32 = arith.constant 0 : i32
    %c0_i32_0 = arith.constant 0 : i32
    return %arg1, %c0_i32 : i32, i32
  }
  func.func @transform_2(%arg0: i32, %arg1: i32) -> (i32, i32) {
    %c0_i32 = arith.constant 0 : i32
    %c0_i32_0 = arith.constant 0 : i32
    %c0_i32_1 = arith.constant 0 : i32
    return %c0_i32, %c0_i32_0 : i32, i32
  }
  func.func @transform_3(%arg0: i32, %arg1: i32) -> (i32, i32) {
    %c0_i32 = arith.constant 0 : i32
    %c0_i32_0 = arith.constant 0 : i32
    %c0_i32_1 = arith.constant 0 : i32
    return %c0_i32, %c0_i32_0 : i32, i32
  }
  func.func @transform_4(%arg0: i32, %arg1: i32) -> (i32, i32) {
    %c0_i32 = arith.constant 0 : i32
    %c0_i32_0 = arith.constant 0 : i32
    %c0_i32_1 = arith.constant 0 : i32
    return %c0_i32, %c0_i32_0 : i32, i32
  }
  func.func @transform_5(%arg0: i32, %arg1: i32) -> (i32, i32) {
    %c0_i32 = arith.constant 0 : i32
    %c0_i32_0 = arith.constant 0 : i32
    %c0_i32_1 = arith.constant 0 : i32
    return %c0_i32, %c0_i32_0 : i32, i32
  }
  func.func @transform_6(%arg0: i32, %arg1: i32) -> (i32, i32) {
    %c0_i32 = arith.constant 0 : i32
    %c0_i32_0 = arith.constant 0 : i32
    return %arg0, %c0_i32 : i32, i32
  }
}

module attributes {stable_mosaic.version = 11 : i64} {
  func.func @_aux_head_kernel(%arg0: i32, %arg1: i32, %arg2: memref<16x896xbf16, #tpu.memory_space<vmem>>, %arg3: memref<896x512xbf16, #tpu.memory_space<vmem>>, %arg4: memref<1x512xf32, #tpu.memory_space<vmem>>, %arg5: memref<512x768xbf16, #tpu.memory_space<vmem>>, %arg6: memref<768x128xbf16, #tpu.memory_space<vmem>>, %arg7: memref<1x128xf32, #tpu.memory_space<vmem>>, %arg8: memref<16x128xf32, #tpu.memory_space<vmem>>, %arg9: memref<16x512xf32, #tpu.memory_space<vmem>>) attributes {dimension_semantics = [#tpu.dimension_semantics<parallel>, #tpu.dimension_semantics<arbitrary>], iteration_bounds = array<i64: 1, 1>, scalar_prefetch = 0 : i64, scratch_operands = 1 : i64, tpu.core_type = #tpu.core_type<tc>, window_params = [{transform_indices = @transform_0, window_bounds = array<i64: 16, 896>}, {transform_indices = @transform_1, window_bounds = array<i64: 896, 512>}, {pipeline_mode = #tpu.pipeline_mode<synchronous>, transform_indices = @transform_2, window_bounds = array<i64: 1, 512>}, {pipeline_mode = #tpu.pipeline_mode<synchronous>, transform_indices = @transform_3, window_bounds = array<i64: 512, 768>}, {pipeline_mode = #tpu.pipeline_mode<synchronous>, transform_indices = @transform_4, window_bounds = array<i64: 768, 128>}, {pipeline_mode = #tpu.pipeline_mode<synchronous>, transform_indices = @transform_5, window_bounds = array<i64: 1, 128>}, {transform_indices = @transform_6, window_bounds = array<i64: 16, 128>}]} {
    %c0_i32 = arith.constant 0 : i32
    %0 = arith.cmpi eq, %arg1, %c0_i32 : i32
    %1 = arith.extui %0 : i1 to i32
    %c0_i32_0 = arith.constant 0 : i32
    %2 = arith.cmpi ne, %1, %c0_i32_0 : i32
    scf.if %2 {
      %cst_11 = arith.constant 0.000000e+00 : f32
      %14 = vector.broadcast %cst_11 : f32 to vector<16x512xf32>
      %c0_12 = arith.constant 0 : index
      %c0_13 = arith.constant 0 : index
      %15 = vector.load %arg9[%c0_12, %c0_13] : memref<16x512xf32, #tpu.memory_space<vmem>>, vector<16x512xf32>
      tpu.vector_store %arg9[%c0_12, %c0_13], %14 {strides = array<i32>} : memref<16x512xf32, #tpu.memory_space<vmem>>, vector<16x512xf32>,
    } else {
    }
    %c0 = arith.constant 0 : index
    %c0_1 = arith.constant 0 : index
    %3 = vector.load %arg2[%c0, %c0_1] : memref<16x896xbf16, #tpu.memory_space<vmem>>, vector<16x896xbf16>
    %cst = arith.constant 0.000000e+00 : bf16
    %4 = vector.broadcast %cst : bf16 to vector<16x896xbf16>
    %5 = arith.maximumf %3, %4 : vector<16x896xbf16>
    %c0_2 = arith.constant 0 : index
    %c0_3 = arith.constant 0 : index
    %6 = vector.load %arg9[%c0_2, %c0_3] : memref<16x512xf32, #tpu.memory_space<vmem>>, vector<16x512xf32>
    %c0_4 = arith.constant 0 : index
    %c0_5 = arith.constant 0 : index
    %7 = vector.load %arg3[%c0_4, %c0_5] : memref<896x512xbf16, #tpu.memory_space<vmem>>, vector<896x512xbf16>
    %cst_6 = arith.constant dense<0.000000e+00> : vector<16x512xf32>
    %8 = tpu.matmul %5, %7, %cst_6 {dimension_numbers = #tpu.dot_dimension_numbers<[1], [0], [0], [1], [0, 0, 1, 1], [], []>} : vector<16x896xbf16>, vector<896x512xbf16>, vector<16x512xf32> -> vector<16x512xf32>
    %9 = arith.addf %6, %8 : vector<16x512xf32>
    %c0_7 = arith.constant 0 : index
    %c0_8 = arith.constant 0 : index
    %10 = vector.load %arg9[%c0_7, %c0_8] : memref<16x512xf32, #tpu.memory_space<vmem>>, vector<16x512xf32>
    tpu.vector_store %arg9[%c0_7, %c0_8], %9 {strides = array<i32>} : memref<16x512xf32, #tpu.memory_space<vmem>>, vector<16x512xf32>,
    %c0_i32_9 = arith.constant 0 : i32
    %11 = arith.cmpi eq, %arg1, %c0_i32_9 : i32
    %12 = arith.extui %11 : i1 to i32
    %c0_i32_10 = arith.constant 0 : i32
    %13 = arith.cmpi ne, %12, %c0_i32_10 : i32
    scf.if %13 {
      %c0_11 = arith.constant 0 : index
      %c0_12 = arith.constant 0 : index
      %14 = vector.load %arg9[%c0_11, %c0_12] : memref<16x512xf32, #tpu.memory_space<vmem>>, vector<16x512xf32>
      %c0_13 = arith.constant 0 : index
      %c0_14 = arith.constant 0 : index
      %15 = vector.load %arg4[%c0_13, %c0_14] : memref<1x512xf32, #tpu.memory_space<vmem>>, vector<1x512xf32>
      %16 = vector.broadcast %15 : vector<1x512xf32> to vector<16x512xf32>
      %17 = arith.addf %14, %16 : vector<16x512xf32>
      %cst_15 = arith.constant 0.000000e+00 : f32
      %18 = vector.broadcast %cst_15 : f32 to vector<16x512xf32>
      %19 = arith.maximumf %17, %18 : vector<16x512xf32>
      %20 = arith.truncf %19 : vector<16x512xf32> to vector<16x512xbf16>
      %c0_16 = arith.constant 0 : index
      %c0_17 = arith.constant 0 : index
      %21 = vector.load %arg5[%c0_16, %c0_17] : memref<512x768xbf16, #tpu.memory_space<vmem>>, vector<512x768xbf16>
      %cst_18 = arith.constant dense<0.000000e+00> : vector<16x768xf32>
      %22 = tpu.matmul %20, %21, %cst_18 {dimension_numbers = #tpu.dot_dimension_numbers<[1], [0], [0], [1], [0, 0, 1, 1], [], []>} : vector<16x512xbf16>, vector<512x768xbf16>, vector<16x768xf32> -> vector<16x768xf32>
      %cst_19 = arith.constant 0.000000e+00 : f32
      %23 = vector.broadcast %cst_19 : f32 to vector<16x768xf32>
      %24 = arith.maximumf %22, %23 : vector<16x768xf32>
      %25 = arith.truncf %24 : vector<16x768xf32> to vector<16x768xbf16>
      %c0_20 = arith.constant 0 : index
      %c0_21 = arith.constant 0 : index
      %26 = vector.load %arg6[%c0_20, %c0_21] : memref<768x128xbf16, #tpu.memory_space<vmem>>, vector<768x128xbf16>
      %cst_22 = arith.constant dense<0.000000e+00> : vector<16x128xf32>
      %27 = tpu.matmul %25, %26, %cst_22 {dimension_numbers = #tpu.dot_dimension_numbers<[1], [0], [0], [1], [0, 0, 1, 1], [], []>} : vector<16x768xbf16>, vector<768x128xbf16>, vector<16x128xf32> -> vector<16x128xf32>
      %c0_23 = arith.constant 0 : index
      %c0_24 = arith.constant 0 : index
      %28 = vector.load %arg7[%c0_23, %c0_24] : memref<1x128xf32, #tpu.memory_space<vmem>>, vector<1x128xf32>
      %29 = vector.broadcast %28 : vector<1x128xf32> to vector<16x128xf32>
      %30 = arith.addf %27, %29 : vector<16x128xf32>
      %c0_25 = arith.constant 0 : index
      %c0_26 = arith.constant 0 : index
      %31 = vector.load %arg8[%c0_25, %c0_26] : memref<16x128xf32, #tpu.memory_space<vmem>>, vector<16x128xf32>
      tpu.vector_store %arg8[%c0_25, %c0_26], %30 {strides = array<i32>} : memref<16x128xf32, #tpu.memory_space<vmem>>, vector<16x128xf32>,
    } else {
    }
    return
  }
  func.func @transform_0(%arg0: i32, %arg1: i32) -> (i32, i32) {
    %c0_i32 = arith.constant 0 : i32
    return %arg0, %arg1 : i32, i32
  }
  func.func @transform_1(%arg0: i32, %arg1: i32) -> (i32, i32) {
    %c0_i32 = arith.constant 0 : i32
    %c0_i32_0 = arith.constant 0 : i32
    return %arg1, %c0_i32 : i32, i32
  }
  func.func @transform_2(%arg0: i32, %arg1: i32) -> (i32, i32) {
    %c0_i32 = arith.constant 0 : i32
    %c0_i32_0 = arith.constant 0 : i32
    %c0_i32_1 = arith.constant 0 : i32
    return %c0_i32, %c0_i32_0 : i32, i32
  }
  func.func @transform_3(%arg0: i32, %arg1: i32) -> (i32, i32) {
    %c0_i32 = arith.constant 0 : i32
    %c0_i32_0 = arith.constant 0 : i32
    %c0_i32_1 = arith.constant 0 : i32
    return %c0_i32, %c0_i32_0 : i32, i32
  }
  func.func @transform_4(%arg0: i32, %arg1: i32) -> (i32, i32) {
    %c0_i32 = arith.constant 0 : i32
    %c0_i32_0 = arith.constant 0 : i32
    %c0_i32_1 = arith.constant 0 : i32
    return %c0_i32, %c0_i32_0 : i32, i32
  }
  func.func @transform_5(%arg0: i32, %arg1: i32) -> (i32, i32) {
    %c0_i32 = arith.constant 0 : i32
    %c0_i32_0 = arith.constant 0 : i32
    %c0_i32_1 = arith.constant 0 : i32
    return %c0_i32, %c0_i32_0 : i32, i32
  }
  func.func @transform_6(%arg0: i32, %arg1: i32) -> (i32, i32) {
    %c0_i32 = arith.constant 0 : i32
    %c0_i32_0 = arith.constant 0 : i32
    return %arg0, %c0_i32 : i32, i32
  }
}

</mosaic_0001>

<bundles_post_ra>
// kernel: tpu_custom_call.1
= control target key start
LH: loop header
LB: loop body
LE: loop exit
PB: predicated region body
PF: predicated region fallthrough
CT: control target
= control target key end

     0   :  { %11 = vsyncpa [#allocation4], 0  ;;  %s5415_s0 = inlined_call_operand.hbm [shape: bf16[16,896], index: 0, kind: input, shape index: {}]   ;;  %s5416_s1 = inlined_call_operand.hbm [shape: bf16[896,512], index: 1, kind: input, shape index: {}]   ;;  %s5417_s2 = inlined_call_operand.vmem [shape: f32[1,512], index: 2, kind: input, shape index: {}]   ;;  %s5418_s3 = inlined_call_operand.hbm [shape: bf16[512,768], index: 3, kind: input, shape index: {}]   ;;  %s5419_s4 = inlined_call_operand.hbm [shape: bf16[768,128], index: 4, kind: input, shape index: {}]   ;;  %s5420_s5 = inlined_call_operand.vmem [shape: f32[1,128], index: 5, kind: input, shape index: {}]   ;;  %s5421_s6 = inlined_call_operand.hbm [shape: f32[16,128], index: 6, kind: output, shape index: {}]  }
   0x1   :  { %12 = vsyncpa [#allocation7], 0 }
   0x2   :  { %13 = vsyncpa [#allocation10], 0 }
   0x3   :  { %14 = vsyncpa [#allocation5], 0  ;;  %s5252_s21 = smov [#allocation6]   ;;  %s5134_s25 = scalar_lea.hbm %s5416_s1, 28672 }
   0x4   :  { %s32_s22 = sshll.u32 %s5252_s21, 4  ;;  %p5135_p0 = scmp.ne.s32.totalorder %s5416_s1, %s5134_s25  ;;  %s33_s22 = int_to_ptr.vmem [resolvable:$true] %s32_s22 }
   0x5   :  { %p5138_p1 = scmp.lt.u32.totalorder %s5134_s25, %s5416_s1 }
   0x7   :  { %p5140_p2 = pnand %p5138_p1, %p5135_p0 }
   0x9   :  { %5143 = shalt.err (!%p5140_p2)
}
   0xa   :  { %s5144_s30 = scalar_lea.vmem %s33_s22, 28672  ;;  %p5149_p4 = scmp.lt.s32.totalorder %s33_s22, %s33_s22 }
   0xb   :  { %p5145_p3 = scmp.ne.s32.totalorder %s33_s22, %s5144_s30  ;;  %p5150_p5 = scmp.lt.s32.totalorder %s5144_s30, %s5144_s30 }
   0xd   :  { %p5151_p6 = por %p5150_p5, %p5149_p4 }
   0xf   :  { %p5152_p7 = pnand %p5151_p6, %p5145_p3 }
  0x11   :  { %5155 = shalt.err (!%p5152_p7)
}
  0x12   :  { %s5253_s7 = smov 256   ;;  %s5254_s8 = smov 16  }
  0x13   :  { %38 = dma.hbm_to_vmem [thread:$0]  %s5416_s1, 28672, %s33_s22, [#allocation7], %s5253_s7, %s5253_s7, %s5254_s8  }
  0x14   :  { %s5255_s11 = smov [#allocation3]   ;;  %s5156_s15 = scalar_lea.hbm %s5415_s0, 896 }
  0x15   :  { %s20_s12 = sshll.u32 %s5255_s11, 4  ;;  %p5157_p8 = scmp.ne.s32.totalorder %s5415_s0, %s5156_s15  ;;  %s21_s12 = int_to_ptr.vmem [resolvable:$true] %s20_s12 }
  0x16   :  { %p5160_p9 = scmp.lt.u32.totalorder %s5156_s15, %s5415_s0 }
  0x18   :  { %p5162_p10 = pnand %p5160_p9, %p5157_p8 }
  0x1a   :  { %5165 = shalt.err (!%p5162_p10)
}
  0x1b   :  { %s5166_s20 = scalar_lea.vmem %s21_s12, 896  ;;  %p5171_p12 = scmp.lt.s32.totalorder %s21_s12, %s21_s12 }
  0x1c   :  { %p5167_p11 = scmp.ne.s32.totalorder %s21_s12, %s5166_s20  ;;  %p5172_p13 = scmp.lt.s32.totalorder %s5166_s20, %s5166_s20 }
  0x1e   :  { %p5173_p0 = por %p5172_p13, %p5171_p12 }
  0x20   :  { %p5174_p1 = pnand %p5173_p0, %p5167_p11 }
  0x22   :  { %5177 = shalt.err (!%p5174_p1)
}
  0x23   :  { %s5256_s1 = smov 448   ;;  %s5257_s21 = smov 28  }
  0x24   :  { %26 = dma.hbm_to_vmem [thread:$0]  %s5415_s0, 896, %s21_s12, [#allocation4], %s5256_s1, %s5256_s1, %s5257_s21  }
  0x25   :  { %s5258_s24 = smov [#allocation8]   ;;  %s5178_s28 = scalar_lea.hbm %s5418_s3, 24576 }
  0x26   :  { %s46_s25 = sshll.u32 %s5258_s24, 4  ;;  %p5179_p2 = scmp.ne.s32.totalorder %s5418_s3, %s5178_s28  ;;  %s47_s25 = int_to_ptr.vmem [resolvable:$true] %s46_s25 }
  0x27   :  { %p5182_p3 = scmp.lt.u32.totalorder %s5178_s28, %s5418_s3 }
  0x29   :  { %p5184_p4 = pnand %p5182_p3, %p5179_p2 }
  0x2b   :  { %5187 = shalt.err (!%p5184_p4)
}
  0x2c   :  { %s5188_s9 = scalar_lea.vmem %s47_s25, 24576  ;;  %p5193_p6 = scmp.lt.s32.totalorder %s47_s25, %s47_s25 }
  0x2d   :  { %p5189_p5 = scmp.ne.s32.totalorder %s47_s25, %s5188_s9  ;;  %p5194_p7 = scmp.lt.s32.totalorder %s5188_s9, %s5188_s9 }
  0x2f   :  { %p5195_p8 = por %p5194_p7, %p5193_p6 }
  0x31   :  { %p5196_p9 = pnand %p5195_p8, %p5189_p5 }
  0x33   :  { %5199 = shalt.err (!%p5196_p9)
}
  0x34   :  { %s5259_s0 = smov 384   ;;  %s5260_s10 = smov 24  }
  0x35   :  { %52 = dma.hbm_to_vmem [thread:$0]  %s5418_s3, 24576, %s47_s25, [#allocation7], %s5259_s0, %s5259_s0, %s5260_s10  }
  0x36   :  { %s5261_s13 = smov [#allocation9]   ;;  %s5200_s17 = scalar_lea.hbm %s5419_s4, 6144 }
  0x37   :  { %s58_s14 = sshll.u32 %s5261_s13, 4  ;;  %p5201_p10 = scmp.ne.s32.totalorder %s5419_s4, %s5200_s17  ;;  %s59_s14 = int_to_ptr.vmem [resolvable:$true] %s58_s14 }
  0x38   :  { %p5204_p11 = scmp.lt.u32.totalorder %s5200_s17, %s5419_s4 }
  0x3a   :  { %p5206_p12 = pnand %p5204_p11, %p5201_p10 }
  0x3c   :  { %5209 = shalt.err (!%p5206_p12)
}
  0x3d   :  { %s5210_s21 = scalar_lea.vmem %s59_s14, 6144  ;;  %p5215_p0 = scmp.lt.s32.totalorder %s59_s14, %s59_s14 }
  0x3e   :  { %p5211_p13 = scmp.ne.s32.totalorder %s59_s14, %s5210_s21  ;;  %p5216_p1 = scmp.lt.s32.totalorder %s5210_s21, %s5210_s21 }
  0x40   :  { %p5217_p2 = por %p5216_p1, %p5215_p0 }
  0x42   :  { %p5218_p3 = pnand %p5217_p2, %p5211_p13 }
  0x44   :  { %5221 = shalt.err (!%p5218_p3)
}
  0x45   :  { %s5262_s3 = smov 64   ;;  %s5263_s22 = smov 4  }
  0x46   :  { %64 = dma.hbm_to_vmem [thread:$0]  %s5419_s4, 6144, %s59_s14, [#allocation10], %s5262_s3, %s5262_s3, %s5263_s22  }
  0x47   :  { %5244 = dma.done.wait [#allocation4], 896  }
  0x48   :  { %5245 = vsyncadd [#allocation4], 4294966400 }
  0x49   :  { %5246 = dma.done.wait [#allocation7], 53248  }
  0x4a   :  { %5247 = vsyncadd [#allocation7], 4294914048 }
  0x4b   :  { %5248 = dma.done.wait [#allocation10], 6144  }
  0x4c   :  { %5249 = vsyncadd [#allocation10], 4294961152  ;;  %v4462_v0 = vld [vmem:[#allocation6 + $0x4] ss:$16 sps:$4 sm:$0xff]   ;;  %v4464_v1 = vld [vmem:[#allocation6 + $0xc] ss:$16 sps:$4 sm:$0xff]  }
  0x4d   :  { %1496 = vmatprep.subr.bf16.mxu0 %v4462_v0  ;;  %v4466_v2 = vld [vmem:[#allocation6] ss:$16 sps:$4 sm:$0xff]   ;;  %v4467_v3 = vld [vmem:[#allocation6 + $0x8] ss:$16 sps:$4 sm:$0xff]   ;;  %1668 = vmatprep.subr.bf16.mxu1 %v4464_v1  ;;  %v4468_v4 = vld [vmem:[#allocation6 + $0x24] ss:$16 sps:$4 sm:$0xff]  }
  0x4e   :  { %1497 = vmatpush1.bf16.msra.mxu0 %v4466_v2  ;;  %1669 = vmatpush1.bf16.msra.mxu1 %v4467_v3  ;;  %v4470_v5 = vld [vmem:[#allocation6 + $0x2c] ss:$16 sps:$4 sm:$0xff]   ;;  %v4472_v6 = vld [vmem:[#allocation6 + $0x20] ss:$16 sps:$4 sm:$0xff]   ;;  %v4473_v7 = vld [vmem:[#allocation6 + $0x28] ss:$16 sps:$4 sm:$0xff]  }
  0x4f   :  { %1498 = vmatprep.subr.bf16.mxu0 %v4468_v4  ;;  %1670 = vmatprep.subr.bf16.mxu1 %v4470_v5  ;;  %v4474_v8 = vld [vmem:[#allocation6 + $0x44] ss:$16 sps:$4 sm:$0xff]   ;;  %v4476_v9 = vld [vmem:[#allocation6 + $0x4c] ss:$16 sps:$4 sm:$0xff]   ;;  %v4478_v10 = vld [vmem:[#allocation6 + $0x40] ss:$16 sps:$4 sm:$0xff]  }
  0x50   :  { %v4479_v11 = vld [vmem:[#allocation6 + $0x48] ss:$16 sps:$4 sm:$0xff]   ;;  %v4480_v12 = vld [vmem:[#allocation6 + $0x64] ss:$16 sps:$4 sm:$0xff]   ;;  %v4482_v13 = vld [vmem:[#allocation6 + $0x6c] ss:$16 sps:$4 sm:$0xff]  }
  0x51   :  { %v4484_v14 = vld [vmem:[#allocation6 + $0x60] ss:$16 sps:$4 sm:$0xff]   ;;  %v4485_v15 = vld [vmem:[#allocation6 + $0x68] ss:$16 sps:$4 sm:$0xff]   ;;  %v4486_v16 = vld [vmem:[#allocation6 + $0x84] ss:$16 sps:$4 sm:$0xff]  }
  0x52   :  { %1499 = vmatpush1.bf16.msra.mxu0 %v4472_v6  ;;  %1671 = vmatpush1.bf16.msra.mxu1 %v4473_v7  ;;  %v4488_v17 = vld [vmem:[#allocation6 + $0x8c] ss:$16 sps:$4 sm:$0xff]   ;;  %v4490_v18 = vld [vmem:[#allocation6 + $0x80] ss:$16 sps:$4 sm:$0xff]   ;;  %v4491_v19 = vld [vmem:[#allocation6 + $0x88] ss:$16 sps:$4 sm:$0xff]  }
  0x53   :  { %1500 = vmatprep.subr.bf16.mxu0 %v4474_v8  ;;  %1672 = vmatprep.subr.bf16.mxu1 %v4476_v9  ;;  %v4492_v20 = vld [vmem:[#allocation6 + $0xa4] ss:$16 sps:$4 sm:$0xff]   ;;  %v4494_v21 = vld [vmem:[#allocation6 + $0xac] ss:$16 sps:$4 sm:$0xff]   ;;  %v4496_v22 = vld [vmem:[#allocation6 + $0xa0] ss:$16 sps:$4 sm:$0xff]  }
  0x54   :  { %v4497_v23 = vld [vmem:[#allocation6 + $0xa8] ss:$16 sps:$4 sm:$0xff]   ;;  %v4498_v24 = vld [vmem:[#allocation6 + $0xc4] ss:$16 sps:$4 sm:$0xff]   ;;  %v4500_v25 = vld [vmem:[#allocation6 + $0xcc] ss:$16 sps:$4 sm:$0xff]  }
  0x55   :  { %v4502_v26 = vld [vmem:[#allocation6 + $0xc0] ss:$16 sps:$4 sm:$0xff]   ;;  %v4503_v27 = vld [vmem:[#allocation6 + $0xc8] ss:$16 sps:$4 sm:$0xff]   ;;  %v4504_v28 = vld [vmem:[#allocation6 + $0xe4] ss:$16 sps:$4 sm:$0xff]  }
  0x56   :  { %1501 = vmatpush1.bf16.msra.mxu0 %v4478_v10  ;;  %1673 = vmatpush1.bf16.msra.mxu1 %v4479_v11  ;;  %v4506_v29 = vld [vmem:[#allocation6 + $0xec] ss:$16 sps:$4 sm:$0xff]   ;;  %v4508_v30 = vld [vmem:[#allocation6 + $0xe0] ss:$16 sps:$4 sm:$0xff]   ;;  %v4509_v31 = vld [vmem:[#allocation6 + $0xe8] ss:$16 sps:$4 sm:$0xff]  }
  0x57   :  { %1502 = vmatprep.subr.bf16.mxu0 %v4480_v12  ;;  %1674 = vmatprep.subr.bf16.mxu1 %v4482_v13  ;;  %v4510_v32 = vld [vmem:[#allocation6 + $0x104] ss:$16 sps:$4 sm:$0xff]   ;;  %v4512_v33 = vld [vmem:[#allocation6 + $0x10c] ss:$16 sps:$4 sm:$0xff]   ;;  %v4514_v34 = vld [vmem:[#allocation6 + $0x100] ss:$16 sps:$4 sm:$0xff]  }
  0x58   :  { %v4515_v35 = vld [vmem:[#allocation6 + $0x108] ss:$16 sps:$4 sm:$0xff]   ;;  %v4516_v36 = vld [vmem:[#allocation6 + $0x124] ss:$16 sps:$4 sm:$0xff]   ;;  %v4518_v37 = vld [vmem:[#allocation6 + $0x12c] ss:$16 sps:$4 sm:$0xff]  }
  0x59   :  { %v4520_v38 = vld [vmem:[#allocation6 + $0x120] ss:$16 sps:$4 sm:$0xff]   ;;  %v4521_v39 = vld [vmem:[#allocation6 + $0x128] ss:$16 sps:$4 sm:$0xff]   ;;  %v4522_v40 = vld [vmem:[#allocation6 + $0x144] ss:$16 sps:$4 sm:$0xff]  }
  0x5a   :  { %1503 = vmatpush1.bf16.msra.mxu0 %v4484_v14  ;;  %1675 = vmatpush1.bf16.msra.mxu1 %v4485_v15  ;;  %v4524_v41 = vld [vmem:[#allocation6 + $0x14c] ss:$16 sps:$4 sm:$0xff]   ;;  %v4526_v42 = vld [vmem:[#allocation6 + $0x140] ss:$16 sps:$4 sm:$0xff]   ;;  %v4527_v43 = vld [vmem:[#allocation6 + $0x148] ss:$16 sps:$4 sm:$0xff]  }
  0x5b   :  { %1504 = vmatprep.subr.bf16.mxu0 %v4486_v16  ;;  %1676 = vmatprep.subr.bf16.mxu1 %v4488_v17  ;;  %v4528_v44 = vld [vmem:[#allocation6 + $0x164] ss:$16 sps:$4 sm:$0xff]   ;;  %v4530_v45 = vld [vmem:[#allocation6 + $0x16c] ss:$16 sps:$4 sm:$0xff]   ;;  %v5264_v48 = vmov 0   ;;  %s5265_s27 = smov [#allocation11]  }
  0x5c   :  { %v92_v46 = vld [vmem:[#allocation3] sm:$0xff]  ;;  %v4532_v50 = vld [vmem:[#allocation6 + $0x160] ss:$16 sps:$4 sm:$0xff]   ;;  %v4534_v53 = vld [vmem:[#allocation6 + $0x184] ss:$16 sps:$4 sm:$0xff]   ;;  %s3858_s28 = sshll.u32 %s5265_s27, 4  ;;  %s3859_s28 = int_to_ptr.vmem [resolvable:$true] %s3858_s28 }
  0x5d   :  { %v96_v47 = vld [vmem:[#allocation3 + $0x1c] sm:$0xff]  ;;  %v100_v49 = vmax.bf16 %v5264_v48, %v92_v46  ;;  %v4536_v54 = vld [vmem:[#allocation6 + $0x18c] ss:$16 sps:$4 sm:$0xff]   ;;  %v4538_v56 = vld [vmem:[#allocation6 + $0x180] ss:$16 sps:$4 sm:$0xff]   ;;  %p5227_p5 = scmp.lt.s32.totalorder %s3859_s28, %s3859_s28 }
  0x5e   :  { %1505 = vmatpush1.bf16.msra.mxu0 %v4490_v18  ;;  %1677 = vmatpush1.bf16.msra.mxu1 %v4491_v19  ;;  %v4533_v51 = vld [vmem:[#allocation6 + $0x168] ss:$16 sps:$4 sm:$0xff]   ;;  %v104_v52 = vmax.bf16 %v5264_v48, %v96_v47  ;;  %v4540_v58 = vld [vmem:[#allocation6 + $0x1a4] ss:$16 sps:$4 sm:$0xff]   ;;  %v4542_v59 = vld [vmem:[#allocation6 + $0x1ac] ss:$16 sps:$4 sm:$0xff]  }
  0x5f   :  { %1506 = vmatprep.subr.bf16.mxu0 %v4492_v20  ;;  %1678 = vmatprep.subr.bf16.mxu1 %v4494_v21  ;;  %v4539_v57 = vld [vmem:[#allocation6 + $0x188] ss:$16 sps:$4 sm:$0xff]   ;;  %v4544_v60 = vld [vmem:[#allocation6 + $0x1a0] ss:$16 sps:$4 sm:$0xff]   ;;  %v4546_v62 = vld [vmem:[#allocation6 + $0x1c4] ss:$16 sps:$4 sm:$0xff]  }
  0x60   :  { %v3873_v55 = vcombine.high %v100_v49, %v104_v52  ;;  %v4545_v61 = vld [vmem:[#allocation6 + $0x1a8] ss:$16 sps:$4 sm:$0xff]   ;;  %v4548_v63 = vld [vmem:[#allocation6 + $0x1cc] ss:$16 sps:$4 sm:$0xff]   ;;  %v4550_v0 = vld [vmem:[#allocation6 + $0x1c0] ss:$16 sps:$4 sm:$0xff]   ;;  %v3872_v8 = vcombine.low %v100_v49, %v104_v52 }
  0x61   :  { %v4551_v1 = vld [vmem:[#allocation6 + $0x1c8] ss:$16 sps:$4 sm:$0xff]   ;;  %v4552_v2 = vld [vmem:[#allocation6 + $0x1e4] ss:$16 sps:$4 sm:$0xff]   ;;  %v4554_v3 = vld [vmem:[#allocation6 + $0x1ec] ss:$16 sps:$4 sm:$0xff]  }
  0x62   :  { %1507 = vmatpush1.bf16.msra.mxu0 %v4496_v22  ;;  %1679 = vmatpush1.bf16.msra.mxu1 %v4497_v23  ;;  %v4556_v4 = vld [vmem:[#allocation6 + $0x1e0] ss:$16 sps:$4 sm:$0xff]   ;;  %v4557_v5 = vld [vmem:[#allocation6 + $0x1e8] ss:$16 sps:$4 sm:$0xff]   ;;  %v4560_v6 = vld [vmem:[#allocation6 + $0x204] ss:$16 sps:$4 sm:$0xff]  }
  0x63   :  { %1508 = vmatprep.subr.bf16.mxu0 %v4498_v24  ;;  %1680 = vmatprep.subr.bf16.mxu1 %v4500_v25  ;;  %v4563_v7 = vld [vmem:[#allocation6 + $0x20c] ss:$16 sps:$4 sm:$0xff]   ;;  %v4558_v9 = vld [vmem:[#allocation6 + $0x200] ss:$16 sps:$4 sm:$0xff]   ;;  %v4561_v10 = vld [vmem:[#allocation6 + $0x208] ss:$16 sps:$4 sm:$0xff]  }
  0x64   :  { %1528 = vmatprep.mubr.bf16.mxu0 %v3873_v55  ;;  %1700 = vmatprep.mubr.bf16.mxu1 %v3873_v55  ;;  %v4566_v11 = vld [vmem:[#allocation6 + $0x224] ss:$16 sps:$4 sm:$0xff]   ;;  %v4569_v12 = vld [vmem:[#allocation6 + $0x22c] ss:$16 sps:$4 sm:$0xff]   ;;  %v4564_v13 = vld [vmem:[#allocation6 + $0x220] ss:$16 sps:$4 sm:$0xff]  }
  0x65   :  { %v4567_v14 = vld [vmem:[#allocation6 + $0x228] ss:$16 sps:$4 sm:$0xff]   ;;  %v4572_v15 = vld [vmem:[#allocation6 + $0x244] ss:$16 sps:$4 sm:$0xff]   ;;  %v4575_v16 = vld [vmem:[#allocation6 + $0x24c] ss:$16 sps:$4 sm:$0xff]  }
  0x66   :  { %1509 = vmatpush1.bf16.msra.mxu0 %v4502_v26  ;;  %1681 = vmatpush1.bf16.msra.mxu1 %v4503_v27  ;;  %v4570_v17 = vld [vmem:[#allocation6 + $0x240] ss:$16 sps:$4 sm:$0xff]   ;;  %v4573_v18 = vld [vmem:[#allocation6 + $0x248] ss:$16 sps:$4 sm:$0xff]   ;;  %v4578_v19 = vld [vmem:[#allocation6 + $0x264] ss:$16 sps:$4 sm:$0xff]  }
  0x67   :  { %1510 = vmatprep.subr.bf16.mxu0 %v4504_v28  ;;  %1682 = vmatprep.subr.bf16.mxu1 %v4506_v29  ;;  %v4581_v20 = vld [vmem:[#allocation6 + $0x26c] ss:$16 sps:$4 sm:$0xff]   ;;  %v4576_v21 = vld [vmem:[#allocation6 + $0x260] ss:$16 sps:$4 sm:$0xff]   ;;  %v4579_v22 = vld [vmem:[#allocation6 + $0x268] ss:$16 sps:$4 sm:$0xff]  }
  0x68   :  { %v4584_v23 = vld [vmem:[#allocation6 + $0x284] ss:$16 sps:$4 sm:$0xff]   ;;  %v4587_v24 = vld [vmem:[#allocation6 + $0x28c] ss:$16 sps:$4 sm:$0xff]   ;;  %v4582_v25 = vld [vmem:[#allocation6 + $0x280] ss:$16 sps:$4 sm:$0xff]  }
  0x69   :  { %v4585_v26 = vld [vmem:[#allocation6 + $0x288] ss:$16 sps:$4 sm:$0xff]   ;;  %v4590_v27 = vld [vmem:[#allocation6 + $0x2a4] ss:$16 sps:$4 sm:$0xff]   ;;  %v4593_v28 = vld [vmem:[#allocation6 + $0x2ac] ss:$16 sps:$4 sm:$0xff]  }
  0x6a   :  { %1511 = vmatpush1.bf16.msra.mxu0 %v4508_v30  ;;  %1683 = vmatpush1.bf16.msra.mxu1 %v4509_v31  ;;  %v4588_v29 = vld [vmem:[#allocation6 + $0x2a0] ss:$16 sps:$4 sm:$0xff]   ;;  %v4591_v30 = vld [vmem:[#allocation6 + $0x2a8] ss:$16 sps:$4 sm:$0xff]   ;;  %v4596_v31 = vld [vmem:[#allocation6 + $0x2c4] ss:$16 sps:$4 sm:$0xff]  }
  0x6b   :  { %1512 = vmatprep.subr.bf16.mxu0 %v4510_v32  ;;  %1684 = vmatprep.subr.bf16.mxu1 %v4512_v33  ;;  %v4599_v32 = vld [vmem:[#allocation6 + $0x2cc] ss:$16 sps:$4 sm:$0xff]   ;;  %v93_v33 = vld [vmem:[#allocation3 + $0x8] sm:$0xff]  ;;  %v4609_v47 = vld [vmem:[#allocation6 + $0x308] ss:$16 sps:$4 sm:$0xff]  }
  0x6c   :  { %v4606_v46 = vld [vmem:[#allocation6 + $0x300] ss:$16 sps:$4 sm:$0xff]   ;;  %v4614_v49 = vld [vmem:[#allocation6 + $0x324] ss:$16 sps:$4 sm:$0xff]   ;;  %v4615_v52 = vld [vmem:[#allocation6 + $0x328] ss:$16 sps:$4 sm:$0xff]  }
  0x6d   :  { %v4618_v55 = vld [vmem:[#allocation6 + $0x340] ss:$16 sps:$4 sm:$0xff]  }
  0x6e   :  { %1513 = vmatpush1.bf16.msra.mxu0 %v4514_v34  ;;  %1685 = vmatpush1.bf16.msra.mxu1 %v4515_v35  ;;  %v97_v34 = vld [vmem:[#allocation3 + $0x24] sm:$0xff] }
  0x6f   :  { %1514 = vmatprep.subr.bf16.mxu0 %v4516_v36  ;;  %1686 = vmatprep.subr.bf16.mxu1 %v4518_v37  ;;  %v4594_v35 = vld [vmem:[#allocation6 + $0x2c0] ss:$16 sps:$4 sm:$0xff]   ;;  %v4597_v36 = vld [vmem:[#allocation6 + $0x2c8] ss:$16 sps:$4 sm:$0xff]   ;;  %v5354_v37 = vmax.bf16 %v5264_v48, %v93_v33 }
  0x70   :  { %v4672_v33 = vld [vmem:[#allocation6 + $0x460] ss:$16 sps:$4 sm:$0xff]  }
  0x72   :  { %1515 = vmatpush1.bf16.msra.mxu0 %v4520_v38  ;;  %1687 = vmatpush1.bf16.msra.mxu1 %v4521_v39  ;;  %v5357_v38 = vmax.bf16 %v5264_v48, %v97_v34  ;;  %v4602_v39 = vld [vmem:[#allocation6 + $0x2e4] ss:$16 sps:$4 sm:$0xff]   ;;  %v4675_v34 = vld [vmem:[#allocation6 + $0x468] ss:$16 sps:$4 sm:$0xff]  }
  0x73   :  { %1516 = vmatprep.subr.bf16.mxu0 %v4522_v40  ;;  %1688 = vmatprep.subr.bf16.mxu1 %v4524_v41  ;;  %v4605_v40 = vld [vmem:[#allocation6 + $0x2ec] ss:$16 sps:$4 sm:$0xff]  }
  0x74   :  { %v3875_v41 = vcombine.high %v5354_v37, %v5357_v38 }
  0x76   :  { %1517 = vmatpush1.bf16.msra.mxu0 %v4526_v42  ;;  %1689 = vmatpush1.bf16.msra.mxu1 %v4527_v43  ;;  %v4600_v42 = vld [vmem:[#allocation6 + $0x2e0] ss:$16 sps:$4 sm:$0xff]   ;;  %v4603_v43 = vld [vmem:[#allocation6 + $0x2e8] ss:$16 sps:$4 sm:$0xff]  }
  0x77   :  { %1518 = vmatprep.subr.bf16.mxu0 %v4528_v44  ;;  %1690 = vmatprep.subr.bf16.mxu1 %v4530_v45  ;;  %v4608_v44 = vld [vmem:[#allocation6 + $0x304] ss:$16 sps:$4 sm:$0xff]   ;;  %v4611_v45 = vld [vmem:[#allocation6 + $0x30c] ss:$16 sps:$4 sm:$0xff]  }
  0x7a   :  { %1519 = vmatpush1.bf16.msra.mxu0 %v4532_v50  ;;  %1691 = vmatpush1.bf16.msra.mxu1 %v4533_v51  ;;  %v4617_v50 = vld [vmem:[#allocation6 + $0x32c] ss:$16 sps:$4 sm:$0xff]   ;;  %v4612_v51 = vld [vmem:[#allocation6 + $0x320] ss:$16 sps:$4 sm:$0xff]  }
  0x7b   :  { %1520 = vmatprep.subr.bf16.mxu0 %v4534_v53  ;;  %1692 = vmatprep.subr.bf16.mxu1 %v4536_v54  ;;  %v4620_v53 = vld [vmem:[#allocation6 + $0x344] ss:$16 sps:$4 sm:$0xff]   ;;  %v4623_v54 = vld [vmem:[#allocation6 + $0x34c] ss:$16 sps:$4 sm:$0xff]  }
  0x7e   :  { %1521 = vmatpush1.bf16.msra.mxu0 %v4538_v56  ;;  %1693 = vmatpush1.bf16.msra.mxu1 %v4539_v57  ;;  %v4621_v56 = vld [vmem:[#allocation6 + $0x348] ss:$16 sps:$4 sm:$0xff]   ;;  %v4626_v57 = vld [vmem:[#allocation6 + $0x364] ss:$16 sps:$4 sm:$0xff]  }
  0x7f   :  { %1522 = vmatprep.subr.bf16.mxu0 %v4540_v58  ;;  %1694 = vmatprep.subr.bf16.mxu1 %v4542_v59  ;;  %v4629_v58 = vld [vmem:[#allocation6 + $0x36c] ss:$16 sps:$4 sm:$0xff]   ;;  %v4624_v59 = vld [vmem:[#allocation6 + $0x360] ss:$16 sps:$4 sm:$0xff]  }
  0x82   :  { %1523 = vmatpush1.bf16.msra.mxu0 %v4544_v60  ;;  %1695 = vmatpush1.bf16.msra.mxu1 %v4545_v61  ;;  %v4627_v60 = vld [vmem:[#allocation6 + $0x368] ss:$16 sps:$4 sm:$0xff]   ;;  %v4632_v61 = vld [vmem:[#allocation6 + $0x384] ss:$16 sps:$4 sm:$0xff]  }
  0x83   :  { %1524 = vmatprep.subr.bf16.mxu0 %v4546_v62  ;;  %1696 = vmatprep.subr.bf16.mxu1 %v4548_v63  ;;  %v4635_v62 = vld [vmem:[#allocation6 + $0x38c] ss:$16 sps:$4 sm:$0xff]   ;;  %v4630_v63 = vld [vmem:[#allocation6 + $0x380] ss:$16 sps:$4 sm:$0xff]  }
  0x86   :  { %1525 = vmatpush1.bf16.msra.mxu0 %v4550_v0  ;;  %1697 = vmatpush1.bf16.msra.mxu1 %v4551_v1  ;;  %v4633_v0 = vld [vmem:[#allocation6 + $0x388] ss:$16 sps:$4 sm:$0xff]   ;;  %v4638_v1 = vld [vmem:[#allocation6 + $0x3a4] ss:$16 sps:$4 sm:$0xff]  }
  0x87   :  { %1526 = vmatprep.subr.bf16.mxu0 %v4552_v2  ;;  %1698 = vmatprep.subr.bf16.mxu1 %v4554_v3  ;;  %v4641_v2 = vld [vmem:[#allocation6 + $0x3ac] ss:$16 sps:$4 sm:$0xff]   ;;  %v4636_v3 = vld [vmem:[#allocation6 + $0x3a0] ss:$16 sps:$4 sm:$0xff]  }
  0x8a   :  { %1527 = vmatpush1.bf16.msra.mxu0 %v4556_v4  ;;  %1699 = vmatpush1.bf16.msra.mxu1 %v4557_v5  ;;  %v4639_v4 = vld [vmem:[#allocation6 + $0x3a8] ss:$16 sps:$4 sm:$0xff]   ;;  %v4644_v5 = vld [vmem:[#allocation6 + $0x3c4] ss:$16 sps:$4 sm:$0xff]  }
  0x8b   :  { %1539 = vmatprep.subr.bf16.mxu0 %v4560_v6  ;;  %1711 = vmatprep.subr.bf16.mxu1 %v4563_v7  ;;  %v4647_v6 = vld [vmem:[#allocation6 + $0x3cc] ss:$16 sps:$4 sm:$0xff]   ;;  %v4642_v7 = vld [vmem:[#allocation6 + $0x3c0] ss:$16 sps:$4 sm:$0xff]  }
  0x8d   :  { %1529 = vmatmul.mubr.bf16.vlgmr.msra.gmra.mrb[0].mxu0 %v3872_v8  ;;  %1701 = vmatmul.mubr.bf16.vlgmr.msra.gmra.mrb[0].mxu1 %v3872_v8  ;;  %v4645_v8 = vld [vmem:[#allocation6 + $0x3c8] ss:$16 sps:$4 sm:$0xff]  }
  0x8e   :  { %1540 = vmatpush1.bf16.msra.mxu0 %v4558_v9  ;;  %1712 = vmatpush1.bf16.msra.mxu1 %v4561_v10  ;;  %v4650_v9 = vld [vmem:[#allocation6 + $0x3e4] ss:$16 sps:$4 sm:$0xff]   ;;  %v4653_v10 = vld [vmem:[#allocation6 + $0x3ec] ss:$16 sps:$4 sm:$0xff]  }
  0x8f   :  { %1541 = vmatprep.subr.bf16.mxu0 %v4566_v11  ;;  %1713 = vmatprep.subr.bf16.mxu1 %v4569_v12  ;;  %v4648_v11 = vld [vmem:[#allocation6 + $0x3e0] ss:$16 sps:$4 sm:$0xff]   ;;  %v4651_v12 = vld [vmem:[#allocation6 + $0x3e8] ss:$16 sps:$4 sm:$0xff]  }
  0x90   :  { %1571 = vmatprep.mubr.bf16.mxu0 %v3875_v41  ;;  %1743 = vmatprep.mubr.bf16.mxu1 %v3875_v41  ;;  %v4684_v41 = vld [vmem:[#allocation6 + $0x4a0] ss:$16 sps:$4 sm:$0xff]  }
  0x92   :  { %1542 = vmatpush1.bf16.msra.mxu0 %v4564_v13  ;;  %1714 = vmatpush1.bf16.msra.mxu1 %v4567_v14  ;;  %v4656_v13 = vld [vmem:[#allocation6 + $0x404] ss:$16 sps:$4 sm:$0xff]   ;;  %v4659_v14 = vld [vmem:[#allocation6 + $0x40c] ss:$16 sps:$4 sm:$0xff]  }
  0x93   :  { %1543 = vmatprep.subr.bf16.mxu0 %v4572_v15  ;;  %1715 = vmatprep.subr.bf16.mxu1 %v4575_v16  ;;  %v4654_v15 = vld [vmem:[#allocation6 + $0x400] ss:$16 sps:$4 sm:$0xff]   ;;  %v4657_v16 = vld [vmem:[#allocation6 + $0x408] ss:$16 sps:$4 sm:$0xff]  }
  0x96   :  { %1544 = vmatpush1.bf16.msra.mxu0 %v4570_v17  ;;  %1716 = vmatpush1.bf16.msra.mxu1 %v4573_v18  ;;  %v3874_v17 = vcombine.low %v5354_v37, %v5357_v38  ;;  %v4662_v18 = vld [vmem:[#allocation6 + $0x424] ss:$16 sps:$4 sm:$0xff]   ;;  %v4678_v37 = vld [vmem:[#allocation6 + $0x480] ss:$16 sps:$4 sm:$0xff]   ;;  %v4681_v38 = vld [vmem:[#allocation6 + $0x488] ss:$16 sps:$4 sm:$0xff]  }
  0x97   :  { %1545 = vmatprep.subr.bf16.mxu0 %v4578_v19  ;;  %1717 = vmatprep.subr.bf16.mxu1 %v4581_v20  ;;  %v4665_v19 = vld [vmem:[#allocation6 + $0x42c] ss:$16 sps:$4 sm:$0xff]  }
  0x98   :  { %v94_v20 = vld [vmem:[#allocation3 + $0x10] sm:$0xff] }
  0x9a   :  { %1546 = vmatpush1.bf16.msra.mxu0 %v4576_v21  ;;  %1718 = vmatpush1.bf16.msra.mxu1 %v4579_v22  ;;  %v98_v21 = vld [vmem:[#allocation3 + $0x2c] sm:$0xff]  ;;  %v5364_v22 = vmax.bf16 %v5264_v48, %v94_v20 }
  0x9b   :  { %1547 = vmatprep.subr.bf16.mxu0 %v4584_v23  ;;  %1719 = vmatprep.subr.bf16.mxu1 %v4587_v24  ;;  %v5367_v23 = vmax.bf16 %v5264_v48, %v98_v21  ;;  %v4660_v24 = vld [vmem:[#allocation6 + $0x420] ss:$16 sps:$4 sm:$0xff]   ;;  %v4752_v20 = vld [vmem:[#allocation6 + $0x604] ss:$16 sps:$4 sm:$0xff]   ;;  %v4755_v21 = vld [vmem:[#allocation6 + $0x60c] ss:$16 sps:$4 sm:$0xff]  }
  0x9e   :  { %1548 = vmatpush1.bf16.msra.mxu0 %v4582_v25  ;;  %1720 = vmatpush1.bf16.msra.mxu1 %v4585_v26  ;;  %v4663_v25 = vld [vmem:[#allocation6 + $0x428] ss:$16 sps:$4 sm:$0xff]   ;;  %v3877_v26 = vcombine.high %v5364_v22, %v5367_v23 }
  0x9f   :  { %1549 = vmatprep.subr.bf16.mxu0 %v4590_v27  ;;  %1721 = vmatprep.subr.bf16.mxu1 %v4593_v28  ;;  %v4668_v27 = vld [vmem:[#allocation6 + $0x444] ss:$16 sps:$4 sm:$0xff]   ;;  %v4671_v28 = vld [vmem:[#allocation6 + $0x44c] ss:$16 sps:$4 sm:$0xff]  }
  0xa2   :  { %1550 = vmatpush1.bf16.msra.mxu0 %v4588_v29  ;;  %1722 = vmatpush1.bf16.msra.mxu1 %v4591_v30  ;;  %v4666_v29 = vld [vmem:[#allocation6 + $0x440] ss:$16 sps:$4 sm:$0xff]   ;;  %v4669_v30 = vld [vmem:[#allocation6 + $0x448] ss:$16 sps:$4 sm:$0xff]  }
  0xa3   :  { %1551 = vmatprep.subr.bf16.mxu0 %v4596_v31  ;;  %1723 = vmatprep.subr.bf16.mxu1 %v4599_v32  ;;  %v4674_v31 = vld [vmem:[#allocation6 + $0x464] ss:$16 sps:$4 sm:$0xff]   ;;  %v4677_v32 = vld [vmem:[#allocation6 + $0x46c] ss:$16 sps:$4 sm:$0xff]  }
  0xa6   :  { %1552 = vmatpush1.bf16.msra.mxu0 %v4594_v35  ;;  %1724 = vmatpush1.bf16.msra.mxu1 %v4597_v36  ;;  %v4680_v35 = vld [vmem:[#allocation6 + $0x484] ss:$16 sps:$4 sm:$0xff]   ;;  %v4683_v36 = vld [vmem:[#allocation6 + $0x48c] ss:$16 sps:$4 sm:$0xff]  }
  0xa7   :  { %1553 = vmatprep.subr.bf16.mxu0 %v4602_v39  ;;  %1725 = vmatprep.subr.bf16.mxu1 %v4605_v40  ;;  %v4686_v39 = vld [vmem:[#allocation6 + $0x4a4] ss:$16 sps:$4 sm:$0xff]   ;;  %v4689_v40 = vld [vmem:[#allocation6 + $0x4ac] ss:$16 sps:$4 sm:$0xff]  }
  0xaa   :  { %1554 = vmatpush1.bf16.msra.mxu0 %v4600_v42  ;;  %1726 = vmatpush1.bf16.msra.mxu1 %v4603_v43  ;;  %v4687_v42 = vld [vmem:[#allocation6 + $0x4a8] ss:$16 sps:$4 sm:$0xff]   ;;  %v4692_v43 = vld [vmem:[#allocation6 + $0x4c4] ss:$16 sps:$4 sm:$0xff]  }
  0xab   :  { %1555 = vmatprep.subr.bf16.mxu0 %v4608_v44  ;;  %1727 = vmatprep.subr.bf16.mxu1 %v4611_v45  ;;  %v4695_v44 = vld [vmem:[#allocation6 + $0x4cc] ss:$16 sps:$4 sm:$0xff]   ;;  %v4690_v45 = vld [vmem:[#allocation6 + $0x4c0] ss:$16 sps:$4 sm:$0xff]  }
  0xae   :  { %1556 = vmatpush1.bf16.msra.mxu0 %v4606_v46  ;;  %1728 = vmatpush1.bf16.msra.mxu1 %v4609_v47  ;;  %v4693_v46 = vld [vmem:[#allocation6 + $0x4c8] ss:$16 sps:$4 sm:$0xff]   ;;  %v4698_v47 = vld [vmem:[#allocation6 + $0x4e4] ss:$16 sps:$4 sm:$0xff]  }
  0xaf   :  { %1557 = vmatprep.subr.bf16.mxu0 %v4614_v49  ;;  %1729 = vmatprep.subr.bf16.mxu1 %v4617_v50  ;;  %v4701_v49 = vld [vmem:[#allocation6 + $0x4ec] ss:$16 sps:$4 sm:$0xff]   ;;  %v4696_v50 = vld [vmem:[#allocation6 + $0x4e0] ss:$16 sps:$4 sm:$0xff]  }
  0xb2   :  { %1558 = vmatpush1.bf16.msra.mxu0 %v4612_v51  ;;  %1730 = vmatpush1.bf16.msra.mxu1 %v4615_v52  ;;  %v4699_v51 = vld [vmem:[#allocation6 + $0x4e8] ss:$16 sps:$4 sm:$0xff]   ;;  %v4704_v52 = vld [vmem:[#allocation6 + $0x504] ss:$16 sps:$4 sm:$0xff]  }
  0xb3   :  { %1559 = vmatprep.subr.bf16.mxu0 %v4620_v53  ;;  %1731 = vmatprep.subr.bf16.mxu1 %v4623_v54  ;;  %v4707_v53 = vld [vmem:[#allocation6 + $0x50c] ss:$16 sps:$4 sm:$0xff]   ;;  %v4702_v54 = vld [vmem:[#allocation6 + $0x500] ss:$16 sps:$4 sm:$0xff]  }
  0xb6   :  { %1560 = vmatpush1.bf16.msra.mxu0 %v4618_v55  ;;  %1732 = vmatpush1.bf16.msra.mxu1 %v4621_v56  ;;  %v4705_v55 = vld [vmem:[#allocation6 + $0x508] ss:$16 sps:$4 sm:$0xff]   ;;  %v4710_v56 = vld [vmem:[#allocation6 + $0x524] ss:$16 sps:$4 sm:$0xff]  }
  0xb7   :  { %1561 = vmatprep.subr.bf16.mxu0 %v4626_v57  ;;  %1733 = vmatprep.subr.bf16.mxu1 %v4629_v58  ;;  %v4713_v57 = vld [vmem:[#allocation6 + $0x52c] ss:$16 sps:$4 sm:$0xff]   ;;  %v4708_v58 = vld [vmem:[#allocation6 + $0x520] ss:$16 sps:$4 sm:$0xff]  }
  0xba   :  { %1562 = vmatpush1.bf16.msra.mxu0 %v4624_v59  ;;  %1734 = vmatpush1.bf16.msra.mxu1 %v4627_v60  ;;  %v4711_v59 = vld [vmem:[#allocation6 + $0x528] ss:$16 sps:$4 sm:$0xff]   ;;  %v4716_v60 = vld [vmem:[#allocation6 + $0x544] ss:$16 sps:$4 sm:$0xff]  }
  0xbb   :  { %1563 = vmatprep.subr.bf16.mxu0 %v4632_v61  ;;  %1735 = vmatprep.subr.bf16.mxu1 %v4635_v62  ;;  %v4719_v61 = vld [vmem:[#allocation6 + $0x54c] ss:$16 sps:$4 sm:$0xff]   ;;  %v4714_v62 = vld [vmem:[#allocation6 + $0x540] ss:$16 sps:$4 sm:$0xff]  }
  0xbe   :  { %1564 = vmatpush1.bf16.msra.mxu0 %v4630_v63  ;;  %1736 = vmatpush1.bf16.msra.mxu1 %v4633_v0  ;;  %v4717_v63 = vld [vmem:[#allocation6 + $0x548] ss:$16 sps:$4 sm:$0xff]   ;;  %v4722_v0 = vld [vmem:[#allocation6 + $0x564] ss:$16 sps:$4 sm:$0xff]  }
  0xbf   :  { %1565 = vmatprep.subr.bf16.mxu0 %v4638_v1  ;;  %1737 = vmatprep.subr.bf16.mxu1 %v4641_v2  ;;  %v4725_v1 = vld [vmem:[#allocation6 + $0x56c] ss:$16 sps:$4 sm:$0xff]   ;;  %v4720_v2 = vld [vmem:[#allocation6 + $0x560] ss:$16 sps:$4 sm:$0xff]  }
  0xc2   :  { %1566 = vmatpush1.bf16.msra.mxu0 %v4636_v3  ;;  %1738 = vmatpush1.bf16.msra.mxu1 %v4639_v4  ;;  %v4723_v3 = vld [vmem:[#allocation6 + $0x568] ss:$16 sps:$4 sm:$0xff]   ;;  %v4728_v4 = vld [vmem:[#allocation6 + $0x584] ss:$16 sps:$4 sm:$0xff]  }
  0xc3   :  { %1567 = vmatprep.subr.bf16.mxu0 %v4644_v5  ;;  %1739 = vmatprep.subr.bf16.mxu1 %v4647_v6  ;;  %v4731_v5 = vld [vmem:[#allocation6 + $0x58c] ss:$16 sps:$4 sm:$0xff]   ;;  %v4726_v6 = vld [vmem:[#allocation6 + $0x580] ss:$16 sps:$4 sm:$0xff]  }
  0xc6   :  { %1568 = vmatpush1.bf16.msra.mxu0 %v4642_v7  ;;  %1740 = vmatpush1.bf16.msra.mxu1 %v4645_v8  ;;  %v4729_v7 = vld [vmem:[#allocation6 + $0x588] ss:$16 sps:$4 sm:$0xff]   ;;  %v4734_v8 = vld [vmem:[#allocation6 + $0x5a4] ss:$16 sps:$4 sm:$0xff]  }
  0xc7   :  { %1569 = vmatprep.subr.bf16.mxu0 %v4650_v9  ;;  %1741 = vmatprep.subr.bf16.mxu1 %v4653_v10  ;;  %v4737_v9 = vld [vmem:[#allocation6 + $0x5ac] ss:$16 sps:$4 sm:$0xff]   ;;  %v4732_v10 = vld [vmem:[#allocation6 + $0x5a0] ss:$16 sps:$4 sm:$0xff]  }
  0xca   :  { %1570 = vmatpush1.bf16.msra.mxu0 %v4648_v11  ;;  %1742 = vmatpush1.bf16.msra.mxu1 %v4651_v12  ;;  %v4735_v11 = vld [vmem:[#allocation6 + $0x5a8] ss:$16 sps:$4 sm:$0xff]   ;;  %v4740_v12 = vld [vmem:[#allocation6 + $0x5c4] ss:$16 sps:$4 sm:$0xff]  }
  0xcb   :  { %1582 = vmatprep.subr.bf16.mxu0 %v4656_v13  ;;  %1754 = vmatprep.subr.bf16.mxu1 %v4659_v14  ;;  %v4743_v13 = vld [vmem:[#allocation6 + $0x5cc] ss:$16 sps:$4 sm:$0xff]   ;;  %v4738_v14 = vld [vmem:[#allocation6 + $0x5c0] ss:$16 sps:$4 sm:$0xff]  }
  0xcd   :  { %1572 = vmatmul.mubr.bf16.vlgmr.msra.gmra.mrb[0].mxu0 %v3874_v17  ;;  %1744 = vmatmul.mubr.bf16.vlgmr.msra.gmra.mrb[0].mxu1 %v3874_v17  ;;  %v4749_v17 = vld [vmem:[#allocation6 + $0x5ec] ss:$16 sps:$4 sm:$0xff]  }
  0xce   :  { %1583 = vmatpush1.bf16.msra.mxu0 %v4654_v15  ;;  %1755 = vmatpush1.bf16.msra.mxu1 %v4657_v16  ;;  %v4741_v15 = vld [vmem:[#allocation6 + $0x5c8] ss:$16 sps:$4 sm:$0xff]   ;;  %v4746_v16 = vld [vmem:[#allocation6 + $0x5e4] ss:$16 sps:$4 sm:$0xff]  }
  0xcf   :  { %1584 = vmatprep.subr.bf16.mxu0 %v4662_v18  ;;  %1756 = vmatprep.subr.bf16.mxu1 %v4665_v19  ;;  %v4744_v18 = vld [vmem:[#allocation6 + $0x5e0] ss:$16 sps:$4 sm:$0xff]   ;;  %v4747_v19 = vld [vmem:[#allocation6 + $0x5e8] ss:$16 sps:$4 sm:$0xff]  }
  0xd0   :  { %1614 = vmatprep.mubr.bf16.mxu0 %v3877_v26  ;;  %1786 = vmatprep.mubr.bf16.mxu1 %v3877_v26  ;;  %v3876_v26 = vcombine.low %v5364_v22, %v5367_v23  ;;  %v4770_v22 = vld [vmem:[#allocation6 + $0x664] ss:$16 sps:$4 sm:$0xff]   ;;  %v4773_v23 = vld [vmem:[#allocation6 + $0x66c] ss:$16 sps:$4 sm:$0xff]  }
  0xd2   :  { %1585 = vmatpush1.bf16.msra.mxu0 %v4660_v24  ;;  %1757 = vmatpush1.bf16.msra.mxu1 %v4663_v25  ;;  %v4750_v24 = vld [vmem:[#allocation6 + $0x600] ss:$16 sps:$4 sm:$0xff]   ;;  %v4753_v25 = vld [vmem:[#allocation6 + $0x608] ss:$16 sps:$4 sm:$0xff]  }
  0xd3   :  { %1586 = vmatprep.subr.bf16.mxu0 %v4668_v27  ;;  %1758 = vmatprep.subr.bf16.mxu1 %v4671_v28  ;;  %v4758_v27 = vld [vmem:[#allocation6 + $0x624] ss:$16 sps:$4 sm:$0xff]   ;;  %v4761_v28 = vld [vmem:[#allocation6 + $0x62c] ss:$16 sps:$4 sm:$0xff]  }
  0xd6   :  { %1587 = vmatpush1.bf16.msra.mxu0 %v4666_v29  ;;  %1759 = vmatpush1.bf16.msra.mxu1 %v4669_v30  ;;  %v4756_v29 = vld [vmem:[#allocation6 + $0x620] ss:$16 sps:$4 sm:$0xff]   ;;  %v4759_v30 = vld [vmem:[#allocation6 + $0x628] ss:$16 sps:$4 sm:$0xff]  }
  0xd7   :  { %1588 = vmatprep.subr.bf16.mxu0 %v4674_v31  ;;  %1760 = vmatprep.subr.bf16.mxu1 %v4677_v32  ;;  %v4764_v31 = vld [vmem:[#allocation6 + $0x644] ss:$16 sps:$4 sm:$0xff]   ;;  %v4767_v32 = vld [vmem:[#allocation6 + $0x64c] ss:$16 sps:$4 sm:$0xff]  }
  0xda   :  { %1589 = vmatpush1.bf16.msra.mxu0 %v4672_v33  ;;  %1761 = vmatpush1.bf16.msra.mxu1 %v4675_v34  ;;  %v4762_v33 = vld [vmem:[#allocation6 + $0x640] ss:$16 sps:$4 sm:$0xff]   ;;  %v4765_v34 = vld [vmem:[#allocation6 + $0x648] ss:$16 sps:$4 sm:$0xff]  }
  0xdb   :  { %1590 = vmatprep.subr.bf16.mxu0 %v4680_v35  ;;  %1762 = vmatprep.subr.bf16.mxu1 %v4683_v36  ;;  %v4768_v35 = vld [vmem:[#allocation6 + $0x660] ss:$16 sps:$4 sm:$0xff]   ;;  %v4771_v36 = vld [vmem:[#allocation6 + $0x668] ss:$16 sps:$4 sm:$0xff]  }
  0xde   :  { %1591 = vmatpush1.bf16.msra.mxu0 %v4678_v37  ;;  %1763 = vmatpush1.bf16.msra.mxu1 %v4681_v38  ;;  %v4776_v37 = vld [vmem:[#allocation6 + $0x684] ss:$16 sps:$4 sm:$0xff]   ;;  %v4779_v38 = vld [vmem:[#allocation6 + $0x68c] ss:$16 sps:$4 sm:$0xff]  }
  0xdf   :  { %1592 = vmatprep.subr.bf16.mxu0 %v4686_v39  ;;  %1764 = vmatprep.subr.bf16.mxu1 %v4689_v40  ;;  %v4774_v39 = vld [vmem:[#allocation6 + $0x680] ss:$16 sps:$4 sm:$0xff]   ;;  %v4777_v40 = vld [vmem:[#allocation6 + $0x688] ss:$16 sps:$4 sm:$0xff]  }
  0xe2   :  { %1593 = vmatpush1.bf16.msra.mxu0 %v4684_v41  ;;  %1765 = vmatpush1.bf16.msra.mxu1 %v4687_v42  ;;  %v4782_v41 = vld [vmem:[#allocation6 + $0x6a4] ss:$16 sps:$4 sm:$0xff]   ;;  %v4785_v42 = vld [vmem:[#allocation6 + $0x6ac] ss:$16 sps:$4 sm:$0xff]  }
  0xe3   :  { %1594 = vmatprep.subr.bf16.mxu0 %v4692_v43  ;;  %1766 = vmatprep.subr.bf16.mxu1 %v4695_v44  ;;  %v4780_v43 = vld [vmem:[#allocation6 + $0x6a0] ss:$16 sps:$4 sm:$0xff]   ;;  %v4783_v44 = vld [vmem:[#allocation6 + $0x6a8] ss:$16 sps:$4 sm:$0xff]  }
  0xe6   :  { %1595 = vmatpush1.bf16.msra.mxu0 %v4690_v45  ;;  %1767 = vmatpush1.bf16.msra.mxu1 %v4693_v46  ;;  %v4788_v45 = vld [vmem:[#allocation6 + $0x6c4] ss:$16 sps:$4 sm:$0xff]   ;;  %v4791_v46 = vld [vmem:[#allocation6 + $0x6cc] ss:$16 sps:$4 sm:$0xff]  }
  0xe7   :  { %1596 = vmatprep.subr.bf16.mxu0 %v4698_v47  ;;  %1768 = vmatprep.subr.bf16.mxu1 %v4701_v49  ;;  %v4786_v47 = vld [vmem:[#allocation6 + $0x6c0] ss:$16 sps:$4 sm:$0xff]   ;;  %v4789_v49 = vld [vmem:[#allocation6 + $0x6c8] ss:$16 sps:$4 sm:$0xff]  }
  0xea   :  { %1597 = vmatpush1.bf16.msra.mxu0 %v4696_v50  ;;  %1769 = vmatpush1.bf16.msra.mxu1 %v4699_v51  ;;  %v95_v50 = vld [vmem:[#allocation3 + $0x18] sm:$0xf]  ;;  %v99_v51 = vld [vmem:[#allocation3 + $0x34] sm:$0xf] }
  0xeb   :  { %1598 = vmatprep.subr.bf16.mxu0 %v4704_v52  ;;  %1770 = vmatprep.subr.bf16.mxu1 %v4707_v53  ;;  %v4794_v52 = vld [vmem:[#allocation6 + $0x6e4] ss:$16 sps:$4 sm:$0xff]   ;;  %v4797_v53 = vld [vmem:[#allocation6 + $0x6ec] ss:$16 sps:$4 sm:$0xff]  }
  0xee   :  { %1599 = vmatpush1.bf16.msra.mxu0 %v4702_v54  ;;  %1771 = vmatpush1.bf16.msra.mxu1 %v4705_v55  ;;  %v4792_v54 = vld [vmem:[#allocation6 + $0x6e0] ss:$16 sps:$4 sm:$0xff]   ;;  %v4795_v55 = vld [vmem:[#allocation6 + $0x6e8] ss:$16 sps:$4 sm:$0xff]  }
  0xef   :  { %1600 = vmatprep.subr.bf16.mxu0 %v4710_v56  ;;  %1772 = vmatprep.subr.bf16.mxu1 %v4713_v57  ;;  %v103_v56 = vmax.bf16 %v5264_v48, %v95_v50  ;;  %v107_v57 = vmax.bf16 %v5264_v48, %v99_v51  ;;  %v4879_v50 = vld [vmem:[#allocation8 + $0x278] ss:$24 sps:$4 sm:$0xff]   ;;  %v1869_v51 = vlaneseq }
  0xf2   :  { %1601 = vmatpush1.bf16.msra.mxu0 %v4708_v58  ;;  %1773 = vmatpush1.bf16.msra.mxu1 %v4711_v59  ;;  %v4800_v58 = vld [vmem:[#allocation8 + $0x4] ss:$24 sps:$4 sm:$0xff]  }
  0xf3   :  { %1602 = vmatprep.subr.bf16.mxu0 %v4716_v60  ;;  %1774 = vmatprep.subr.bf16.mxu1 %v4719_v61  ;;  %v4803_v59 = vld [vmem:[#allocation8 + $0xc] ss:$24 sps:$4 sm:$0xff]   ;;  %v4798_v60 = vld [vmem:[#allocation8] ss:$24 sps:$4 sm:$0xff]  }
  0xf4   :  { %v4801_v61 = vld [vmem:[#allocation8 + $0x8] ss:$24 sps:$4 sm:$0xff]  }
  0xf6   :  { %1603 = vmatpush1.bf16.msra.mxu0 %v4714_v62  ;;  %1775 = vmatpush1.bf16.msra.mxu1 %v4717_v63  ;;  %v3878_v62 = vcombine.low %v103_v56, %v107_v57  ;;  %v4806_v63 = vld [vmem:[#allocation8 + $0x34] ss:$24 sps:$4 sm:$0xff]   ;;  %v4884_v56 = vld [vmem:[#allocation8 + $0x2a4] ss:$24 sps:$4 sm:$0xff]  }
  0xf7   :  { %1604 = vmatprep.subr.bf16.mxu0 %v4722_v0  ;;  %1776 = vmatprep.subr.bf16.mxu1 %v4725_v1  ;;  %v4809_v0 = vld [vmem:[#allocation8 + $0x3c] ss:$24 sps:$4 sm:$0xff]   ;;  %v4804_v1 = vld [vmem:[#allocation8 + $0x30] ss:$24 sps:$4 sm:$0xff]   ;;  %v4887_v57 = vld [vmem:[#allocation8 + $0x2ac] ss:$24 sps:$4 sm:$0xff]  }
  0xfa   :  { %1605 = vmatpush1.bf16.msra.mxu0 %v4720_v2  ;;  %1777 = vmatpush1.bf16.msra.mxu1 %v4723_v3  ;;  %v4807_v2 = vld [vmem:[#allocation8 + $0x38] ss:$24 sps:$4 sm:$0xff]   ;;  %v4815_v3 = vld [vmem:[#allocation8 + $0x6c] ss:$24 sps:$4 sm:$0xff]  }
  0xfb   :  { %1606 = vmatprep.subr.bf16.mxu0 %v4728_v4  ;;  %1778 = vmatprep.subr.bf16.mxu1 %v4731_v5  ;;  %v4810_v4 = vld [vmem:[#allocation8 + $0x60] ss:$24 sps:$4 sm:$0xff]  }
  0xfc   :  { %v4813_v5 = vld [vmem:[#allocation8 + $0x68] ss:$24 sps:$4 sm:$0xff]  }
  0xfe   :  { %1607 = vmatpush1.bf16.msra.mxu0 %v4726_v6  ;;  %1779 = vmatpush1.bf16.msra.mxu1 %v4729_v7  ;;  %v4818_v6 = vld [vmem:[#allocation8 + $0x94] ss:$24 sps:$4 sm:$0xff]  }
  0xff   :  { %1608 = vmatprep.subr.bf16.mxu0 %v4734_v8  ;;  %1780 = vmatprep.subr.bf16.mxu1 %v4737_v9  ;;  %v4821_v7 = vld [vmem:[#allocation8 + $0x9c] ss:$24 sps:$4 sm:$0xff]   ;;  %v4816_v8 = vld [vmem:[#allocation8 + $0x90] ss:$24 sps:$4 sm:$0xff]  }
 0x100   :  { %v4819_v9 = vld [vmem:[#allocation8 + $0x98] ss:$24 sps:$4 sm:$0xff]  }
 0x102   :  { %1609 = vmatpush1.bf16.msra.mxu0 %v4732_v10  ;;  %1781 = vmatpush1.bf16.msra.mxu1 %v4735_v11  ;;  %v4824_v10 = vld [vmem:[#allocation8 + $0xc4] ss:$24 sps:$4 sm:$0xff]  }
 0x103   :  { %1610 = vmatprep.subr.bf16.mxu0 %v4740_v12  ;;  %1782 = vmatprep.subr.bf16.mxu1 %v4743_v13  ;;  %v4827_v11 = vld [vmem:[#allocation8 + $0xcc] ss:$24 sps:$4 sm:$0xff]   ;;  %v4822_v12 = vld [vmem:[#allocation8 + $0xc0] ss:$24 sps:$4 sm:$0xff]  }
 0x104   :  { %v4825_v13 = vld [vmem:[#allocation8 + $0xc8] ss:$24 sps:$4 sm:$0xff]  }
 0x106   :  { %1611 = vmatpush1.bf16.msra.mxu0 %v4738_v14  ;;  %1783 = vmatpush1.bf16.msra.mxu1 %v4741_v15  ;;  %v4830_v14 = vld [vmem:[#allocation8 + $0xf4] ss:$24 sps:$4 sm:$0xff]  }
 0x107   :  { %1612 = vmatprep.subr.bf16.mxu0 %v4746_v16  ;;  %1784 = vmatprep.subr.bf16.mxu1 %v4749_v17  ;;  %v4833_v15 = vld [vmem:[#allocation8 + $0xfc] ss:$24 sps:$4 sm:$0xff]   ;;  %v4828_v16 = vld [vmem:[#allocation8 + $0xf0] ss:$24 sps:$4 sm:$0xff]  }
 0x108   :  { %v4831_v17 = vld [vmem:[#allocation8 + $0xf8] ss:$24 sps:$4 sm:$0xff]  }
 0x10a   :  { %1613 = vmatpush1.bf16.msra.mxu0 %v4744_v18  ;;  %1785 = vmatpush1.bf16.msra.mxu1 %v4747_v19  ;;  %v4836_v18 = vld [vmem:[#allocation8 + $0x124] ss:$24 sps:$4 sm:$0xff]  }
 0x10b   :  { %1625 = vmatprep.subr.bf16.mxu0 %v4752_v20  ;;  %1797 = vmatprep.subr.bf16.mxu1 %v4755_v21  ;;  %v4839_v19 = vld [vmem:[#allocation8 + $0x12c] ss:$24 sps:$4 sm:$0xff]   ;;  %v4834_v20 = vld [vmem:[#allocation8 + $0x120] ss:$24 sps:$4 sm:$0xff]  }
 0x10c   :  { %v4837_v21 = vld [vmem:[#allocation8 + $0x128] ss:$24 sps:$4 sm:$0xff]  }
 0x10d   :  { %1615 = vmatmul.mubr.bf16.vlgmr.msra.gmra.mrb[0].mxu0 %v3876_v26  ;;  %1787 = vmatmul.mubr.bf16.vlgmr.msra.gmra.mrb[0].mxu1 %v3876_v26  ;;  %v4840_v26 = vld [vmem:[#allocation8 + $0x150] ss:$24 sps:$4 sm:$0xff]  }
 0x10e   :  { %1626 = vmatpush1.bf16.msra.mxu0 %v4750_v24  ;;  %1798 = vmatpush1.bf16.msra.mxu1 %v4753_v25  ;;  %v4842_v24 = vld [vmem:[#allocation8 + $0x154] ss:$24 sps:$4 sm:$0xff]  }
 0x10f   :  { %1627 = vmatprep.subr.bf16.mxu0 %v4758_v27  ;;  %1799 = vmatprep.subr.bf16.mxu1 %v4761_v28  ;;  %v4845_v25 = vld [vmem:[#allocation8 + $0x15c] ss:$24 sps:$4 sm:$0xff]   ;;  %v4843_v27 = vld [vmem:[#allocation8 + $0x158] ss:$24 sps:$4 sm:$0xff]  }
 0x110   :  { %1657 = vmatprep.mubr.bf16.mxu0 %v5264_v48  ;;  %1829 = vmatprep.mubr.bf16.mxu1 %v5264_v48  ;;  %v4812_v48 = vld [vmem:[#allocation8 + $0x64] ss:$24 sps:$4 sm:$0xff]  }
 0x111   :  { %v4848_v28 = vld [vmem:[#allocation8 + $0x184] ss:$24 sps:$4 sm:$0xff]  }
 0x112   :  { %1628 = vmatpush1.bf16.msra.mxu0 %v4756_v29  ;;  %1800 = vmatpush1.bf16.msra.mxu1 %v4759_v30  ;;  %v4851_v29 = vld [vmem:[#allocation8 + $0x18c] ss:$24 sps:$4 sm:$0xff]   ;;  %v4846_v30 = vld [vmem:[#allocation8 + $0x180] ss:$24 sps:$4 sm:$0xff]  }
 0x113   :  { %1629 = vmatprep.subr.bf16.mxu0 %v4764_v31  ;;  %1801 = vmatprep.subr.bf16.mxu1 %v4767_v32  ;;  %v4849_v31 = vld [vmem:[#allocation8 + $0x188] ss:$24 sps:$4 sm:$0xff]   ;;  %v4854_v32 = vld [vmem:[#allocation8 + $0x1b4] ss:$24 sps:$4 sm:$0xff]  }
 0x116   :  { %1630 = vmatpush1.bf16.msra.mxu0 %v4762_v33  ;;  %1802 = vmatpush1.bf16.msra.mxu1 %v4765_v34  ;;  %v4857_v33 = vld [vmem:[#allocation8 + $0x1bc] ss:$24 sps:$4 sm:$0xff]   ;;  %v4852_v34 = vld [vmem:[#allocation8 + $0x1b0] ss:$24 sps:$4 sm:$0xff]  }
 0x117   :  { %1631 = vmatprep.subr.bf16.mxu0 %v4770_v22  ;;  %1803 = vmatprep.subr.bf16.mxu1 %v4773_v23  ;;  %v4855_v22 = vld [vmem:[#allocation8 + $0x1b8] ss:$24 sps:$4 sm:$0xff]   ;;  %v4860_v23 = vld [vmem:[#allocation8 + $0x1e4] ss:$24 sps:$4 sm:$0xff]  }
 0x11a   :  { %1632 = vmatpush1.bf16.msra.mxu0 %v4768_v35  ;;  %1804 = vmatpush1.bf16.msra.mxu1 %v4771_v36  ;;  %v4863_v35 = vld [vmem:[#allocation8 + $0x1ec] ss:$24 sps:$4 sm:$0xff]   ;;  %v4858_v36 = vld [vmem:[#allocation8 + $0x1e0] ss:$24 sps:$4 sm:$0xff]  }
 0x11b   :  { %1633 = vmatprep.subr.bf16.mxu0 %v4776_v37  ;;  %1805 = vmatprep.subr.bf16.mxu1 %v4779_v38  ;;  %v4861_v37 = vld [vmem:[#allocation8 + $0x1e8] ss:$24 sps:$4 sm:$0xff]   ;;  %v4866_v38 = vld [vmem:[#allocation8 + $0x214] ss:$24 sps:$4 sm:$0xff]  }
 0x11e   :  { %1634 = vmatpush1.bf16.msra.mxu0 %v4774_v39  ;;  %1806 = vmatpush1.bf16.msra.mxu1 %v4777_v40  ;;  %v4869_v39 = vld [vmem:[#allocation8 + $0x21c] ss:$24 sps:$4 sm:$0xff]   ;;  %v4864_v40 = vld [vmem:[#allocation8 + $0x210] ss:$24 sps:$4 sm:$0xff]  }
 0x11f   :  { %1635 = vmatprep.subr.bf16.mxu0 %v4782_v41  ;;  %1807 = vmatprep.subr.bf16.mxu1 %v4785_v42  ;;  %v4867_v41 = vld [vmem:[#allocation8 + $0x218] ss:$24 sps:$4 sm:$0xff]   ;;  %v4872_v42 = vld [vmem:[#allocation8 + $0x244] ss:$24 sps:$4 sm:$0xff]  }
 0x122   :  { %1636 = vmatpush1.bf16.msra.mxu0 %v4780_v43  ;;  %1808 = vmatpush1.bf16.msra.mxu1 %v4783_v44  ;;  %v4875_v43 = vld [vmem:[#allocation8 + $0x24c] ss:$24 sps:$4 sm:$0xff]   ;;  %v4870_v44 = vld [vmem:[#allocation8 + $0x240] ss:$24 sps:$4 sm:$0xff]  }
 0x123   :  { %1637 = vmatprep.subr.bf16.mxu0 %v4788_v45  ;;  %1809 = vmatprep.subr.bf16.mxu1 %v4791_v46  ;;  %v4873_v45 = vld [vmem:[#allocation8 + $0x248] ss:$24 sps:$4 sm:$0xff]   ;;  %v4878_v46 = vld [vmem:[#allocation8 + $0x274] ss:$24 sps:$4 sm:$0xff]  }
 0x126   :  { %1638 = vmatpush1.bf16.msra.mxu0 %v4786_v47  ;;  %1810 = vmatpush1.bf16.msra.mxu1 %v4789_v49  ;;  %v4881_v47 = vld [vmem:[#allocation8 + $0x27c] ss:$24 sps:$4 sm:$0xff]   ;;  %v4876_v49 = vld [vmem:[#allocation8 + $0x270] ss:$24 sps:$4 sm:$0xff]  }
 0x127   :  { %1639 = vmatprep.subr.bf16.mxu0 %v4794_v52  ;;  %1811 = vmatprep.subr.bf16.mxu1 %v4797_v53  ;;  %v1870_v52 = vshrl.u32 %v1869_v51, 7  ;;  %v4923_v51 = vld [vmem:[#allocation8 + $0x3cc] ss:$24 sps:$4 sm:$0xff]  }
 0x129   :  { %v1879_v53 = vsub.s32 2, %v1870_v52 }
 0x12a   :  { %1640 = vmatpush1.bf16.msra.mxu0 %v4792_v54  ;;  %1812 = vmatpush1.bf16.msra.mxu1 %v4795_v55  ;;  %v1867_v54 = vld [vmem:[%s5417_s2] sm:$0xf] }
 0x12b   :  { %3061 = vmatprep.subr.bf16.mxu0 %v4800_v58  ;;  %3147 = vmatprep.subr.bf16.mxu1 %v4803_v59  ;;  %v1880_v55 = vrot.slane %v1867_v54, %v1879_v53  ;;  %v4882_v58 = vld [vmem:[#allocation8 + $0x2a0] ss:$24 sps:$4 sm:$0xff]  }
 0x12c   :  { %v4885_v59 = vld [vmem:[#allocation8 + $0x2a8] ss:$24 sps:$4 sm:$0xff]  }
 0x12d   :  { %1658 = vmatmul.mubr.bf16.vlgmr.msra.gmra.mrb[0].mxu0 %v3878_v62  ;;  %1830 = vmatmul.mubr.bf16.vlgmr.msra.gmra.mrb[0].mxu1 %v3878_v62  ;;  %v4888_v62 = vld [vmem:[#allocation8 + $0x2d0] ss:$24 sps:$4 sm:$0xff]  }
 0x12e   :  { %3062 = vmatpush1.bf16.msra.mxu0 %v4798_v60  ;;  %3148 = vmatpush1.bf16.msra.mxu1 %v4801_v61  ;;  %v4890_v60 = vld [vmem:[#allocation8 + $0x2d4] ss:$24 sps:$4 sm:$0xff]   ;;  %v4921_v53 = vld [vmem:[#allocation8 + $0x3c8] ss:$24 sps:$4 sm:$0xff]  }
 0x12f   :  { %3063 = vmatprep.subr.bf16.mxu0 %v4806_v63  ;;  %3149 = vmatprep.subr.bf16.mxu1 %v4809_v0  ;;  %v4893_v61 = vld [vmem:[#allocation8 + $0x2dc] ss:$24 sps:$4 sm:$0xff]   ;;  %v4891_v63 = vld [vmem:[#allocation8 + $0x2d8] ss:$24 sps:$4 sm:$0xff]  }
 0x130   :  { %v4896_v0 = vld [vmem:[#allocation8 + $0x304] ss:$24 sps:$4 sm:$0xff]  }
 0x132   :  { %3064 = vmatpush1.bf16.msra.mxu0 %v4804_v1  ;;  %3150 = vmatpush1.bf16.msra.mxu1 %v4807_v2  ;;  %v4899_v1 = vld [vmem:[#allocation8 + $0x30c] ss:$24 sps:$4 sm:$0xff]   ;;  %v1871_v2 = vsub.s32 0, %v1870_v52 }
 0x133   :  { %3065 = vmatprep.subr.bf16.mxu0 %v4812_v48  ;;  %3151 = vmatprep.subr.bf16.mxu1 %v4815_v3  ;;  %v1875_v48 = vsub.s32 1, %v1870_v52  ;;  %v1883_v3 = vsub.s32 3, %v1870_v52  ;;  %v4918_v52 = vld [vmem:[#allocation8 + $0x3c0] ss:$24 sps:$4 sm:$0xff]  }
 0x136   :  { %3066 = vmatpush1.bf16.msra.mxu0 %v4810_v4  ;;  %3152 = vmatpush1.bf16.msra.mxu1 %v4813_v5  ;;  %v1872_v4 = vrot.slane %v1867_v54, %v1871_v2  ;;  %v1876_v5 = vrot.slane %v1867_v54, %v1875_v48  ;;  %v4944_v2 = vld [vmem:[#allocation8 + $0x484] ss:$24 sps:$4 sm:$0xff]  }
 0x137   :  { %3067 = vmatprep.subr.bf16.mxu0 %v4818_v6  ;;  %3153 = vmatprep.subr.bf16.mxu1 %v4821_v7  ;;  %v1884_v6 = vrot.slane %v1867_v54, %v1883_v3  ;;  %v4926_v54 = vld [vmem:[#allocation8 + $0x3f4] ss:$24 sps:$4 sm:$0xff]   ;;  %v4942_v3 = vld [vmem:[#allocation8 + $0x480] ss:$24 sps:$4 sm:$0xff]  }
 0x138   :  { %v4947_v48 = vld [vmem:[#allocation8 + $0x48c] ss:$24 sps:$4 sm:$0xff]  }
 0x13a   :  { %3068 = vmatpush1.bf16.msra.mxu0 %v4816_v8  ;;  %3154 = vmatpush1.bf16.msra.mxu1 %v4819_v9 }
 0x13b   :  { %3069 = vmatprep.subr.bf16.mxu0 %v4824_v10  ;;  %3155 = vmatprep.subr.bf16.mxu1 %v4827_v11 }
 0x13e   :  { %3070 = vmatpush1.bf16.msra.mxu0 %v4822_v12  ;;  %3156 = vmatpush1.bf16.msra.mxu1 %v4825_v13 }
 0x13f   :  { %3071 = vmatprep.subr.bf16.mxu0 %v4830_v14  ;;  %3157 = vmatprep.subr.bf16.mxu1 %v4833_v15 }
 0x142   :  { %3072 = vmatpush1.bf16.msra.mxu0 %v4828_v16  ;;  %3158 = vmatpush1.bf16.msra.mxu1 %v4831_v17 }
 0x143   :  { %3073 = vmatprep.subr.bf16.mxu0 %v4836_v18  ;;  %3159 = vmatprep.subr.bf16.mxu1 %v4839_v19 }
 0x146   :  { %3074 = vmatpush1.bf16.msra.mxu0 %v4834_v20  ;;  %3160 = vmatpush1.bf16.msra.mxu1 %v4837_v21 }
 0x147   :  { %3075 = vmatprep.subr.bf16.mxu0 %v4842_v24  ;;  %3161 = vmatprep.subr.bf16.mxu1 %v4845_v25 }
 0x14a   :  { %3076 = vmatpush1.bf16.msra.mxu0 %v4840_v26  ;;  %3162 = vmatpush1.bf16.msra.mxu1 %v4843_v27 }
 0x14b   :  { %3077 = vmatprep.subr.bf16.mxu0 %v4848_v28  ;;  %3163 = vmatprep.subr.bf16.mxu1 %v4851_v29 }
 0x14e   :  { %3078 = vmatpush1.bf16.msra.mxu0 %v4846_v30  ;;  %3164 = vmatpush1.bf16.msra.mxu1 %v4849_v31 }
 0x14f   :  { %3079 = vmatprep.subr.bf16.mxu0 %v4854_v32  ;;  %3165 = vmatprep.subr.bf16.mxu1 %v4857_v33 }
 0x152   :  { %3080 = vmatpush1.bf16.msra.mxu0 %v4852_v34  ;;  %3166 = vmatpush1.bf16.msra.mxu1 %v4855_v22 }
 0x153   :  { %3081 = vmatprep.subr.bf16.mxu0 %v4860_v23  ;;  %3167 = vmatprep.subr.bf16.mxu1 %v4863_v35  ;;  %v4894_v35 = vld [vmem:[#allocation8 + $0x300] ss:$24 sps:$4 sm:$0xff]  }
 0x156   :  { %3082 = vmatpush1.bf16.msra.mxu0 %v4858_v36  ;;  %3168 = vmatpush1.bf16.msra.mxu1 %v4861_v37  ;;  %v4897_v36 = vld [vmem:[#allocation8 + $0x308] ss:$24 sps:$4 sm:$0xff]   ;;  %v4902_v37 = vld [vmem:[#allocation8 + $0x334] ss:$24 sps:$4 sm:$0xff]  }
 0x157   :  { %3083 = vmatprep.subr.bf16.mxu0 %v4866_v38  ;;  %3169 = vmatprep.subr.bf16.mxu1 %v4869_v39  ;;  %v4905_v38 = vld [vmem:[#allocation8 + $0x33c] ss:$24 sps:$4 sm:$0xff]   ;;  %v4900_v39 = vld [vmem:[#allocation8 + $0x330] ss:$24 sps:$4 sm:$0xff]  }
 0x15a   :  { %3084 = vmatpush1.bf16.msra.mxu0 %v4864_v40  ;;  %3170 = vmatpush1.bf16.msra.mxu1 %v4867_v41  ;;  %v4903_v40 = vld [vmem:[#allocation8 + $0x338] ss:$24 sps:$4 sm:$0xff]   ;;  %v4908_v41 = vld [vmem:[#allocation8 + $0x364] ss:$24 sps:$4 sm:$0xff]  }
 0x15b   :  { %3085 = vmatprep.subr.bf16.mxu0 %v4872_v42  ;;  %3171 = vmatprep.subr.bf16.mxu1 %v4875_v43  ;;  %v4911_v42 = vld [vmem:[#allocation8 + $0x36c] ss:$24 sps:$4 sm:$0xff]   ;;  %v4906_v43 = vld [vmem:[#allocation8 + $0x360] ss:$24 sps:$4 sm:$0xff]  }
 0x15e   :  { %3086 = vmatpush1.bf16.msra.mxu0 %v4870_v44  ;;  %3172 = vmatpush1.bf16.msra.mxu1 %v4873_v45  ;;  %v4909_v44 = vld [vmem:[#allocation8 + $0x368] ss:$24 sps:$4 sm:$0xff]   ;;  %v4914_v45 = vld [vmem:[#allocation8 + $0x394] ss:$24 sps:$4 sm:$0xff]  }
 0x15f   :  { %3087 = vmatprep.subr.bf16.mxu0 %v4878_v46  ;;  %3173 = vmatprep.subr.bf16.mxu1 %v4881_v47  ;;  %v4917_v46 = vld [vmem:[#allocation8 + $0x39c] ss:$24 sps:$4 sm:$0xff]   ;;  %v4912_v47 = vld [vmem:[#allocation8 + $0x390] ss:$24 sps:$4 sm:$0xff]  }
 0x162   :  { %3088 = vmatpush1.bf16.msra.mxu0 %v4876_v49  ;;  %3174 = vmatpush1.bf16.msra.mxu1 %v4879_v50  ;;  %v4915_v49 = vld [vmem:[#allocation8 + $0x398] ss:$24 sps:$4 sm:$0xff]   ;;  %v4920_v50 = vld [vmem:[#allocation8 + $0x3c4] ss:$24 sps:$4 sm:$0xff]  }
 0x163   :  { %3089 = vmatprep.subr.bf16.mxu0 %v4884_v56  ;;  %3175 = vmatprep.subr.bf16.mxu1 %v4887_v57  ;;  %v4924_v56 = vld [vmem:[#allocation8 + $0x3f0] ss:$24 sps:$4 sm:$0xff]  }
 0x164   :  { %v4927_v57 = vld [vmem:[#allocation8 + $0x3f8] ss:$24 sps:$4 sm:$0xff]  }
 0x166   :  { %3090 = vmatpush1.bf16.msra.mxu0 %v4882_v58  ;;  %3176 = vmatpush1.bf16.msra.mxu1 %v4885_v59  ;;  %v4932_v58 = vld [vmem:[#allocation8 + $0x424] ss:$24 sps:$4 sm:$0xff]  }
 0x167   :  { %3091 = vmatprep.subr.bf16.mxu0 %v4890_v60  ;;  %3177 = vmatprep.subr.bf16.mxu1 %v4893_v61  ;;  %v4935_v59 = vld [vmem:[#allocation8 + $0x42c] ss:$24 sps:$4 sm:$0xff]   ;;  %v4930_v60 = vld [vmem:[#allocation8 + $0x420] ss:$24 sps:$4 sm:$0xff]  }
 0x168   :  { %v4933_v61 = vld [vmem:[#allocation8 + $0x428] ss:$24 sps:$4 sm:$0xff]  }
 0x16a   :  { %3092 = vmatpush1.bf16.msra.mxu0 %v4888_v62  ;;  %3178 = vmatpush1.bf16.msra.mxu1 %v4891_v63  ;;  %v4938_v62 = vld [vmem:[#allocation8 + $0x454] ss:$24 sps:$4 sm:$0xff]  }
 0x16b   :  { %3104 = vmatprep.subr.bf16.mxu0 %v4896_v0  ;;  %3190 = vmatprep.subr.bf16.mxu1 %v4899_v1  ;;  %v4941_v63 = vld [vmem:[#allocation8 + $0x45c] ss:$24 sps:$4 sm:$0xff]   ;;  %v4936_v0 = vld [vmem:[#allocation8 + $0x450] ss:$24 sps:$4 sm:$0xff]  }
 0x16c   :  { %v4939_v1 = vld [vmem:[#allocation8 + $0x458] ss:$24 sps:$4 sm:$0xff]  }
 0x200   :  { %v1659_v7 = vpop.f32.mrb[0].mxu0  ;;  %v1831_v8 = vpop.f32.mrb[0].mxu1 }
 0x201   :  { %v1889_v9 = vadd.f32 %v1872_v4, %v1659_v7  ;;  %v1891_v10 = vadd.f32 %v1880_v55, %v1831_v8  ;;  %v1661_v11 = vpop.f32.mrb[1].mxu0  ;;  %v1833_v12 = vpop.f32.mrb[1].mxu1  ;;  %v4948_v7 = vld [vmem:[#allocation8 + $0x4b0] ss:$24 sps:$4 sm:$0xff]  }
 0x202   :  { %v1890_v13 = vadd.f32 %v1876_v5, %v1661_v11  ;;  %v1892_v14 = vadd.f32 %v1884_v6, %v1833_v12  ;;  %v1663_v15 = vpop.f32.mrb[2].mxu0  ;;  %v1835_v16 = vpop.f32.mrb[2].mxu1  ;;  %v4951_v8 = vld [vmem:[#allocation8 + $0x4b8] ss:$24 sps:$4 sm:$0xff]   ;;  %v4957_v12 = vld [vmem:[#allocation8 + $0x4e8] ss:$24 sps:$4 sm:$0xff]  }
 0x203   :  { %v1893_v17 = vadd.f32 %v1872_v4, %v1663_v15  ;;  %v1895_v18 = vadd.f32 %v1880_v55, %v1835_v16  ;;  %v1665_v19 = vpop.f32.mrb[3].mxu0  ;;  %v1837_v20 = vpop.f32.mrb[3].mxu1  ;;  %v1897_v25 = vmax.f32 %v1889_v9, 0.0  ;;  %v1899_v26 = vmax.f32 %v1891_v10, 0.0  ;;  %v4929_v55 = vld [vmem:[#allocation8 + $0x3fc] ss:$24 sps:$4 sm:$0xff]  }
 0x204   :  { %v1894_v21 = vadd.f32 %v1876_v5, %v1665_v19  ;;  %v1896_v24 = vadd.f32 %v1884_v6, %v1837_v20  ;;  %v1898_v29 = vmax.f32 %v1890_v13, 0.0  ;;  %v1900_v30 = vmax.f32 %v1892_v14, 0.0  ;;  %v4945_v4 = vld [vmem:[#allocation8 + $0x488] ss:$24 sps:$4 sm:$0xff]   ;;  %v4950_v5 = vld [vmem:[#allocation8 + $0x4b4] ss:$24 sps:$4 sm:$0xff]  }
 0x205   :  { %v1901_v27 = vmax.f32 %v1893_v17, 0.0  ;;  %v1903_v28 = vmax.f32 %v1895_v18, 0.0  ;;  %v4953_v6 = vld [vmem:[#allocation8 + $0x4bc] ss:$24 sps:$4 sm:$0xff]   ;;  %v4959_v10 = vld [vmem:[#allocation8 + $0x4ec] ss:$24 sps:$4 sm:$0xff]  }
 0x206   :  { %v1902_v31 = vmax.f32 %v1894_v21, 0.0  ;;  %v1904_v32 = vmax.f32 %v1896_v24, 0.0  ;;  %v4956_v9 = vld [vmem:[#allocation8 + $0x4e4] ss:$24 sps:$4 sm:$0xff]   ;;  %v4954_v11 = vld [vmem:[#allocation8 + $0x4e0] ss:$24 sps:$4 sm:$0xff]  }
 0x207   :  { %v5380_v33 = vpack.c.bf16 %v1901_v27, %v1897_v25  ;;  %v5382_v34 = vpack.c.bf16 %v1903_v28, %v1899_v26  ;;  %v4962_v13 = vld [vmem:[#allocation8 + $0x514] ss:$24 sps:$4 sm:$0xff]   ;;  %v4960_v15 = vld [vmem:[#allocation8 + $0x510] ss:$24 sps:$4 sm:$0xff]   ;;  %v4968_v17 = vld [vmem:[#allocation8 + $0x544] ss:$24 sps:$4 sm:$0xff]  }
 0x208   :  { %v5384_v22 = vpack.c.bf16 %v1902_v31, %v1898_v29  ;;  %v5386_v23 = vpack.c.bf16 %v1904_v32, %v1900_v30  ;;  %v4965_v14 = vld [vmem:[#allocation8 + $0x51c] ss:$24 sps:$4 sm:$0xff]   ;;  %v4963_v16 = vld [vmem:[#allocation8 + $0x518] ss:$24 sps:$4 sm:$0xff]   ;;  %v4971_v18 = vld [vmem:[#allocation8 + $0x54c] ss:$24 sps:$4 sm:$0xff]  }
 0x209   :  { %v4966_v19 = vld [vmem:[#allocation8 + $0x540] ss:$24 sps:$4 sm:$0xff]   ;;  %v4974_v21 = vld [vmem:[#allocation8 + $0x574] ss:$24 sps:$4 sm:$0xff]   ;;  %v4972_v25 = vld [vmem:[#allocation8 + $0x570] ss:$24 sps:$4 sm:$0xff]  }
 0x20a   :  { %3093 = vmatprep.mubr.bf16.mxu0 %v5384_v22  ;;  %3179 = vmatprep.mubr.bf16.mxu1 %v5384_v22  ;;  %v4969_v20 = vld [vmem:[#allocation8 + $0x548] ss:$24 sps:$4 sm:$0xff]   ;;  %v4977_v24 = vld [vmem:[#allocation8 + $0x57c] ss:$24 sps:$4 sm:$0xff]   ;;  %v4975_v26 = vld [vmem:[#allocation8 + $0x578] ss:$24 sps:$4 sm:$0xff]  }
 0x20b   :  { %3094 = vmatmul.mubr.bf16.vlgmr.msra.gmra.mrb[4].mxu0 %v5380_v33  ;;  %3180 = vmatmul.mubr.bf16.vlgmr.msra.gmra.mrb[4].mxu1 %v5380_v33  ;;  %v4980_v27 = vld [vmem:[#allocation8 + $0x5a4] ss:$24 sps:$4 sm:$0xff]   ;;  %v4978_v29 = vld [vmem:[#allocation8 + $0x5a0] ss:$24 sps:$4 sm:$0xff]   ;;  %v4986_v31 = vld [vmem:[#allocation8 + $0x5d4] ss:$24 sps:$4 sm:$0xff]  }
 0x20c   :  { %3105 = vmatpush1.bf16.msra.mxu0 %v4894_v35  ;;  %3191 = vmatpush1.bf16.msra.mxu1 %v4897_v36  ;;  %v4983_v28 = vld [vmem:[#allocation8 + $0x5ac] ss:$24 sps:$4 sm:$0xff]   ;;  %v4981_v30 = vld [vmem:[#allocation8 + $0x5a8] ss:$24 sps:$4 sm:$0xff]   ;;  %v4989_v32 = vld [vmem:[#allocation8 + $0x5dc] ss:$24 sps:$4 sm:$0xff]  }
 0x20d   :  { %3136 = vmatprep.mubr.bf16.mxu0 %v5386_v23  ;;  %3222 = vmatprep.mubr.bf16.mxu1 %v5386_v23  ;;  %v4984_v35 = vld [vmem:[#allocation8 + $0x5d0] ss:$24 sps:$4 sm:$0xff]  }
 0x20e   :  { %3106 = vmatprep.subr.bf16.mxu0 %v4902_v37  ;;  %3192 = vmatprep.subr.bf16.mxu1 %v4905_v38  ;;  %v4987_v36 = vld [vmem:[#allocation8 + $0x5d8] ss:$24 sps:$4 sm:$0xff]   ;;  %v4992_v37 = vld [vmem:[#allocation8 + $0x14] ss:$24 sps:$4 sm:$0xff]  }
 0x20f   :  { %v4990_v38 = vld [vmem:[#allocation8 + $0x10] ss:$24 sps:$4 sm:$0xff]  }
 0x210   :  { %3107 = vmatpush1.bf16.msra.mxu0 %v4900_v39  ;;  %3193 = vmatpush1.bf16.msra.mxu1 %v4903_v40  ;;  %v4995_v39 = vld [vmem:[#allocation8 + $0x44] ss:$24 sps:$4 sm:$0xff]  }
 0x211   :  { %3108 = vmatprep.subr.bf16.mxu0 %v4908_v41  ;;  %3194 = vmatprep.subr.bf16.mxu1 %v4911_v42  ;;  %v5086_v40 = vld [vmem:[#allocation9 + $0x40] sm:$0xff]   ;;  %v5088_v42 = vld [vmem:[#allocation9 + $0x48] sm:$0xff]  }
 0x212   :  { %v5087_v41 = vld [vmem:[#allocation9] sm:$0xff]  }
 0x214   :  { %3109 = vmatpush1.bf16.msra.mxu0 %v4906_v43  ;;  %3195 = vmatpush1.bf16.msra.mxu1 %v4909_v44  ;;  %v4993_v43 = vld [vmem:[#allocation8 + $0x40] ss:$24 sps:$4 sm:$0xff]   ;;  %v4998_v44 = vld [vmem:[#allocation8 + $0x74] ss:$24 sps:$4 sm:$0xff]  }
 0x215   :  { %3110 = vmatprep.subr.bf16.mxu0 %v4914_v45  ;;  %3196 = vmatprep.subr.bf16.mxu1 %v4917_v46  ;;  %v5089_v45 = vld [vmem:[#allocation9 + $0x8] sm:$0xff]   ;;  %v5090_v46 = vld [vmem:[#allocation9 + $0x50] sm:$0xff]  }
 0x218   :  { %3111 = vmatpush1.bf16.msra.mxu0 %v4912_v47  ;;  %3197 = vmatpush1.bf16.msra.mxu1 %v4915_v49  ;;  %v4996_v47 = vld [vmem:[#allocation8 + $0x70] ss:$24 sps:$4 sm:$0xff]   ;;  %v5001_v49 = vld [vmem:[#allocation8 + $0xa4] ss:$24 sps:$4 sm:$0xff]  }
 0x219   :  { %3112 = vmatprep.subr.bf16.mxu0 %v4920_v50  ;;  %3198 = vmatprep.subr.bf16.mxu1 %v4923_v51  ;;  %v5091_v50 = vld [vmem:[#allocation9 + $0x10] sm:$0xff]   ;;  %v5092_v51 = vld [vmem:[#allocation9 + $0x58] sm:$0xff]  }
 0x21c   :  { %3113 = vmatpush1.bf16.msra.mxu0 %v4918_v52  ;;  %3199 = vmatpush1.bf16.msra.mxu1 %v4921_v53  ;;  %v4999_v52 = vld [vmem:[#allocation8 + $0xa0] ss:$24 sps:$4 sm:$0xff]  }
 0x21d   :  { %3114 = vmatprep.subr.bf16.mxu0 %v4926_v54  ;;  %3200 = vmatprep.subr.bf16.mxu1 %v4929_v55  ;;  %v5093_v53 = vld [vmem:[#allocation9 + $0x18] sm:$0xff]   ;;  %v5094_v54 = vld [vmem:[#allocation9 + $0x60] sm:$0xff]   ;;  %v5002_v55 = vld [vmem:[#allocation8 + $0xd0] ss:$24 sps:$4 sm:$0xff]  }
 0x220   :  { %3115 = vmatpush1.bf16.msra.mxu0 %v4924_v56  ;;  %3201 = vmatpush1.bf16.msra.mxu1 %v4927_v57  ;;  %v5007_v56 = vld [vmem:[#allocation8 + $0x104] ss:$24 sps:$4 sm:$0xff]  }
 0x221   :  { %3116 = vmatprep.subr.bf16.mxu0 %v4932_v58  ;;  %3202 = vmatprep.subr.bf16.mxu1 %v4935_v59  ;;  %v5095_v57 = vld [vmem:[#allocation9 + $0x20] sm:$0xff]   ;;  %v5096_v58 = vld [vmem:[#allocation9 + $0x68] sm:$0xff]  }
 0x222   :  { %v5005_v59 = vld [vmem:[#allocation8 + $0x100] ss:$24 sps:$4 sm:$0xff]  }
 0x224   :  { %3117 = vmatpush1.bf16.msra.mxu0 %v4930_v60  ;;  %3203 = vmatpush1.bf16.msra.mxu1 %v4933_v61  ;;  %v5010_v60 = vld [vmem:[#allocation8 + $0x134] ss:$24 sps:$4 sm:$0xff]  }
 0x225   :  { %3118 = vmatprep.subr.bf16.mxu0 %v4938_v62  ;;  %3204 = vmatprep.subr.bf16.mxu1 %v4941_v63  ;;  %v5097_v61 = vld [vmem:[#allocation9 + $0x28] sm:$0xff]   ;;  %v5013_v63 = vld [vmem:[#allocation8 + $0x164] ss:$24 sps:$4 sm:$0xff]  }
 0x226   :  { %v5008_v62 = vld [vmem:[#allocation8 + $0x130] ss:$24 sps:$4 sm:$0xff]  }
 0x228   :  { %3119 = vmatpush1.bf16.msra.mxu0 %v4936_v0  ;;  %3205 = vmatpush1.bf16.msra.mxu1 %v4939_v1  ;;  %v5011_v0 = vld [vmem:[#allocation8 + $0x160] ss:$24 sps:$4 sm:$0xff]   ;;  %v5016_v1 = vld [vmem:[#allocation8 + $0x194] ss:$24 sps:$4 sm:$0xff]  }
 0x229   :  { %3120 = vmatprep.subr.bf16.mxu0 %v4944_v2  ;;  %3206 = vmatprep.subr.bf16.mxu1 %v4947_v48  ;;  %v5014_v2 = vld [vmem:[#allocation8 + $0x190] ss:$24 sps:$4 sm:$0xff]   ;;  %v5019_v48 = vld [vmem:[#allocation8 + $0x1c4] ss:$24 sps:$4 sm:$0xff]  }
 0x22c   :  { %3121 = vmatpush1.bf16.msra.mxu0 %v4942_v3  ;;  %3207 = vmatpush1.bf16.msra.mxu1 %v4945_v4  ;;  %v5017_v3 = vld [vmem:[#allocation8 + $0x1c0] ss:$24 sps:$4 sm:$0xff]   ;;  %v5022_v4 = vld [vmem:[#allocation8 + $0x1f4] ss:$24 sps:$4 sm:$0xff]  }
 0x22d   :  { %3122 = vmatprep.subr.bf16.mxu0 %v4950_v5  ;;  %3208 = vmatprep.subr.bf16.mxu1 %v4953_v6  ;;  %v5020_v5 = vld [vmem:[#allocation8 + $0x1f0] ss:$24 sps:$4 sm:$0xff]   ;;  %v5025_v6 = vld [vmem:[#allocation8 + $0x224] ss:$24 sps:$4 sm:$0xff]  }
 0x230   :  { %3123 = vmatpush1.bf16.msra.mxu0 %v4948_v7  ;;  %3209 = vmatpush1.bf16.msra.mxu1 %v4951_v8  ;;  %v5023_v7 = vld [vmem:[#allocation8 + $0x220] ss:$24 sps:$4 sm:$0xff]   ;;  %v5028_v8 = vld [vmem:[#allocation8 + $0x254] ss:$24 sps:$4 sm:$0xff]  }
 0x231   :  { %3124 = vmatprep.subr.bf16.mxu0 %v4956_v9  ;;  %3210 = vmatprep.subr.bf16.mxu1 %v4959_v10  ;;  %v5026_v9 = vld [vmem:[#allocation8 + $0x250] ss:$24 sps:$4 sm:$0xff]   ;;  %v5031_v10 = vld [vmem:[#allocation8 + $0x284] ss:$24 sps:$4 sm:$0xff]  }
 0x234   :  { %3125 = vmatpush1.bf16.msra.mxu0 %v4954_v11  ;;  %3211 = vmatpush1.bf16.msra.mxu1 %v4957_v12  ;;  %v5029_v11 = vld [vmem:[#allocation8 + $0x280] ss:$24 sps:$4 sm:$0xff]   ;;  %v5034_v12 = vld [vmem:[#allocation8 + $0x2b4] ss:$24 sps:$4 sm:$0xff]  }
 0x235   :  { %3126 = vmatprep.subr.bf16.mxu0 %v4962_v13  ;;  %3212 = vmatprep.subr.bf16.mxu1 %v4965_v14  ;;  %v5032_v13 = vld [vmem:[#allocation8 + $0x2b0] ss:$24 sps:$4 sm:$0xff]   ;;  %v5037_v14 = vld [vmem:[#allocation8 + $0x2e4] ss:$24 sps:$4 sm:$0xff]  }
 0x238   :  { %3127 = vmatpush1.bf16.msra.mxu0 %v4960_v15  ;;  %3213 = vmatpush1.bf16.msra.mxu1 %v4963_v16  ;;  %v5035_v15 = vld [vmem:[#allocation8 + $0x2e0] ss:$24 sps:$4 sm:$0xff]   ;;  %v5040_v16 = vld [vmem:[#allocation8 + $0x314] ss:$24 sps:$4 sm:$0xff]  }
 0x239   :  { %3128 = vmatprep.subr.bf16.mxu0 %v4968_v17  ;;  %3214 = vmatprep.subr.bf16.mxu1 %v4971_v18  ;;  %v5038_v17 = vld [vmem:[#allocation8 + $0x310] ss:$24 sps:$4 sm:$0xff]   ;;  %v5043_v18 = vld [vmem:[#allocation8 + $0x344] ss:$24 sps:$4 sm:$0xff]  }
 0x23c   :  { %3129 = vmatpush1.bf16.msra.mxu0 %v4966_v19  ;;  %3215 = vmatpush1.bf16.msra.mxu1 %v4969_v20  ;;  %v5041_v19 = vld [vmem:[#allocation8 + $0x340] ss:$24 sps:$4 sm:$0xff]   ;;  %v5046_v20 = vld [vmem:[#allocation8 + $0x374] ss:$24 sps:$4 sm:$0xff]  }
 0x23d   :  { %3130 = vmatprep.subr.bf16.mxu0 %v4974_v21  ;;  %3216 = vmatprep.subr.bf16.mxu1 %v4977_v24  ;;  %v5044_v21 = vld [vmem:[#allocation8 + $0x370] ss:$24 sps:$4 sm:$0xff]   ;;  %v5049_v24 = vld [vmem:[#allocation8 + $0x3a4] ss:$24 sps:$4 sm:$0xff]  }
 0x240   :  { %3131 = vmatpush1.bf16.msra.mxu0 %v4972_v25  ;;  %3217 = vmatpush1.bf16.msra.mxu1 %v4975_v26  ;;  %v5047_v25 = vld [vmem:[#allocation8 + $0x3a0] ss:$24 sps:$4 sm:$0xff]   ;;  %v5052_v26 = vld [vmem:[#allocation8 + $0x3d4] ss:$24 sps:$4 sm:$0xff]  }
 0x241   :  { %3132 = vmatprep.subr.bf16.mxu0 %v4980_v27  ;;  %3218 = vmatprep.subr.bf16.mxu1 %v4983_v28  ;;  %v5050_v27 = vld [vmem:[#allocation8 + $0x3d0] ss:$24 sps:$4 sm:$0xff]   ;;  %v5055_v28 = vld [vmem:[#allocation8 + $0x404] ss:$24 sps:$4 sm:$0xff]  }
 0x244   :  { %3133 = vmatpush1.bf16.msra.mxu0 %v4978_v29  ;;  %3219 = vmatpush1.bf16.msra.mxu1 %v4981_v30  ;;  %v5098_v29 = vld [vmem:[#allocation9 + $0x70] sm:$0xff]  }
 0x245   :  { %3134 = vmatprep.subr.bf16.mxu0 %v4986_v31  ;;  %3220 = vmatprep.subr.bf16.mxu1 %v4989_v32  ;;  %v5099_v30 = vld [vmem:[#allocation9 + $0x30] sm:$0xff]   ;;  %v5100_v32 = vld [vmem:[#allocation9 + $0x78] sm:$0xff]  }
 0x246   :  { %v5056_v31 = vld [vmem:[#allocation8 + $0x430] ss:$24 sps:$4 sm:$0xff]  }
 0x248   :  { %3135 = vmatpush1.bf16.msra.mxu0 %v4984_v35  ;;  %3221 = vmatpush1.bf16.msra.mxu1 %v4987_v36  ;;  %v5061_v35 = vld [vmem:[#allocation8 + $0x464] ss:$24 sps:$4 sm:$0xff]  }
 0x249   :  { %3233 = vmatprep.subr.bf16.mxu0 %v4992_v37  ;;  %4344 = vmatprep.subr.bf16.mxu1 %v5086_v40  ;;  %v5101_v36 = vld [vmem:[#allocation9 + $0x38] sm:$0xff]   ;;  %v5062_v40 = vld [vmem:[#allocation8 + $0x490] ss:$24 sps:$4 sm:$0xff]  }
 0x24a   :  { %v5059_v37 = vld [vmem:[#allocation8 + $0x460] ss:$24 sps:$4 sm:$0xff]  }
 0x24b   :  { %3137 = vmatmul.mubr.bf16.vlgmr.msra.gmra.mrb[4].mxu0 %v5382_v34  ;;  %3223 = vmatmul.mubr.bf16.vlgmr.msra.gmra.mrb[4].mxu1 %v5382_v34 }
 0x24c   :  { %3234 = vmatpush1.bf16.msra.mxu0 %v4990_v38  ;;  %3265 = vmatprep.mubr.bf16.mxu0 %v5384_v22  ;;  %v5004_v22 = vld [vmem:[#allocation8 + $0xd4] ss:$24 sps:$4 sm:$0xff]   ;;  %v5102_v38 = vld [vmem:[#allocation9 + $0xc0] sm:$0xff]  }
 0x24d   :  { %3235 = vmatprep.subr.bf16.mxu0 %v4995_v39  ;;  %4345 = vmatpush3.bf16.msra.mxu1 %v5087_v41  ;;  %v5064_v39 = vld [vmem:[#allocation8 + $0x494] ss:$24 sps:$4 sm:$0xff]   ;;  %v5067_v41 = vld [vmem:[#allocation8 + $0x4c4] ss:$24 sps:$4 sm:$0xff]  }
 0x24e   :  { %4346 = vmatprep.subr.bf16.mxu1 %v5088_v42  ;;  %v5065_v42 = vld [vmem:[#allocation8 + $0x4c0] ss:$24 sps:$4 sm:$0xff]  }
 0x250   :  { %3236 = vmatpush1.bf16.msra.mxu0 %v4993_v43  ;;  %v5070_v43 = vld [vmem:[#allocation8 + $0x4f4] ss:$24 sps:$4 sm:$0xff]  }
 0x251   :  { %3237 = vmatprep.subr.bf16.mxu0 %v4998_v44  ;;  %4347 = vmatpush3.bf16.msra.mxu1 %v5089_v45  ;;  %v5068_v44 = vld [vmem:[#allocation8 + $0x4f0] ss:$24 sps:$4 sm:$0xff]   ;;  %v5073_v45 = vld [vmem:[#allocation8 + $0x524] ss:$24 sps:$4 sm:$0xff]  }
 0x252   :  { %4348 = vmatprep.subr.bf16.mxu1 %v5090_v46  ;;  %v5071_v46 = vld [vmem:[#allocation8 + $0x520] ss:$24 sps:$4 sm:$0xff]  }
 0x254   :  { %3238 = vmatpush1.bf16.msra.mxu0 %v4996_v47  ;;  %v5076_v47 = vld [vmem:[#allocation8 + $0x554] ss:$24 sps:$4 sm:$0xff]  }
 0x255   :  { %3239 = vmatprep.subr.bf16.mxu0 %v5001_v49  ;;  %4349 = vmatpush3.bf16.msra.mxu1 %v5091_v50  ;;  %v5074_v49 = vld [vmem:[#allocation8 + $0x550] ss:$24 sps:$4 sm:$0xff]   ;;  %v5079_v50 = vld [vmem:[#allocation8 + $0x584] ss:$24 sps:$4 sm:$0xff]  }
 0x256   :  { %4350 = vmatprep.subr.bf16.mxu1 %v5092_v51  ;;  %v5077_v51 = vld [vmem:[#allocation8 + $0x580] ss:$24 sps:$4 sm:$0xff]  }
 0x258   :  { %3240 = vmatpush1.bf16.msra.mxu0 %v4999_v52  ;;  %v5082_v52 = vld [vmem:[#allocation8 + $0x5b4] ss:$24 sps:$4 sm:$0xff]  }
 0x259   :  { %3241 = vmatprep.subr.bf16.mxu0 %v5004_v22  ;;  %4351 = vmatpush3.bf16.msra.mxu1 %v5093_v53  ;;  %v5080_v22 = vld [vmem:[#allocation8 + $0x5b0] ss:$24 sps:$4 sm:$0xff]   ;;  %v5085_v53 = vld [vmem:[#allocation8 + $0x5e4] ss:$24 sps:$4 sm:$0xff]  }
 0x25a   :  { %4352 = vmatprep.subr.bf16.mxu1 %v5094_v54  ;;  %v5083_v54 = vld [vmem:[#allocation8 + $0x5e0] ss:$24 sps:$4 sm:$0xff]  }
 0x25c   :  { %3242 = vmatpush1.bf16.msra.mxu0 %v5002_v55 }
 0x25d   :  { %3243 = vmatprep.subr.bf16.mxu0 %v5007_v56  ;;  %4353 = vmatpush3.bf16.msra.mxu1 %v5095_v57 }
 0x25e   :  { %4354 = vmatprep.subr.bf16.mxu1 %v5096_v58 }
 0x260   :  { %3244 = vmatpush1.bf16.msra.mxu0 %v5005_v59 }
 0x261   :  { %3245 = vmatprep.subr.bf16.mxu0 %v5010_v60  ;;  %4355 = vmatpush3.bf16.msra.mxu1 %v5097_v61 }
 0x262   :  { %4356 = vmatprep.subr.bf16.mxu1 %v5098_v29  ;;  %v5122_v29 = vld [vmem:[#allocation9 + $0x150] sm:$0xff]  }
 0x264   :  { %3246 = vmatpush1.bf16.msra.mxu0 %v5008_v62 }
 0x265   :  { %3247 = vmatprep.subr.bf16.mxu0 %v5013_v63  ;;  %4357 = vmatpush3.bf16.msra.mxu1 %v5099_v30  ;;  %v5124_v30 = vld [vmem:[#allocation9 + $0x158] sm:$0xff]  }
 0x266   :  { %4358 = vmatprep.subr.bf16.mxu1 %v5100_v32  ;;  %v5126_v32 = vld [vmem:[#allocation9 + $0x160] sm:$0xff]  }
 0x268   :  { %3248 = vmatpush1.bf16.msra.mxu0 %v5011_v0 }
 0x269   :  { %3249 = vmatprep.subr.bf16.mxu0 %v5016_v1  ;;  %4359 = vmatpush3.bf16.msra.mxu1 %v5101_v36  ;;  %v5128_v36 = vld [vmem:[#allocation9 + $0x168] sm:$0xff]  }
 0x26a   :  { %4366 = vmatprep.subr.bf16.mxu1 %v5102_v38  ;;  %v5130_v38 = vld [vmem:[#allocation9 + $0x170] sm:$0xff]  }
 0x26c   :  { %3250 = vmatpush1.bf16.msra.mxu0 %v5014_v2 }
 0x26d   :  { %3251 = vmatprep.subr.bf16.mxu0 %v5019_v48 }
 0x270   :  { %3252 = vmatpush1.bf16.msra.mxu0 %v5017_v3 }
 0x271   :  { %3253 = vmatprep.subr.bf16.mxu0 %v5022_v4 }
 0x274   :  { %3254 = vmatpush1.bf16.msra.mxu0 %v5020_v5 }
 0x275   :  { %3255 = vmatprep.subr.bf16.mxu0 %v5025_v6 }
 0x278   :  { %3256 = vmatpush1.bf16.msra.mxu0 %v5023_v7 }
 0x279   :  { %3257 = vmatprep.subr.bf16.mxu0 %v5028_v8 }
 0x27c   :  { %3258 = vmatpush1.bf16.msra.mxu0 %v5026_v9  ;;  %v5103_v9 = vld [vmem:[#allocation9 + $0x80] sm:$0xff]  }
 0x27d   :  { %3259 = vmatprep.subr.bf16.mxu0 %v5031_v10  ;;  %v5104_v10 = vld [vmem:[#allocation9 + $0xc8] sm:$0xff]  }
 0x280   :  { %3260 = vmatpush1.bf16.msra.mxu0 %v5029_v11  ;;  %v5105_v11 = vld [vmem:[#allocation9 + $0x88] sm:$0xff]  }
 0x281   :  { %3261 = vmatprep.subr.bf16.mxu0 %v5034_v12  ;;  %v5106_v12 = vld [vmem:[#allocation9 + $0xd0] sm:$0xff]  }
 0x284   :  { %3262 = vmatpush1.bf16.msra.mxu0 %v5032_v13  ;;  %v5107_v13 = vld [vmem:[#allocation9 + $0x90] sm:$0xff]  }
 0x285   :  { %3263 = vmatprep.subr.bf16.mxu0 %v5037_v14  ;;  %v5108_v14 = vld [vmem:[#allocation9 + $0xd8] sm:$0xff]  }
 0x288   :  { %3264 = vmatpush1.bf16.msra.mxu0 %v5035_v15  ;;  %v5109_v15 = vld [vmem:[#allocation9 + $0x98] sm:$0xff]  }
 0x289   :  { %3276 = vmatprep.subr.bf16.mxu0 %v5040_v16  ;;  %v5110_v16 = vld [vmem:[#allocation9 + $0xe0] sm:$0xff]  }
 0x28b   :  { %3266 = vmatmul.mubr.bf16.vlgmr.msra.gmra.mrb[8].mxu0 %v5380_v33  ;;  %v5053_v33 = vld [vmem:[#allocation8 + $0x400] ss:$24 sps:$4 sm:$0xff]  }
 0x28c   :  { %3277 = vmatpush1.bf16.msra.mxu0 %v5038_v17  ;;  %3308 = vmatprep.mubr.bf16.mxu0 %v5386_v23  ;;  %v5058_v23 = vld [vmem:[#allocation8 + $0x434] ss:$24 sps:$4 sm:$0xff]   ;;  %v5111_v17 = vld [vmem:[#allocation9 + $0xa0] sm:$0xff]  }
 0x28d   :  { %3278 = vmatprep.subr.bf16.mxu0 %v5043_v18  ;;  %v5112_v18 = vld [vmem:[#allocation9 + $0xe8] sm:$0xff]  }
 0x290   :  { %3279 = vmatpush1.bf16.msra.mxu0 %v5041_v19  ;;  %v5113_v19 = vld [vmem:[#allocation9 + $0xa8] sm:$0xff]  }
 0x291   :  { %3280 = vmatprep.subr.bf16.mxu0 %v5046_v20  ;;  %v5114_v20 = vld [vmem:[#allocation9 + $0xf0] sm:$0xff]  }
 0x294   :  { %3281 = vmatpush1.bf16.msra.mxu0 %v5044_v21  ;;  %v5115_v21 = vld [vmem:[#allocation9 + $0xb0] sm:$0xff]  }
 0x295   :  { %3282 = vmatprep.subr.bf16.mxu0 %v5049_v24  ;;  %v5116_v24 = vld [vmem:[#allocation9 + $0xf8] sm:$0xff]  }
 0x298   :  { %3283 = vmatpush1.bf16.msra.mxu0 %v5047_v25  ;;  %v5117_v25 = vld [vmem:[#allocation9 + $0xb8] sm:$0xff]  }
 0x299   :  { %3284 = vmatprep.subr.bf16.mxu0 %v5052_v26  ;;  %v5118_v26 = vld [vmem:[#allocation9 + $0x140] sm:$0xff]  }
 0x29c   :  { %3285 = vmatpush1.bf16.msra.mxu0 %v5050_v27  ;;  %v5119_v27 = vld [vmem:[#allocation9 + $0x100] sm:$0xff]  }
 0x29d   :  { %3286 = vmatprep.subr.bf16.mxu0 %v5055_v28  ;;  %v5120_v28 = vld [vmem:[#allocation9 + $0x148] sm:$0xff]  }
 0x2a0   :  { %3287 = vmatpush1.bf16.msra.mxu0 %v5053_v33  ;;  %v5121_v33 = vld [vmem:[#allocation9 + $0x108] sm:$0xff]  }
 0x2a1   :  { %3288 = vmatprep.subr.bf16.mxu0 %v5058_v23  ;;  %v5123_v23 = vld [vmem:[#allocation9 + $0x110] sm:$0xff]  }
 0x2a4   :  { %3289 = vmatpush1.bf16.msra.mxu0 %v5056_v31  ;;  %v5125_v31 = vld [vmem:[#allocation9 + $0x118] sm:$0xff]  }
 0x2a5   :  { %3290 = vmatprep.subr.bf16.mxu0 %v5061_v35  ;;  %v5127_v35 = vld [vmem:[#allocation9 + $0x120] sm:$0xff]  }
 0x2a8   :  { %3291 = vmatpush1.bf16.msra.mxu0 %v5059_v37  ;;  %v5129_v37 = vld [vmem:[#allocation9 + $0x128] sm:$0xff]  }
 0x2a9   :  { %3292 = vmatprep.subr.bf16.mxu0 %v5064_v39  ;;  %v5131_v39 = vld [vmem:[#allocation9 + $0x130] sm:$0xff]  }
 0x2ac   :  { %3293 = vmatpush1.bf16.msra.mxu0 %v5062_v40  ;;  %v5132_v40 = vld [vmem:[#allocation9 + $0x178] sm:$0xff]  }
 0x2ad   :  { %3294 = vmatprep.subr.bf16.mxu0 %v5067_v41  ;;  %v5133_v41 = vld [vmem:[#allocation9 + $0x138] sm:$0xff]  }
 0x2b0   :  { %3295 = vmatpush1.bf16.msra.mxu0 %v5065_v42 }
 0x2b1   :  { %3296 = vmatprep.subr.bf16.mxu0 %v5070_v43 }
 0x2b4   :  { %3297 = vmatpush1.bf16.msra.mxu0 %v5068_v44 }
 0x2b5   :  { %3298 = vmatprep.subr.bf16.mxu0 %v5073_v45 }
 0x2b8   :  { %3299 = vmatpush1.bf16.msra.mxu0 %v5071_v46 }
 0x2b9   :  { %3300 = vmatprep.subr.bf16.mxu0 %v5076_v47 }
 0x2bc   :  { %3301 = vmatpush1.bf16.msra.mxu0 %v5074_v49 }
 0x2bd   :  { %3302 = vmatprep.subr.bf16.mxu0 %v5079_v50 }
 0x2c0   :  { %3303 = vmatpush1.bf16.msra.mxu0 %v5077_v51 }
 0x2c1   :  { %3304 = vmatprep.subr.bf16.mxu0 %v5082_v52 }
 0x2c4   :  { %3305 = vmatpush1.bf16.msra.mxu0 %v5080_v22 }
 0x2c5   :  { %3306 = vmatprep.subr.bf16.mxu0 %v5085_v53 }
 0x2c8   :  { %3307 = vmatpush1.bf16.msra.mxu0 %v5083_v54 }
 0x2cb   :  { %3309 = vmatmul.mubr.bf16.vlgmr.msra.gmra.mrb[8].mxu0 %v5382_v34 }
 0x31e   :  { %v3138_v55 = vpop.f32.mrb[4].mxu0  ;;  %v3224_v56 = vpop.f32.mrb[4].mxu1 }
 0x31f   :  { %v3140_v57 = vpop.f32.mrb[5].mxu0  ;;  %v3226_v58 = vpop.f32.mrb[5].mxu1  ;;  %v3319_v61 = vmax.f32 %v3138_v55, 0.0  ;;  %v3321_v62 = vmax.f32 %v3224_v56, 0.0 }
 0x320   :  { %v3142_v59 = vpop.f32.mrb[6].mxu0  ;;  %v3228_v60 = vpop.f32.mrb[6].mxu1  ;;  %v3320_v48 = vmax.f32 %v3140_v57, 0.0  ;;  %v3322_v3 = vmax.f32 %v3226_v58, 0.0  ;;  %v4295_v58 = vld [vmem:[%s5420_s5] ss:$0 sm:$0xff] }
 0x321   :  { %v3325_v63 = vmax.f32 %v3142_v59, 0.0  ;;  %v3327_v0 = vmax.f32 %v3228_v60, 0.0  ;;  %v3144_v1 = vpop.f32.mrb[7].mxu0  ;;  %v3230_v2 = vpop.f32.mrb[7].mxu1  ;;  %s5222_s5 = scalar_lea.vmem %s3859_s28, 256 }
 0x322   :  { %v3326_v4 = vmax.f32 %v3144_v1, 0.0  ;;  %v3328_v5 = vmax.f32 %v3230_v2, 0.0  ;;  %p5223_p4 = scmp.ne.s32.totalorder %s3859_s28, %s5222_s5  ;;  %p5228_p6 = scmp.lt.s32.totalorder %s5222_s5, %s5222_s5 }
 0x323   :  { %v3331_v6 = vpack.c.bf16 %v3325_v63, %v3319_v61  ;;  %v3333_v7 = vpack.c.bf16 %v3327_v0, %v3321_v62 }
 0x324   :  { %v3332_v8 = vpack.c.bf16 %v3326_v4, %v3320_v48  ;;  %v3334_v34 = vpack.c.bf16 %v3328_v5, %v3322_v3  ;;  %p5229_p7 = por %p5228_p6, %p5227_p5 }
 0x326   :  { %3760 = vmatprep.mubr.bf16.mxu1 %v3332_v8  ;;  %p5230_p8 = pnand %p5229_p7, %p5223_p4 }
 0x327   :  { %3761 = vmatmul.mubr.bf16.vlgmr.msra.gmra.mrb[8].mxu1 %v3331_v6 }
 0x328   :  { %4367 = vmatpush3.bf16.msra.mxu1 %v5103_v9  ;;  %3801 = vmatprep.mubr.bf16.mxu1 %v3334_v34 }
 0x329   :  { %4368 = vmatprep.subr.bf16.mxu1 %v5104_v10 }
 0x32c   :  { %4369 = vmatpush3.bf16.msra.mxu1 %v5105_v11 }
 0x32d   :  { %4370 = vmatprep.subr.bf16.mxu1 %v5106_v12 }
 0x330   :  { %4371 = vmatpush3.bf16.msra.mxu1 %v5107_v13 }
 0x331   :  { %4372 = vmatprep.subr.bf16.mxu1 %v5108_v14 }
 0x334   :  { %4373 = vmatpush3.bf16.msra.mxu1 %v5109_v15 }
 0x335   :  { %4374 = vmatprep.subr.bf16.mxu1 %v5110_v16 }
 0x338   :  { %4375 = vmatpush3.bf16.msra.mxu1 %v5111_v17 }
 0x339   :  { %4376 = vmatprep.subr.bf16.mxu1 %v5112_v18 }
 0x33c   :  { %4377 = vmatpush3.bf16.msra.mxu1 %v5113_v19 }
 0x33d   :  { %4378 = vmatprep.subr.bf16.mxu1 %v5114_v20 }
 0x340   :  { %4379 = vmatpush3.bf16.msra.mxu1 %v5115_v21 }
 0x341   :  { %4380 = vmatprep.subr.bf16.mxu1 %v5116_v24 }
 0x344   :  { %4381 = vmatpush3.bf16.msra.mxu1 %v5117_v25 }
 0x345   :  { %4388 = vmatprep.subr.bf16.mxu1 %v5118_v26 }
 0x347   :  { %3802 = vmatmul.mubr.bf16.vlgmr.msra.gmra.mrb[12].mxu1 %v3333_v7 }
 0x348   :  { %4389 = vmatpush3.bf16.msra.mxu1 %v5119_v27 }
 0x349   :  { %4390 = vmatprep.subr.bf16.mxu1 %v5120_v28 }
 0x34c   :  { %4391 = vmatpush3.bf16.msra.mxu1 %v5121_v33 }
 0x34d   :  { %4392 = vmatprep.subr.bf16.mxu1 %v5122_v29 }
 0x350   :  { %4393 = vmatpush3.bf16.msra.mxu1 %v5123_v23 }
 0x351   :  { %4394 = vmatprep.subr.bf16.mxu1 %v5124_v30 }
 0x354   :  { %4395 = vmatpush3.bf16.msra.mxu1 %v5125_v31 }
 0x355   :  { %4396 = vmatprep.subr.bf16.mxu1 %v5126_v32 }
 0x358   :  { %4397 = vmatpush3.bf16.msra.mxu1 %v5127_v35 }
 0x359   :  { %4398 = vmatprep.subr.bf16.mxu1 %v5128_v36 }
 0x35c   :  { %4399 = vmatpush3.bf16.msra.mxu1 %v5129_v37 }
 0x35d   :  { %4400 = vmatprep.subr.bf16.mxu1 %v5130_v38 }
 0x360   :  { %4401 = vmatpush3.bf16.msra.mxu1 %v5131_v39 }
 0x361   :  { %4402 = vmatprep.subr.bf16.mxu1 %v5132_v40 }
 0x364   :  { %4403 = vmatpush3.bf16.msra.mxu1 %v5133_v41 }
 0x39e   :  { %v3310_v42 = vpop.f32.mrb[8].mxu0 }
 0x39f   :  { %v3312_v43 = vpop.f32.mrb[9].mxu0  ;;  %v3323_v45 = vmax.f32 %v3310_v42, 0.0 }
 0x3a0   :  { %v3314_v44 = vpop.f32.mrb[10].mxu0  ;;  %v3324_v49 = vmax.f32 %v3312_v43, 0.0 }
 0x3a1   :  { %v3329_v46 = vmax.f32 %v3314_v44, 0.0  ;;  %v3316_v47 = vpop.f32.mrb[11].mxu0 }
 0x3a2   :  { %v3330_v50 = vmax.f32 %v3316_v47, 0.0 }
 0x3a3   :  { %v3335_v51 = vpack.c.bf16 %v3329_v46, %v3323_v45 }
 0x3a4   :  { %v3336_v52 = vpack.c.bf16 %v3330_v50, %v3324_v49 }
 0x3a6   :  { %3842 = vmatprep.mubr.bf16.mxu1 %v3336_v52 }
 0x3a7   :  { %3843 = vmatmul.mubr.bf16.vlgmr.msra.gmra.mrb[16].mxu1 %v3335_v51 }
 0x3fa   :  { %v4360_v22 = vpop.f32.mrb[8].mxu1 }
 0x3fb   :  { %v4361_v53 = vpop.f32.mrb[9].mxu1 }
 0x3fc   :  { %v4362_v54 = vadd.f32 %v4361_v53, %v4360_v22  ;;  %v4363_v55 = vpop.f32.mrb[10].mxu1 }
 0x3fd   :  { %v4364_v56 = vpop.f32.mrb[11].mxu1 }
 0x3fe   :  { %v4365_v57 = vadd.f32 %v4364_v56, %v4363_v55  ;;  %v3763_v61 = vadd.f32 %v4362_v54, %v4295_v58 }
 0x400   :  { %v3766_v1 = vadd.f32 %v4365_v57, %v4295_v58 }
 0x41a   :  { %v4382_v59 = vpop.f32.mrb[12].mxu1 }
 0x41b   :  { %v4383_v60 = vpop.f32.mrb[13].mxu1 }
 0x41c   :  { %v4384_v62 = vadd.f32 %v4383_v60, %v4382_v59  ;;  %v4385_v63 = vpop.f32.mrb[14].mxu1 }
 0x41d   :  { %v4386_v0 = vpop.f32.mrb[15].mxu1 }
 0x41e   :  { %v3804_v2 = vadd.f32 %v4384_v62, %v3763_v61  ;;  %v4387_v48 = vadd.f32 %v4386_v0, %v4385_v63 }
 0x420   :  { %v3807_v3 = vadd.f32 %v4387_v48, %v3766_v1 }
 0x47a   :  { %v4404_v4 = vpop.f32.mrb[16].mxu1 }
 0x47b   :  { %v4405_v5 = vpop.f32.mrb[17].mxu1 }
 0x47c   :  { %v4406_v6 = vadd.f32 %v4405_v5, %v4404_v4  ;;  %v4407_v7 = vpop.f32.mrb[18].mxu1 }
 0x47d   :  { %v4408_v8 = vpop.f32.mrb[19].mxu1 }
 0x47e   :  { %v3845_v34 = vadd.f32 %v4406_v6, %v3804_v2  ;;  %v4409_v9 = vadd.f32 %v4408_v8, %v4407_v7 }
 0x480   :  { %3851 = vst [vmem:[#allocation11] sm:$0xff] %v3845_v34  ;;  %v3848_v10 = vadd.f32 %v4409_v9, %v3807_v3 }
 0x482   :  { %3852 = vst [vmem:[#allocation11 + $0x8] sm:$0xff] %v3848_v10 }
 0x483   :  { %5233 = shalt.err (!%p5230_p8)
}
 0x484   :  { %s5234_s7 = scalar_lea.hbm %s5421_s6, 256 }
 0x485   :  { %p5235_p9 = scmp.ne.s32.totalorder %s5421_s6, %s5234_s7  ;;  %p5238_p10 = scmp.lt.u32.totalorder %s5234_s7, %s5421_s6 }
 0x487   :  { %p5240_p11 = pnand %p5238_p10, %p5235_p9 }
 0x489   :  { %5243 = shalt.err (!%p5240_p11)
}
 0x48a   :  { %s5266_s11 = smov 128   ;;  %s5267_s12 = smov 8  }
 0x48b   :  { %3864 = dma.vmem_to_hbm [thread:$0]  %s3859_s28, 256, %s5421_s6, [#allocation5], %s5266_s11, %s5266_s11, %s5267_s12  }
 0x48c   :  { %5250 = dma.done.wait [#allocation5], 256  }
 0x48d   :  { %5251 = vsyncadd [#allocation5], 4294967040 }
 0x48e   :  { %3868 = vsyncpa [#allocation4], 1 }
 0x48f   :  { %3869 = vsyncpa [#allocation7], 1 }
 0x490   :  { %3870 = vsyncpa [#allocation10], 1 }
 0x491   :  { %3871 = vsyncpa [#allocation5], 1 }

// kernel: tpu_custom_call.1
= control target key start
LH: loop header
LB: loop body
LE: loop exit
PB: predicated region body
PF: predicated region fallthrough
CT: control target
= control target key end

     0   :  { %11 = vsyncpa [#allocation4], 0  ;;  %s5415_s0 = inlined_call_operand.hbm [shape: bf16[16,896], index: 0, kind: input, shape index: {}]   ;;  %s5416_s1 = inlined_call_operand.hbm [shape: bf16[896,512], index: 1, kind: input, shape index: {}]   ;;  %s5417_s2 = inlined_call_operand.vmem [shape: f32[1,512], index: 2, kind: input, shape index: {}]   ;;  %s5418_s3 = inlined_call_operand.hbm [shape: bf16[512,768], index: 3, kind: input, shape index: {}]   ;;  %s5419_s4 = inlined_call_operand.hbm [shape: bf16[768,128], index: 4, kind: input, shape index: {}]   ;;  %s5420_s5 = inlined_call_operand.vmem [shape: f32[1,128], index: 5, kind: input, shape index: {}]   ;;  %s5421_s6 = inlined_call_operand.hbm [shape: f32[16,128], index: 6, kind: output, shape index: {}]  }
   0x1   :  { %12 = vsyncpa [#allocation7], 0 }
   0x2   :  { %13 = vsyncpa [#allocation10], 0 }
   0x3   :  { %14 = vsyncpa [#allocation5], 0  ;;  %s5252_s21 = smov [#allocation6]   ;;  %s5134_s25 = scalar_lea.hbm %s5416_s1, 28672 }
   0x4   :  { %s32_s22 = sshll.u32 %s5252_s21, 4  ;;  %p5135_p0 = scmp.ne.s32.totalorder %s5416_s1, %s5134_s25  ;;  %s33_s22 = int_to_ptr.vmem [resolvable:$true] %s32_s22 }
   0x5   :  { %p5138_p1 = scmp.lt.u32.totalorder %s5134_s25, %s5416_s1 }
   0x7   :  { %p5140_p2 = pnand %p5138_p1, %p5135_p0 }
   0x9   :  { %5143 = shalt.err (!%p5140_p2)
}
   0xa   :  { %s5144_s30 = scalar_lea.vmem %s33_s22, 28672  ;;  %p5149_p4 = scmp.lt.s32.totalorder %s33_s22, %s33_s22 }
   0xb   :  { %p5145_p3 = scmp.ne.s32.totalorder %s33_s22, %s5144_s30  ;;  %p5150_p5 = scmp.lt.s32.totalorder %s5144_s30, %s5144_s30 }
   0xd   :  { %p5151_p6 = por %p5150_p5, %p5149_p4 }
   0xf   :  { %p5152_p7 = pnand %p5151_p6, %p5145_p3 }
  0x11   :  { %5155 = shalt.err (!%p5152_p7)
}
  0x12   :  { %s5253_s7 = smov 256   ;;  %s5254_s8 = smov 16  }
  0x13   :  { %38 = dma.hbm_to_vmem [thread:$0]  %s5416_s1, 28672, %s33_s22, [#allocation7], %s5253_s7, %s5253_s7, %s5254_s8  }
  0x14   :  { %s5255_s11 = smov [#allocation3]   ;;  %s5156_s15 = scalar_lea.hbm %s5415_s0, 896 }
  0x15   :  { %s20_s12 = sshll.u32 %s5255_s11, 4  ;;  %p5157_p8 = scmp.ne.s32.totalorder %s5415_s0, %s5156_s15  ;;  %s21_s12 = int_to_ptr.vmem [resolvable:$true] %s20_s12 }
  0x16   :  { %p5160_p9 = scmp.lt.u32.totalorder %s5156_s15, %s5415_s0 }
  0x18   :  { %p5162_p10 = pnand %p5160_p9, %p5157_p8 }
  0x1a   :  { %5165 = shalt.err (!%p5162_p10)
}
  0x1b   :  { %s5166_s20 = scalar_lea.vmem %s21_s12, 896  ;;  %p5171_p12 = scmp.lt.s32.totalorder %s21_s12, %s21_s12 }
  0x1c   :  { %p5167_p11 = scmp.ne.s32.totalorder %s21_s12, %s5166_s20  ;;  %p5172_p13 = scmp.lt.s32.totalorder %s5166_s20, %s5166_s20 }
  0x1e   :  { %p5173_p0 = por %p5172_p13, %p5171_p12 }
  0x20   :  { %p5174_p1 = pnand %p5173_p0, %p5167_p11 }
  0x22   :  { %5177 = shalt.err (!%p5174_p1)
}
  0x23   :  { %s5256_s1 = smov 448   ;;  %s5257_s21 = smov 28  }
  0x24   :  { %26 = dma.hbm_to_vmem [thread:$0]  %s5415_s0, 896, %s21_s12, [#allocation4], %s5256_s1, %s5256_s1, %s5257_s21  }
  0x25   :  { %s5258_s24 = smov [#allocation8]   ;;  %s5178_s28 = scalar_lea.hbm %s5418_s3, 24576 }
  0x26   :  { %s46_s25 = sshll.u32 %s5258_s24, 4  ;;  %p5179_p2 = scmp.ne.s32.totalorder %s5418_s3, %s5178_s28  ;;  %s47_s25 = int_to_ptr.vmem [resolvable:$true] %s46_s25 }
  0x27   :  { %p5182_p3 = scmp.lt.u32.totalorder %s5178_s28, %s5418_s3 }
  0x29   :  { %p5184_p4 = pnand %p5182_p3, %p5179_p2 }
  0x2b   :  { %5187 = shalt.err (!%p5184_p4)
}
  0x2c   :  { %s5188_s9 = scalar_lea.vmem %s47_s25, 24576  ;;  %p5193_p6 = scmp.lt.s32.totalorder %s47_s25, %s47_s25 }
  0x2d   :  { %p5189_p5 = scmp.ne.s32.totalorder %s47_s25, %s5188_s9  ;;  %p5194_p7 = scmp.lt.s32.totalorder %s5188_s9, %s5188_s9 }
  0x2f   :  { %p5195_p8 = por %p5194_p7, %p5193_p6 }
  0x31   :  { %p5196_p9 = pnand %p5195_p8, %p5189_p5 }
  0x33   :  { %5199 = shalt.err (!%p5196_p9)
}
  0x34   :  { %s5259_s0 = smov 384   ;;  %s5260_s10 = smov 24  }
  0x35   :  { %52 = dma.hbm_to_vmem [thread:$0]  %s5418_s3, 24576, %s47_s25, [#allocation7], %s5259_s0, %s5259_s0, %s5260_s10  }
  0x36   :  { %s5261_s13 = smov [#allocation9]   ;;  %s5200_s17 = scalar_lea.hbm %s5419_s4, 6144 }
  0x37   :  { %s58_s14 = sshll.u32 %s5261_s13, 4  ;;  %p5201_p10 = scmp.ne.s32.totalorder %s5419_s4, %s5200_s17  ;;  %s59_s14 = int_to_ptr.vmem [resolvable:$true] %s58_s14 }
  0x38   :  { %p5204_p11 = scmp.lt.u32.totalorder %s5200_s17, %s5419_s4 }
  0x3a   :  { %p5206_p12 = pnand %p5204_p11, %p5201_p10 }
  0x3c   :  { %5209 = shalt.err (!%p5206_p12)
}
  0x3d   :  { %s5210_s21 = scalar_lea.vmem %s59_s14, 6144  ;;  %p5215_p0 = scmp.lt.s32.totalorder %s59_s14, %s59_s14 }
  0x3e   :  { %p5211_p13 = scmp.ne.s32.totalorder %s59_s14, %s5210_s21  ;;  %p5216_p1 = scmp.lt.s32.totalorder %s5210_s21, %s5210_s21 }
  0x40   :  { %p5217_p2 = por %p5216_p1, %p5215_p0 }
  0x42   :  { %p5218_p3 = pnand %p5217_p2, %p5211_p13 }
  0x44   :  { %5221 = shalt.err (!%p5218_p3)
}
  0x45   :  { %s5262_s3 = smov 64   ;;  %s5263_s22 = smov 4  }
  0x46   :  { %64 = dma.hbm_to_vmem [thread:$0]  %s5419_s4, 6144, %s59_s14, [#allocation10], %s5262_s3, %s5262_s3, %s5263_s22  }
  0x47   :  { %5244 = dma.done.wait [#allocation4], 896  }
  0x48   :  { %5245 = vsyncadd [#allocation4], 4294966400 }
  0x49   :  { %5246 = dma.done.wait [#allocation7], 53248  }
  0x4a   :  { %5247 = vsyncadd [#allocation7], 4294914048 }
  0x4b   :  { %5248 = dma.done.wait [#allocation10], 6144  }
  0x4c   :  { %5249 = vsyncadd [#allocation10], 4294961152  ;;  %v4462_v0 = vld [vmem:[#allocation6 + $0x4] ss:$16 sps:$4 sm:$0xff]   ;;  %v4464_v1 = vld [vmem:[#allocation6 + $0xc] ss:$16 sps:$4 sm:$0xff]  }
  0x4d   :  { %1496 = vmatprep.subr.bf16.mxu0 %v4462_v0  ;;  %v4466_v2 = vld [vmem:[#allocation6] ss:$16 sps:$4 sm:$0xff]   ;;  %v4467_v3 = vld [vmem:[#allocation6 + $0x8] ss:$16 sps:$4 sm:$0xff]   ;;  %1668 = vmatprep.subr.bf16.mxu1 %v4464_v1  ;;  %v4468_v4 = vld [vmem:[#allocation6 + $0x24] ss:$16 sps:$4 sm:$0xff]  }
  0x4e   :  { %1497 = vmatpush1.bf16.msra.mxu0 %v4466_v2  ;;  %1669 = vmatpush1.bf16.msra.mxu1 %v4467_v3  ;;  %v4470_v5 = vld [vmem:[#allocation6 + $0x2c] ss:$16 sps:$4 sm:$0xff]   ;;  %v4472_v6 = vld [vmem:[#allocation6 + $0x20] ss:$16 sps:$4 sm:$0xff]   ;;  %v4473_v7 = vld [vmem:[#allocation6 + $0x28] ss:$16 sps:$4 sm:$0xff]  }
  0x4f   :  { %1498 = vmatprep.subr.bf16.mxu0 %v4468_v4  ;;  %1670 = vmatprep.subr.bf16.mxu1 %v4470_v5  ;;  %v4474_v8 = vld [vmem:[#allocation6 + $0x44] ss:$16 sps:$4 sm:$0xff]   ;;  %v4476_v9 = vld [vmem:[#allocation6 + $0x4c] ss:$16 sps:$4 sm:$0xff]   ;;  %v4478_v10 = vld [vmem:[#allocation6 + $0x40] ss:$16 sps:$4 sm:$0xff]  }
  0x50   :  { %v4479_v11 = vld [vmem:[#allocation6 + $0x48] ss:$16 sps:$4 sm:$0xff]   ;;  %v4480_v12 = vld [vmem:[#allocation6 + $0x64] ss:$16 sps:$4 sm:$0xff]   ;;  %v4482_v13 = vld [vmem:[#allocation6 + $0x6c] ss:$16 sps:$4 sm:$0xff]  }
  0x51   :  { %v4484_v14 = vld [vmem:[#allocation6 + $0x60] ss:$16 sps:$4 sm:$0xff]   ;;  %v4485_v15 = vld [vmem:[#allocation6 + $0x68] ss:$16 sps:$4 sm:$0xff]   ;;  %v4486_v16 = vld [vmem:[#allocation6 + $0x84] ss:$16 sps:$4 sm:$0xff]  }
  0x52   :  { %1499 = vmatpush1.bf16.msra.mxu0 %v4472_v6  ;;  %1671 = vmatpush1.bf16.msra.mxu1 %v4473_v7  ;;  %v4488_v17 = vld [vmem:[#allocation6 + $0x8c] ss:$16 sps:$4 sm:$0xff]   ;;  %v4490_v18 = vld [vmem:[#allocation6 + $0x80] ss:$16 sps:$4 sm:$0xff]   ;;  %v4491_v19 = vld [vmem:[#allocation6 + $0x88] ss:$16 sps:$4 sm:$0xff]  }
  0x53   :  { %1500 = vmatprep.subr.bf16.mxu0 %v4474_v8  ;;  %1672 = vmatprep.subr.bf16.mxu1 %v4476_v9  ;;  %v4492_v20 = vld [vmem:[#allocation6 + $0xa4] ss:$16 sps:$4 sm:$0xff]   ;;  %v4494_v21 = vld [vmem:[#allocation6 + $0xac] ss:$16 sps:$4 sm:$0xff]   ;;  %v4496_v22 = vld [vmem:[#allocation6 + $0xa0] ss:$16 sps:$4 sm:$0xff]  }
  0x54   :  { %v4497_v23 = vld [vmem:[#allocation6 + $0xa8] ss:$16 sps:$4 sm:$0xff]   ;;  %v4498_v24 = vld [vmem:[#allocation6 + $0xc4] ss:$16 sps:$4 sm:$0xff]   ;;  %v4500_v25 = vld [vmem:[#allocation6 + $0xcc] ss:$16 sps:$4 sm:$0xff]  }
  0x55   :  { %v4502_v26 = vld [vmem:[#allocation6 + $0xc0] ss:$16 sps:$4 sm:$0xff]   ;;  %v4503_v27 = vld [vmem:[#allocation6 + $0xc8] ss:$16 sps:$4 sm:$0xff]   ;;  %v4504_v28 = vld [vmem:[#allocation6 + $0xe4] ss:$16 sps:$4 sm:$0xff]  }
  0x56   :  { %1501 = vmatpush1.bf16.msra.mxu0 %v4478_v10  ;;  %1673 = vmatpush1.bf16.msra.mxu1 %v4479_v11  ;;  %v4506_v29 = vld [vmem:[#allocation6 + $0xec] ss:$16 sps:$4 sm:$0xff]   ;;  %v4508_v30 = vld [vmem:[#allocation6 + $0xe0] ss:$16 sps:$4 sm:$0xff]   ;;  %v4509_v31 = vld [vmem:[#allocation6 + $0xe8] ss:$16 sps:$4 sm:$0xff]  }
  0x57   :  { %1502 = vmatprep.subr.bf16.mxu0 %v4480_v12  ;;  %1674 = vmatprep.subr.bf16.mxu1 %v4482_v13  ;;  %v4510_v32 = vld [vmem:[#allocation6 + $0x104] ss:$16 sps:$4 sm:$0xff]   ;;  %v4512_v33 = vld [vmem:[#allocation6 + $0x10c] ss:$16 sps:$4 sm:$0xff]   ;;  %v4514_v34 = vld [vmem:[#allocation6 + $0x100] ss:$16 sps:$4 sm:$0xff]  }
  0x58   :  { %v4515_v35 = vld [vmem:[#allocation6 + $0x108] ss:$16 sps:$4 sm:$0xff]   ;;  %v4516_v36 = vld [vmem:[#allocation6 + $0x124] ss:$16 sps:$4 sm:$0xff]   ;;  %v4518_v37 = vld [vmem:[#allocation6 + $0x12c] ss:$16 sps:$4 sm:$0xff]  }
  0x59   :  { %v4520_v38 = vld [vmem:[#allocation6 + $0x120] ss:$16 sps:$4 sm:$0xff]   ;;  %v4521_v39 = vld [vmem:[#allocation6 + $0x128] ss:$16 sps:$4 sm:$0xff]   ;;  %v4522_v40 = vld [vmem:[#allocation6 + $0x144] ss:$16 sps:$4 sm:$0xff]  }
  0x5a   :  { %1503 = vmatpush1.bf16.msra.mxu0 %v4484_v14  ;;  %1675 = vmatpush1.bf16.msra.mxu1 %v4485_v15  ;;  %v4524_v41 = vld [vmem:[#allocation6 + $0x14c] ss:$16 sps:$4 sm:$0xff]   ;;  %v4526_v42 = vld [vmem:[#allocation6 + $0x140] ss:$16 sps:$4 sm:$0xff]   ;;  %v4527_v43 = vld [vmem:[#allocation6 + $0x148] ss:$16 sps:$4 sm:$0xff]  }
  0x5b   :  { %1504 = vmatprep.subr.bf16.mxu0 %v4486_v16  ;;  %1676 = vmatprep.subr.bf16.mxu1 %v4488_v17  ;;  %v4528_v44 = vld [vmem:[#allocation6 + $0x164] ss:$16 sps:$4 sm:$0xff]   ;;  %v4530_v45 = vld [vmem:[#allocation6 + $0x16c] ss:$16 sps:$4 sm:$0xff]   ;;  %v5264_v48 = vmov 0   ;;  %s5265_s27 = smov [#allocation11]  }
  0x5c   :  { %v92_v46 = vld [vmem:[#allocation3] sm:$0xff]  ;;  %v4532_v50 = vld [vmem:[#allocation6 + $0x160] ss:$16 sps:$4 sm:$0xff]   ;;  %v4534_v53 = vld [vmem:[#allocation6 + $0x184] ss:$16 sps:$4 sm:$0xff]   ;;  %s3858_s28 = sshll.u32 %s5265_s27, 4  ;;  %s3859_s28 = int_to_ptr.vmem [resolvable:$true] %s3858_s28 }
  0x5d   :  { %v96_v47 = vld [vmem:[#allocation3 + $0x1c] sm:$0xff]  ;;  %v100_v49 = vmax.bf16 %v5264_v48, %v92_v46  ;;  %v4536_v54 = vld [vmem:[#allocation6 + $0x18c] ss:$16 sps:$4 sm:$0xff]   ;;  %v4538_v56 = vld [vmem:[#allocation6 + $0x180] ss:$16 sps:$4 sm:$0xff]   ;;  %p5227_p5 = scmp.lt.s32.totalorder %s3859_s28, %s3859_s28 }
  0x5e   :  { %1505 = vmatpush1.bf16.msra.mxu0 %v4490_v18  ;;  %1677 = vmatpush1.bf16.msra.mxu1 %v4491_v19  ;;  %v4533_v51 = vld [vmem:[#allocation6 + $0x168] ss:$16 sps:$4 sm:$0xff]   ;;  %v104_v52 = vmax.bf16 %v5264_v48, %v96_v47  ;;  %v4540_v58 = vld [vmem:[#allocation6 + $0x1a4] ss:$16 sps:$4 sm:$0xff]   ;;  %v4542_v59 = vld [vmem:[#allocation6 + $0x1ac] ss:$16 sps:$4 sm:$0xff]  }
  0x5f   :  { %1506 = vmatprep.subr.bf16.mxu0 %v4492_v20  ;;  %1678 = vmatprep.subr.bf16.mxu1 %v4494_v21  ;;  %v4539_v57 = vld [vmem:[#allocation6 + $0x188] ss:$16 sps:$4 sm:$0xff]   ;;  %v4544_v60 = vld [vmem:[#allocation6 + $0x1a0] ss:$16 sps:$4 sm:$0xff]   ;;  %v4546_v62 = vld [vmem:[#allocation6 + $0x1c4] ss:$16 sps:$4 sm:$0xff]  }
  0x60   :  { %v3873_v55 = vcombine.high %v100_v49, %v104_v52  ;;  %v4545_v61 = vld [vmem:[#allocation6 + $0x1a8] ss:$16 sps:$4 sm:$0xff]   ;;  %v4548_v63 = vld [vmem:[#allocation6 + $0x1cc] ss:$16 sps:$4 sm:$0xff]   ;;  %v4550_v0 = vld [vmem:[#allocation6 + $0x1c0] ss:$16 sps:$4 sm:$0xff]   ;;  %v3872_v8 = vcombine.low %v100_v49, %v104_v52 }
  0x61   :  { %v4551_v1 = vld [vmem:[#allocation6 + $0x1c8] ss:$16 sps:$4 sm:$0xff]   ;;  %v4552_v2 = vld [vmem:[#allocation6 + $0x1e4] ss:$16 sps:$4 sm:$0xff]   ;;  %v4554_v3 = vld [vmem:[#allocation6 + $0x1ec] ss:$16 sps:$4 sm:$0xff]  }
  0x62   :  { %1507 = vmatpush1.bf16.msra.mxu0 %v4496_v22  ;;  %1679 = vmatpush1.bf16.msra.mxu1 %v4497_v23  ;;  %v4556_v4 = vld [vmem:[#allocation6 + $0x1e0] ss:$16 sps:$4 sm:$0xff]   ;;  %v4557_v5 = vld [vmem:[#allocation6 + $0x1e8] ss:$16 sps:$4 sm:$0xff]   ;;  %v4560_v6 = vld [vmem:[#allocation6 + $0x204] ss:$16 sps:$4 sm:$0xff]  }
  0x63   :  { %1508 = vmatprep.subr.bf16.mxu0 %v4498_v24  ;;  %1680 = vmatprep.subr.bf16.mxu1 %v4500_v25  ;;  %v4563_v7 = vld [vmem:[#allocation6 + $0x20c] ss:$16 sps:$4 sm:$0xff]   ;;  %v4558_v9 = vld [vmem:[#allocation6 + $0x200] ss:$16 sps:$4 sm:$0xff]   ;;  %v4561_v10 = vld [vmem:[#allocation6 + $0x208] ss:$16 sps:$4 sm:$0xff]  }
  0x64   :  { %1528 = vmatprep.mubr.bf16.mxu0 %v3873_v55  ;;  %1700 = vmatprep.mubr.bf16.mxu1 %v3873_v55  ;;  %v4566_v11 = vld [vmem:[#allocation6 + $0x224] ss:$16 sps:$4 sm:$0xff]   ;;  %v4569_v12 = vld [vmem:[#allocation6 + $0x22c] ss:$16 sps:$4 sm:$0xff]   ;;  %v4564_v13 = vld [vmem:[#allocation6 + $0x220] ss:$16 sps:$4 sm:$0xff]  }
  0x65   :  { %v4567_v14 = vld [vmem:[#allocation6 + $0x228] ss:$16 sps:$4 sm:$0xff]   ;;  %v4572_v15 = vld [vmem:[#allocation6 + $0x244] ss:$16 sps:$4 sm:$0xff]   ;;  %v4575_v16 = vld [vmem:[#allocation6 + $0x24c] ss:$16 sps:$4 sm:$0xff]  }
  0x66   :  { %1509 = vmatpush1.bf16.msra.mxu0 %v4502_v26  ;;  %1681 = vmatpush1.bf16.msra.mxu1 %v4503_v27  ;;  %v4570_v17 = vld [vmem:[#allocation6 + $0x240] ss:$16 sps:$4 sm:$0xff]   ;;  %v4573_v18 = vld [vmem:[#allocation6 + $0x248] ss:$16 sps:$4 sm:$0xff]   ;;  %v4578_v19 = vld [vmem:[#allocation6 + $0x264] ss:$16 sps:$4 sm:$0xff]  }
  0x67   :  { %1510 = vmatprep.subr.bf16.mxu0 %v4504_v28  ;;  %1682 = vmatprep.subr.bf16.mxu1 %v4506_v29  ;;  %v4581_v20 = vld [vmem:[#allocation6 + $0x26c] ss:$16 sps:$4 sm:$0xff]   ;;  %v4576_v21 = vld [vmem:[#allocation6 + $0x260] ss:$16 sps:$4 sm:$0xff]   ;;  %v4579_v22 = vld [vmem:[#allocation6 + $0x268] ss:$16 sps:$4 sm:$0xff]  }
  0x68   :  { %v4584_v23 = vld [vmem:[#allocation6 + $0x284] ss:$16 sps:$4 sm:$0xff]   ;;  %v4587_v24 = vld [vmem:[#allocation6 + $0x28c] ss:$16 sps:$4 sm:$0xff]   ;;  %v4582_v25 = vld [vmem:[#allocation6 + $0x280] ss:$16 sps:$4 sm:$0xff]  }
  0x69   :  { %v4585_v26 = vld [vmem:[#allocation6 + $0x288] ss:$16 sps:$4 sm:$0xff]   ;;  %v4590_v27 = vld [vmem:[#allocation6 + $0x2a4] ss:$16 sps:$4 sm:$0xff]   ;;  %v4593_v28 = vld [vmem:[#allocation6 + $0x2ac] ss:$16 sps:$4 sm:$0xff]  }
  0x6a   :  { %1511 = vmatpush1.bf16.msra.mxu0 %v4508_v30  ;;  %1683 = vmatpush1.bf16.msra.mxu1 %v4509_v31  ;;  %v4588_v29 = vld [vmem:[#allocation6 + $0x2a0] ss:$16 sps:$4 sm:$0xff]   ;;  %v4591_v30 = vld [vmem:[#allocation6 + $0x2a8] ss:$16 sps:$4 sm:$0xff]   ;;  %v4596_v31 = vld [vmem:[#allocation6 + $0x2c4] ss:$16 sps:$4 sm:$0xff]  }
  0x6b   :  { %1512 = vmatprep.subr.bf16.mxu0 %v4510_v32  ;;  %1684 = vmatprep.subr.bf16.mxu1 %v4512_v33  ;;  %v4599_v32 = vld [vmem:[#allocation6 + $0x2cc] ss:$16 sps:$4 sm:$0xff]   ;;  %v93_v33 = vld [vmem:[#allocation3 + $0x8] sm:$0xff]  ;;  %v4609_v47 = vld [vmem:[#allocation6 + $0x308] ss:$16 sps:$4 sm:$0xff]  }
  0x6c   :  { %v4606_v46 = vld [vmem:[#allocation6 + $0x300] ss:$16 sps:$4 sm:$0xff]   ;;  %v4614_v49 = vld [vmem:[#allocation6 + $0x324] ss:$16 sps:$4 sm:$0xff]   ;;  %v4615_v52 = vld [vmem:[#allocation6 + $0x328] ss:$16 sps:$4 sm:$0xff]  }
  0x6d   :  { %v4618_v55 = vld [vmem:[#allocation6 + $0x340] ss:$16 sps:$4 sm:$0xff]  }
  0x6e   :  { %1513 = vmatpush1.bf16.msra.mxu0 %v4514_v34  ;;  %1685 = vmatpush1.bf16.msra.mxu1 %v4515_v35  ;;  %v97_v34 = vld [vmem:[#allocation3 + $0x24] sm:$0xff] }
  0x6f   :  { %1514 = vmatprep.subr.bf16.mxu0 %v4516_v36  ;;  %1686 = vmatprep.subr.bf16.mxu1 %v4518_v37  ;;  %v4594_v35 = vld [vmem:[#allocation6 + $0x2c0] ss:$16 sps:$4 sm:$0xff]   ;;  %v4597_v36 = vld [vmem:[#allocation6 + $0x2c8] ss:$16 sps:$4 sm:$0xff]   ;;  %v5354_v37 = vmax.bf16 %v5264_v48, %v93_v33 }
  0x70   :  { %v4672_v33 = vld [vmem:[#allocation6 + $0x460] ss:$16 sps:$4 sm:$0xff]  }
  0x72   :  { %1515 = vmatpush1.bf16.msra.mxu0 %v4520_v38  ;;  %1687 = vmatpush1.bf16.msra.mxu1 %v4521_v39  ;;  %v5357_v38 = vmax.bf16 %v5264_v48, %v97_v34  ;;  %v4602_v39 = vld [vmem:[#allocation6 + $0x2e4] ss:$16 sps:$4 sm:$0xff]   ;;  %v4675_v34 = vld [vmem:[#allocation6 + $0x468] ss:$16 sps:$4 sm:$0xff]  }
  0x73   :  { %1516 = vmatprep.subr.bf16.mxu0 %v4522_v40  ;;  %1688 = vmatprep.subr.bf16.mxu1 %v4524_v41  ;;  %v4605_v40 = vld [vmem:[#allocation6 + $0x2ec] ss:$16 sps:$4 sm:$0xff]  }
  0x74   :  { %v3875_v41 = vcombine.high %v5354_v37, %v5357_v38 }
  0x76   :  { %1517 = vmatpush1.bf16.msra.mxu0 %v4526_v42  ;;  %1689 = vmatpush1.bf16.msra.mxu1 %v4527_v43  ;;  %v4600_v42 = vld [vmem:[#allocation6 + $0x2e0] ss:$16 sps:$4 sm:$0xff]   ;;  %v4603_v43 = vld [vmem:[#allocation6 + $0x2e8] ss:$16 sps:$4 sm:$0xff]  }
  0x77   :  { %1518 = vmatprep.subr.bf16.mxu0 %v4528_v44  ;;  %1690 = vmatprep.subr.bf16.mxu1 %v4530_v45  ;;  %v4608_v44 = vld [vmem:[#allocation6 + $0x304] ss:$16 sps:$4 sm:$0xff]   ;;  %v4611_v45 = vld [vmem:[#allocation6 + $0x30c] ss:$16 sps:$4 sm:$0xff]  }
  0x7a   :  { %1519 = vmatpush1.bf16.msra.mxu0 %v4532_v50  ;;  %1691 = vmatpush1.bf16.msra.mxu1 %v4533_v51  ;;  %v4617_v50 = vld [vmem:[#allocation6 + $0x32c] ss:$16 sps:$4 sm:$0xff]   ;;  %v4612_v51 = vld [vmem:[#allocation6 + $0x320] ss:$16 sps:$4 sm:$0xff]  }
  0x7b   :  { %1520 = vmatprep.subr.bf16.mxu0 %v4534_v53  ;;  %1692 = vmatprep.subr.bf16.mxu1 %v4536_v54  ;;  %v4620_v53 = vld [vmem:[#allocation6 + $0x344] ss:$16 sps:$4 sm:$0xff]   ;;  %v4623_v54 = vld [vmem:[#allocation6 + $0x34c] ss:$16 sps:$4 sm:$0xff]  }
  0x7e   :  { %1521 = vmatpush1.bf16.msra.mxu0 %v4538_v56  ;;  %1693 = vmatpush1.bf16.msra.mxu1 %v4539_v57  ;;  %v4621_v56 = vld [vmem:[#allocation6 + $0x348] ss:$16 sps:$4 sm:$0xff]   ;;  %v4626_v57 = vld [vmem:[#allocation6 + $0x364] ss:$16 sps:$4 sm:$0xff]  }
  0x7f   :  { %1522 = vmatprep.subr.bf16.mxu0 %v4540_v58  ;;  %1694 = vmatprep.subr.bf16.mxu1 %v4542_v59  ;;  %v4629_v58 = vld [vmem:[#allocation6 + $0x36c] ss:$16 sps:$4 sm:$0xff]   ;;  %v4624_v59 = vld [vmem:[#allocation6 + $0x360] ss:$16 sps:$4 sm:$0xff]  }
  0x82   :  { %1523 = vmatpush1.bf16.msra.mxu0 %v4544_v60  ;;  %1695 = vmatpush1.bf16.msra.mxu1 %v4545_v61  ;;  %v4627_v60 = vld [vmem:[#allocation6 + $0x368] ss:$16 sps:$4 sm:$0xff]   ;;  %v4632_v61 = vld [vmem:[#allocation6 + $0x384] ss:$16 sps:$4 sm:$0xff]  }
  0x83   :  { %1524 = vmatprep.subr.bf16.mxu0 %v4546_v62  ;;  %1696 = vmatprep.subr.bf16.mxu1 %v4548_v63  ;;  %v4635_v62 = vld [vmem:[#allocation6 + $0x38c] ss:$16 sps:$4 sm:$0xff]   ;;  %v4630_v63 = vld [vmem:[#allocation6 + $0x380] ss:$16 sps:$4 sm:$0xff]  }
  0x86   :  { %1525 = vmatpush1.bf16.msra.mxu0 %v4550_v0  ;;  %1697 = vmatpush1.bf16.msra.mxu1 %v4551_v1  ;;  %v4633_v0 = vld [vmem:[#allocation6 + $0x388] ss:$16 sps:$4 sm:$0xff]   ;;  %v4638_v1 = vld [vmem:[#allocation6 + $0x3a4] ss:$16 sps:$4 sm:$0xff]  }
  0x87   :  { %1526 = vmatprep.subr.bf16.mxu0 %v4552_v2  ;;  %1698 = vmatprep.subr.bf16.mxu1 %v4554_v3  ;;  %v4641_v2 = vld [vmem:[#allocation6 + $0x3ac] ss:$16 sps:$4 sm:$0xff]   ;;  %v4636_v3 = vld [vmem:[#allocation6 + $0x3a0] ss:$16 sps:$4 sm:$0xff]  }
  0x8a   :  { %1527 = vmatpush1.bf16.msra.mxu0 %v4556_v4  ;;  %1699 = vmatpush1.bf16.msra.mxu1 %v4557_v5  ;;  %v4639_v4 = vld [vmem:[#allocation6 + $0x3a8] ss:$16 sps:$4 sm:$0xff]   ;;  %v4644_v5 = vld [vmem:[#allocation6 + $0x3c4] ss:$16 sps:$4 sm:$0xff]  }
  0x8b   :  { %1539 = vmatprep.subr.bf16.mxu0 %v4560_v6  ;;  %1711 = vmatprep.subr.bf16.mxu1 %v4563_v7  ;;  %v4647_v6 = vld [vmem:[#allocation6 + $0x3cc] ss:$16 sps:$4 sm:$0xff]   ;;  %v4642_v7 = vld [vmem:[#allocation6 + $0x3c0] ss:$16 sps:$4 sm:$0xff]  }
  0x8d   :  { %1529 = vmatmul.mubr.bf16.vlgmr.msra.gmra.mrb[0].mxu0 %v3872_v8  ;;  %1701 = vmatmul.mubr.bf16.vlgmr.msra.gmra.mrb[0].mxu1 %v3872_v8  ;;  %v4645_v8 = vld [vmem:[#allocation6 + $0x3c8] ss:$16 sps:$4 sm:$0xff]  }
  0x8e   :  { %1540 = vmatpush1.bf16.msra.mxu0 %v4558_v9  ;;  %1712 = vmatpush1.bf16.msra.mxu1 %v4561_v10  ;;  %v4650_v9 = vld [vmem:[#allocation6 + $0x3e4] ss:$16 sps:$4 sm:$0xff]   ;;  %v4653_v10 = vld [vmem:[#allocation6 + $0x3ec] ss:$16 sps:$4 sm:$0xff]  }
  0x8f   :  { %1541 = vmatprep.subr.bf16.mxu0 %v4566_v11  ;;  %1713 = vmatprep.subr.bf16.mxu1 %v4569_v12  ;;  %v4648_v11 = vld [vmem:[#allocation6 + $0x3e0] ss:$16 sps:$4 sm:$0xff]   ;;  %v4651_v12 = vld [vmem:[#allocation6 + $0x3e8] ss:$16 sps:$4 sm:$0xff]  }
  0x90   :  { %1571 = vmatprep.mubr.bf16.mxu0 %v3875_v41  ;;  %1743 = vmatprep.mubr.bf16.mxu1 %v3875_v41  ;;  %v4684_v41 = vld [vmem:[#allocation6 + $0x4a0] ss:$16 sps:$4 sm:$0xff]  }
  0x92   :  { %1542 = vmatpush1.bf16.msra.mxu0 %v4564_v13  ;;  %1714 = vmatpush1.bf16.msra.mxu1 %v4567_v14  ;;  %v4656_v13 = vld [vmem:[#allocation6 + $0x404] ss:$16 sps:$4 sm:$0xff]   ;;  %v4659_v14 = vld [vmem:[#allocation6 + $0x40c] ss:$16 sps:$4 sm:$0xff]  }
  0x93   :  { %1543 = vmatprep.subr.bf16.mxu0 %v4572_v15  ;;  %1715 = vmatprep.subr.bf16.mxu1 %v4575_v16  ;;  %v4654_v15 = vld [vmem:[#allocation6 + $0x400] ss:$16 sps:$4 sm:$0xff]   ;;  %v4657_v16 = vld [vmem:[#allocation6 + $0x408] ss:$16 sps:$4 sm:$0xff]  }
  0x96   :  { %1544 = vmatpush1.bf16.msra.mxu0 %v4570_v17  ;;  %1716 = vmatpush1.bf16.msra.mxu1 %v4573_v18  ;;  %v3874_v17 = vcombine.low %v5354_v37, %v5357_v38  ;;  %v4662_v18 = vld [vmem:[#allocation6 + $0x424] ss:$16 sps:$4 sm:$0xff]   ;;  %v4678_v37 = vld [vmem:[#allocation6 + $0x480] ss:$16 sps:$4 sm:$0xff]   ;;  %v4681_v38 = vld [vmem:[#allocation6 + $0x488] ss:$16 sps:$4 sm:$0xff]  }
  0x97   :  { %1545 = vmatprep.subr.bf16.mxu0 %v4578_v19  ;;  %1717 = vmatprep.subr.bf16.mxu1 %v4581_v20  ;;  %v4665_v19 = vld [vmem:[#allocation6 + $0x42c] ss:$16 sps:$4 sm:$0xff]  }
  0x98   :  { %v94_v20 = vld [vmem:[#allocation3 + $0x10] sm:$0xff] }
  0x9a   :  { %1546 = vmatpush1.bf16.msra.mxu0 %v4576_v21  ;;  %1718 = vmatpush1.bf16.msra.mxu1 %v4579_v22  ;;  %v98_v21 = vld [vmem:[#allocation3 + $0x2c] sm:$0xff]  ;;  %v5364_v22 = vmax.bf16 %v5264_v48, %v94_v20 }
  0x9b   :  { %1547 = vmatprep.subr.bf16.mxu0 %v4584_v23  ;;  %1719 = vmatprep.subr.bf16.mxu1 %v4587_v24  ;;  %v5367_v23 = vmax.bf16 %v5264_v48, %v98_v21  ;;  %v4660_v24 = vld [vmem:[#allocation6 + $0x420] ss:$16 sps:$4 sm:$0xff]   ;;  %v4752_v20 = vld [vmem:[#allocation6 + $0x604] ss:$16 sps:$4 sm:$0xff]   ;;  %v4755_v21 = vld [vmem:[#allocation6 + $0x60c] ss:$16 sps:$4 sm:$0xff]  }
  0x9e   :  { %1548 = vmatpush1.bf16.msra.mxu0 %v4582_v25  ;;  %1720 = vmatpush1.bf16.msra.mxu1 %v4585_v26  ;;  %v4663_v25 = vld [vmem:[#allocation6 + $0x428] ss:$16 sps:$4 sm:$0xff]   ;;  %v3877_v26 = vcombine.high %v5364_v22, %v5367_v23 }
  0x9f   :  { %1549 = vmatprep.subr.bf16.mxu0 %v4590_v27  ;;  %1721 = vmatprep.subr.bf16.mxu1 %v4593_v28  ;;  %v4668_v27 = vld [vmem:[#allocation6 + $0x444] ss:$16 sps:$4 sm:$0xff]   ;;  %v4671_v28 = vld [vmem:[#allocation6 + $0x44c] ss:$16 sps:$4 sm:$0xff]  }
  0xa2   :  { %1550 = vmatpush1.bf16.msra.mxu0 %v4588_v29  ;;  %1722 = vmatpush1.bf16.msra.mxu1 %v4591_v30  ;;  %v4666_v29 = vld [vmem:[#allocation6 + $0x440] ss:$16 sps:$4 sm:$0xff]   ;;  %v4669_v30 = vld [vmem:[#allocation6 + $0x448] ss:$16 sps:$4 sm:$0xff]  }
  0xa3   :  { %1551 = vmatprep.subr.bf16.mxu0 %v4596_v31  ;;  %1723 = vmatprep.subr.bf16.mxu1 %v4599_v32  ;;  %v4674_v31 = vld [vmem:[#allocation6 + $0x464] ss:$16 sps:$4 sm:$0xff]   ;;  %v4677_v32 = vld [vmem:[#allocation6 + $0x46c] ss:$16 sps:$4 sm:$0xff]  }
  0xa6   :  { %1552 = vmatpush1.bf16.msra.mxu0 %v4594_v35  ;;  %1724 = vmatpush1.bf16.msra.mxu1 %v4597_v36  ;;  %v4680_v35 = vld [vmem:[#allocation6 + $0x484] ss:$16 sps:$4 sm:$0xff]   ;;  %v4683_v36 = vld [vmem:[#allocation6 + $0x48c] ss:$16 sps:$4 sm:$0xff]  }
  0xa7   :  { %1553 = vmatprep.subr.bf16.mxu0 %v4602_v39  ;;  %1725 = vmatprep.subr.bf16.mxu1 %v4605_v40  ;;  %v4686_v39 = vld [vmem:[#allocation6 + $0x4a4] ss:$16 sps:$4 sm:$0xff]   ;;  %v4689_v40 = vld [vmem:[#allocation6 + $0x4ac] ss:$16 sps:$4 sm:$0xff]  }
  0xaa   :  { %1554 = vmatpush1.bf16.msra.mxu0 %v4600_v42  ;;  %1726 = vmatpush1.bf16.msra.mxu1 %v4603_v43  ;;  %v4687_v42 = vld [vmem:[#allocation6 + $0x4a8] ss:$16 sps:$4 sm:$0xff]   ;;  %v4692_v43 = vld [vmem:[#allocation6 + $0x4c4] ss:$16 sps:$4 sm:$0xff]  }
  0xab   :  { %1555 = vmatprep.subr.bf16.mxu0 %v4608_v44  ;;  %1727 = vmatprep.subr.bf16.mxu1 %v4611_v45  ;;  %v4695_v44 = vld [vmem:[#allocation6 + $0x4cc] ss:$16 sps:$4 sm:$0xff]   ;;  %v4690_v45 = vld [vmem:[#allocation6 + $0x4c0] ss:$16 sps:$4 sm:$0xff]  }
  0xae   :  { %1556 = vmatpush1.bf16.msra.mxu0 %v4606_v46  ;;  %1728 = vmatpush1.bf16.msra.mxu1 %v4609_v47  ;;  %v4693_v46 = vld [vmem:[#allocation6 + $0x4c8] ss:$16 sps:$4 sm:$0xff]   ;;  %v4698_v47 = vld [vmem:[#allocation6 + $0x4e4] ss:$16 sps:$4 sm:$0xff]  }
  0xaf   :  { %1557 = vmatprep.subr.bf16.mxu0 %v4614_v49  ;;  %1729 = vmatprep.subr.bf16.mxu1 %v4617_v50  ;;  %v4701_v49 = vld [vmem:[#allocation6 + $0x4ec] ss:$16 sps:$4 sm:$0xff]   ;;  %v4696_v50 = vld [vmem:[#allocation6 + $0x4e0] ss:$16 sps:$4 sm:$0xff]  }
  0xb2   :  { %1558 = vmatpush1.bf16.msra.mxu0 %v4612_v51  ;;  %1730 = vmatpush1.bf16.msra.mxu1 %v4615_v52  ;;  %v4699_v51 = vld [vmem:[#allocation6 + $0x4e8] ss:$16 sps:$4 sm:$0xff]   ;;  %v4704_v52 = vld [vmem:[#allocation6 + $0x504] ss:$16 sps:$4 sm:$0xff]  }
  0xb3   :  { %1559 = vmatprep.subr.bf16.mxu0 %v4620_v53  ;;  %1731 = vmatprep.subr.bf16.mxu1 %v4623_v54  ;;  %v4707_v53 = vld [vmem:[#allocation6 + $0x50c] ss:$16 sps:$4 sm:$0xff]   ;;  %v4702_v54 = vld [vmem:[#allocation6 + $0x500] ss:$16 sps:$4 sm:$0xff]  }
  0xb6   :  { %1560 = vmatpush1.bf16.msra.mxu0 %v4618_v55  ;;  %1732 = vmatpush1.bf16.msra.mxu1 %v4621_v56  ;;  %v4705_v55 = vld [vmem:[#allocation6 + $0x508] ss:$16 sps:$4 sm:$0xff]   ;;  %v4710_v56 = vld [vmem:[#allocation6 + $0x524] ss:$16 sps:$4 sm:$0xff]  }
  0xb7   :  { %1561 = vmatprep.subr.bf16.mxu0 %v4626_v57  ;;  %1733 = vmatprep.subr.bf16.mxu1 %v4629_v58  ;;  %v4713_v57 = vld [vmem:[#allocation6 + $0x52c] ss:$16 sps:$4 sm:$0xff]   ;;  %v4708_v58 = vld [vmem:[#allocation6 + $0x520] ss:$16 sps:$4 sm:$0xff]  }
  0xba   :  { %1562 = vmatpush1.bf16.msra.mxu0 %v4624_v59  ;;  %1734 = vmatpush1.bf16.msra.mxu1 %v4627_v60  ;;  %v4711_v59 = vld [vmem:[#allocation6 + $0x528] ss:$16 sps:$4 sm:$0xff]   ;;  %v4716_v60 = vld [vmem:[#allocation6 + $0x544] ss:$16 sps:$4 sm:$0xff]  }
  0xbb   :  { %1563 = vmatprep.subr.bf16.mxu0 %v4632_v61  ;;  %1735 = vmatprep.subr.bf16.mxu1 %v4635_v62  ;;  %v4719_v61 = vld [vmem:[#allocation6 + $0x54c] ss:$16 sps:$4 sm:$0xff]   ;;  %v4714_v62 = vld [vmem:[#allocation6 + $0x540] ss:$16 sps:$4 sm:$0xff]  }
  0xbe   :  { %1564 = vmatpush1.bf16.msra.mxu0 %v4630_v63  ;;  %1736 = vmatpush1.bf16.msra.mxu1 %v4633_v0  ;;  %v4717_v63 = vld [vmem:[#allocation6 + $0x548] ss:$16 sps:$4 sm:$0xff]   ;;  %v4722_v0 = vld [vmem:[#allocation6 + $0x564] ss:$16 sps:$4 sm:$0xff]  }
  0xbf   :  { %1565 = vmatprep.subr.bf16.mxu0 %v4638_v1  ;;  %1737 = vmatprep.subr.bf16.mxu1 %v4641_v2  ;;  %v4725_v1 = vld [vmem:[#allocation6 + $0x56c] ss:$16 sps:$4 sm:$0xff]   ;;  %v4720_v2 = vld [vmem:[#allocation6 + $0x560] ss:$16 sps:$4 sm:$0xff]  }
  0xc2   :  { %1566 = vmatpush1.bf16.msra.mxu0 %v4636_v3  ;;  %1738 = vmatpush1.bf16.msra.mxu1 %v4639_v4  ;;  %v4723_v3 = vld [vmem:[#allocation6 + $0x568] ss:$16 sps:$4 sm:$0xff]   ;;  %v4728_v4 = vld [vmem:[#allocation6 + $0x584] ss:$16 sps:$4 sm:$0xff]  }
  0xc3   :  { %1567 = vmatprep.subr.bf16.mxu0 %v4644_v5  ;;  %1739 = vmatprep.subr.bf16.mxu1 %v4647_v6  ;;  %v4731_v5 = vld [vmem:[#allocation6 + $0x58c] ss:$16 sps:$4 sm:$0xff]   ;;  %v4726_v6 = vld [vmem:[#allocation6 + $0x580] ss:$16 sps:$4 sm:$0xff]  }
  0xc6   :  { %1568 = vmatpush1.bf16.msra.mxu0 %v4642_v7  ;;  %1740 = vmatpush1.bf16.msra.mxu1 %v4645_v8  ;;  %v4729_v7 = vld [vmem:[#allocation6 + $0x588] ss:$16 sps:$4 sm:$0xff]   ;;  %v4734_v8 = vld [vmem:[#allocation6 + $0x5a4] ss:$16 sps:$4 sm:$0xff]  }
  0xc7   :  { %1569 = vmatprep.subr.bf16.mxu0 %v4650_v9  ;;  %1741 = vmatprep.subr.bf16.mxu1 %v4653_v10  ;;  %v4737_v9 = vld [vmem:[#allocation6 + $0x5ac] ss:$16 sps:$4 sm:$0xff]   ;;  %v4732_v10 = vld [vmem:[#allocation6 + $0x5a0] ss:$16 sps:$4 sm:$0xff]  }
  0xca   :  { %1570 = vmatpush1.bf16.msra.mxu0 %v4648_v11  ;;  %1742 = vmatpush1.bf16.msra.mxu1 %v4651_v12  ;;  %v4735_v11 = vld [vmem:[#allocation6 + $0x5a8] ss:$16 sps:$4 sm:$0xff]   ;;  %v4740_v12 = vld [vmem:[#allocation6 + $0x5c4] ss:$16 sps:$4 sm:$0xff]  }
  0xcb   :  { %1582 = vmatprep.subr.bf16.mxu0 %v4656_v13  ;;  %1754 = vmatprep.subr.bf16.mxu1 %v4659_v14  ;;  %v4743_v13 = vld [vmem:[#allocation6 + $0x5cc] ss:$16 sps:$4 sm:$0xff]   ;;  %v4738_v14 = vld [vmem:[#allocation6 + $0x5c0] ss:$16 sps:$4 sm:$0xff]  }
  0xcd   :  { %1572 = vmatmul.mubr.bf16.vlgmr.msra.gmra.mrb[0].mxu0 %v3874_v17  ;;  %1744 = vmatmul.mubr.bf16.vlgmr.msra.gmra.mrb[0].mxu1 %v3874_v17  ;;  %v4749_v17 = vld [vmem:[#allocation6 + $0x5ec] ss:$16 sps:$4 sm:$0xff]  }
  0xce   :  { %1583 = vmatpush1.bf16.msra.mxu0 %v4654_v15  ;;  %1755 = vmatpush1.bf16.msra.mxu1 %v4657_v16  ;;  %v4741_v15 = vld [vmem:[#allocation6 + $0x5c8] ss:$16 sps:$4 sm:$0xff]   ;;  %v4746_v16 = vld [vmem:[#allocation6 + $0x5e4] ss:$16 sps:$4 sm:$0xff]  }
  0xcf   :  { %1584 = vmatprep.subr.bf16.mxu0 %v4662_v18  ;;  %1756 = vmatprep.subr.bf16.mxu1 %v4665_v19  ;;  %v4744_v18 = vld [vmem:[#allocation6 + $0x5e0] ss:$16 sps:$4 sm:$0xff]   ;;  %v4747_v19 = vld [vmem:[#allocation6 + $0x5e8] ss:$16 sps:$4 sm:$0xff]  }
  0xd0   :  { %1614 = vmatprep.mubr.bf16.mxu0 %v3877_v26  ;;  %1786 = vmatprep.mubr.bf16.mxu1 %v3877_v26  ;;  %v3876_v26 = vcombine.low %v5364_v22, %v5367_v23  ;;  %v4770_v22 = vld [vmem:[#allocation6 + $0x664] ss:$16 sps:$4 sm:$0xff]   ;;  %v4773_v23 = vld [vmem:[#allocation6 + $0x66c] ss:$16 sps:$4 sm:$0xff]  }
  0xd2   :  { %1585 = vmatpush1.bf16.msra.mxu0 %v4660_v24  ;;  %1757 = vmatpush1.bf16.msra.mxu1 %v4663_v25  ;;  %v4750_v24 = vld [vmem:[#allocation6 + $0x600] ss:$16 sps:$4 sm:$0xff]   ;;  %v4753_v25 = vld [vmem:[#allocation6 + $0x608] ss:$16 sps:$4 sm:$0xff]  }
  0xd3   :  { %1586 = vmatprep.subr.bf16.mxu0 %v4668_v27  ;;  %1758 = vmatprep.subr.bf16.mxu1 %v4671_v28  ;;  %v4758_v27 = vld [vmem:[#allocation6 + $0x624] ss:$16 sps:$4 sm:$0xff]   ;;  %v4761_v28 = vld [vmem:[#allocation6 + $0x62c] ss:$16 sps:$4 sm:$0xff]  }
  0xd6   :  { %1587 = vmatpush1.bf16.msra.mxu0 %v4666_v29  ;;  %1759 = vmatpush1.bf16.msra.mxu1 %v4669_v30  ;;  %v4756_v29 = vld [vmem:[#allocation6 + $0x620] ss:$16 sps:$4 sm:$0xff]   ;;  %v4759_v30 = vld [vmem:[#allocation6 + $0x628] ss:$16 sps:$4 sm:$0xff]  }
  0xd7   :  { %1588 = vmatprep.subr.bf16.mxu0 %v4674_v31  ;;  %1760 = vmatprep.subr.bf16.mxu1 %v4677_v32  ;;  %v4764_v31 = vld [vmem:[#allocation6 + $0x644] ss:$16 sps:$4 sm:$0xff]   ;;  %v4767_v32 = vld [vmem:[#allocation6 + $0x64c] ss:$16 sps:$4 sm:$0xff]  }
  0xda   :  { %1589 = vmatpush1.bf16.msra.mxu0 %v4672_v33  ;;  %1761 = vmatpush1.bf16.msra.mxu1 %v4675_v34  ;;  %v4762_v33 = vld [vmem:[#allocation6 + $0x640] ss:$16 sps:$4 sm:$0xff]   ;;  %v4765_v34 = vld [vmem:[#allocation6 + $0x648] ss:$16 sps:$4 sm:$0xff]  }
  0xdb   :  { %1590 = vmatprep.subr.bf16.mxu0 %v4680_v35  ;;  %1762 = vmatprep.subr.bf16.mxu1 %v4683_v36  ;;  %v4768_v35 = vld [vmem:[#allocation6 + $0x660] ss:$16 sps:$4 sm:$0xff]   ;;  %v4771_v36 = vld [vmem:[#allocation6 + $0x668] ss:$16 sps:$4 sm:$0xff]  }
  0xde   :  { %1591 = vmatpush1.bf16.msra.mxu0 %v4678_v37  ;;  %1763 = vmatpush1.bf16.msra.mxu1 %v4681_v38  ;;  %v4776_v37 = vld [vmem:[#allocation6 + $0x684] ss:$16 sps:$4 sm:$0xff]   ;;  %v4779_v38 = vld [vmem:[#allocation6 + $0x68c] ss:$16 sps:$4 sm:$0xff]  }
  0xdf   :  { %1592 = vmatprep.subr.bf16.mxu0 %v4686_v39  ;;  %1764 = vmatprep.subr.bf16.mxu1 %v4689_v40  ;;  %v4774_v39 = vld [vmem:[#allocation6 + $0x680] ss:$16 sps:$4 sm:$0xff]   ;;  %v4777_v40 = vld [vmem:[#allocation6 + $0x688] ss:$16 sps:$4 sm:$0xff]  }
  0xe2   :  { %1593 = vmatpush1.bf16.msra.mxu0 %v4684_v41  ;;  %1765 = vmatpush1.bf16.msra.mxu1 %v4687_v42  ;;  %v4782_v41 = vld [vmem:[#allocation6 + $0x6a4] ss:$16 sps:$4 sm:$0xff]   ;;  %v4785_v42 = vld [vmem:[#allocation6 + $0x6ac] ss:$16 sps:$4 sm:$0xff]  }
  0xe3   :  { %1594 = vmatprep.subr.bf16.mxu0 %v4692_v43  ;;  %1766 = vmatprep.subr.bf16.mxu1 %v4695_v44  ;;  %v4780_v43 = vld [vmem:[#allocation6 + $0x6a0] ss:$16 sps:$4 sm:$0xff]   ;;  %v4783_v44 = vld [vmem:[#allocation6 + $0x6a8] ss:$16 sps:$4 sm:$0xff]  }
  0xe6   :  { %1595 = vmatpush1.bf16.msra.mxu0 %v4690_v45  ;;  %1767 = vmatpush1.bf16.msra.mxu1 %v4693_v46  ;;  %v4788_v45 = vld [vmem:[#allocation6 + $0x6c4] ss:$16 sps:$4 sm:$0xff]   ;;  %v4791_v46 = vld [vmem:[#allocation6 + $0x6cc] ss:$16 sps:$4 sm:$0xff]  }
  0xe7   :  { %1596 = vmatprep.subr.bf16.mxu0 %v4698_v47  ;;  %1768 = vmatprep.subr.bf16.mxu1 %v4701_v49  ;;  %v4786_v47 = vld [vmem:[#allocation6 + $0x6c0] ss:$16 sps:$4 sm:$0xff]   ;;  %v4789_v49 = vld [vmem:[#allocation6 + $0x6c8] ss:$16 sps:$4 sm:$0xff]  }
  0xea   :  { %1597 = vmatpush1.bf16.msra.mxu0 %v4696_v50  ;;  %1769 = vmatpush1.bf16.msra.mxu1 %v4699_v51  ;;  %v95_v50 = vld [vmem:[#allocation3 + $0x18] sm:$0xf]  ;;  %v99_v51 = vld [vmem:[#allocation3 + $0x34] sm:$0xf] }
  0xeb   :  { %1598 = vmatprep.subr.bf16.mxu0 %v4704_v52  ;;  %1770 = vmatprep.subr.bf16.mxu1 %v4707_v53  ;;  %v4794_v52 = vld [vmem:[#allocation6 + $0x6e4] ss:$16 sps:$4 sm:$0xff]   ;;  %v4797_v53 = vld [vmem:[#allocation6 + $0x6ec] ss:$16 sps:$4 sm:$0xff]  }
  0xee   :  { %1599 = vmatpush1.bf16.msra.mxu0 %v4702_v54  ;;  %1771 = vmatpush1.bf16.msra.mxu1 %v4705_v55  ;;  %v4792_v54 = vld [vmem:[#allocation6 + $0x6e0] ss:$16 sps:$4 sm:$0xff]   ;;  %v4795_v55 = vld [vmem:[#allocation6 + $0x6e8] ss:$16 sps:$4 sm:$0xff]  }
  0xef   :  { %1600 = vmatprep.subr.bf16.mxu0 %v4710_v56  ;;  %1772 = vmatprep.subr.bf16.mxu1 %v4713_v57  ;;  %v103_v56 = vmax.bf16 %v5264_v48, %v95_v50  ;;  %v107_v57 = vmax.bf16 %v5264_v48, %v99_v51  ;;  %v4879_v50 = vld [vmem:[#allocation8 + $0x278] ss:$24 sps:$4 sm:$0xff]   ;;  %v1869_v51 = vlaneseq }
  0xf2   :  { %1601 = vmatpush1.bf16.msra.mxu0 %v4708_v58  ;;  %1773 = vmatpush1.bf16.msra.mxu1 %v4711_v59  ;;  %v4800_v58 = vld [vmem:[#allocation8 + $0x4] ss:$24 sps:$4 sm:$0xff]  }
  0xf3   :  { %1602 = vmatprep.subr.bf16.mxu0 %v4716_v60  ;;  %1774 = vmatprep.subr.bf16.mxu1 %v4719_v61  ;;  %v4803_v59 = vld [vmem:[#allocation8 + $0xc] ss:$24 sps:$4 sm:$0xff]   ;;  %v4798_v60 = vld [vmem:[#allocation8] ss:$24 sps:$4 sm:$0xff]  }
  0xf4   :  { %v4801_v61 = vld [vmem:[#allocation8 + $0x8] ss:$24 sps:$4 sm:$0xff]  }
  0xf6   :  { %1603 = vmatpush1.bf16.msra.mxu0 %v4714_v62  ;;  %1775 = vmatpush1.bf16.msra.mxu1 %v4717_v63  ;;  %v3878_v62 = vcombine.low %v103_v56, %v107_v57  ;;  %v4806_v63 = vld [vmem:[#allocation8 + $0x34] ss:$24 sps:$4 sm:$0xff]   ;;  %v4884_v56 = vld [vmem:[#allocation8 + $0x2a4] ss:$24 sps:$4 sm:$0xff]  }
  0xf7   :  { %1604 = vmatprep.subr.bf16.mxu0 %v4722_v0  ;;  %1776 = vmatprep.subr.bf16.mxu1 %v4725_v1  ;;  %v4809_v0 = vld [vmem:[#allocation8 + $0x3c] ss:$24 sps:$4 sm:$0xff]   ;;  %v4804_v1 = vld [vmem:[#allocation8 + $0x30] ss:$24 sps:$4 sm:$0xff]   ;;  %v4887_v57 = vld [vmem:[#allocation8 + $0x2ac] ss:$24 sps:$4 sm:$0xff]  }
  0xfa   :  { %1605 = vmatpush1.bf16.msra.mxu0 %v4720_v2  ;;  %1777 = vmatpush1.bf16.msra.mxu1 %v4723_v3  ;;  %v4807_v2 = vld [vmem:[#allocation8 + $0x38] ss:$24 sps:$4 sm:$0xff]   ;;  %v4815_v3 = vld [vmem:[#allocation8 + $0x6c] ss:$24 sps:$4 sm:$0xff]  }
  0xfb   :  { %1606 = vmatprep.subr.bf16.mxu0 %v4728_v4  ;;  %1778 = vmatprep.subr.bf16.mxu1 %v4731_v5  ;;  %v4810_v4 = vld [vmem:[#allocation8 + $0x60] ss:$24 sps:$4 sm:$0xff]  }
  0xfc   :  { %v4813_v5 = vld [vmem:[#allocation8 + $0x68] ss:$24 sps:$4 sm:$0xff]  }
  0xfe   :  { %1607 = vmatpush1.bf16.msra.mxu0 %v4726_v6  ;;  %1779 = vmatpush1.bf16.msra.mxu1 %v4729_v7  ;;  %v4818_v6 = vld [vmem:[#allocation8 + $0x94] ss:$24 sps:$4 sm:$0xff]  }
  0xff   :  { %1608 = vmatprep.subr.bf16.mxu0 %v4734_v8  ;;  %1780 = vmatprep.subr.bf16.mxu1 %v4737_v9  ;;  %v4821_v7 = vld [vmem:[#allocation8 + $0x9c] ss:$24 sps:$4 sm:$0xff]   ;;  %v4816_v8 = vld [vmem:[#allocation8 + $0x90] ss:$24 sps:$4 sm:$0xff]  }
 0x100   :  { %v4819_v9 = vld [vmem:[#allocation8 + $0x98] ss:$24 sps:$4 sm:$0xff]  }
 0x102   :  { %1609 = vmatpush1.bf16.msra.mxu0 %v4732_v10  ;;  %1781 = vmatpush1.bf16.msra.mxu1 %v4735_v11  ;;  %v4824_v10 = vld [vmem:[#allocation8 + $0xc4] ss:$24 sps:$4 sm:$0xff]  }
 0x103   :  { %1610 = vmatprep.subr.bf16.mxu0 %v4740_v12  ;;  %1782 = vmatprep.subr.bf16.mxu1 %v4743_v13  ;;  %v4827_v11 = vld [vmem:[#allocation8 + $0xcc] ss:$24 sps:$4 sm:$0xff]   ;;  %v4822_v12 = vld [vmem:[#allocation8 + $0xc0] ss:$24 sps:$4 sm:$0xff]  }
 0x104   :  { %v4825_v13 = vld [vmem:[#allocation8 + $0xc8] ss:$24 sps:$4 sm:$0xff]  }
 0x106   :  { %1611 = vmatpush1.bf16.msra.mxu0 %v4738_v14  ;;  %1783 = vmatpush1.bf16.msra.mxu1 %v4741_v15  ;;  %v4830_v14 = vld [vmem:[#allocation8 + $0xf4] ss:$24 sps:$4 sm:$0xff]  }
 0x107   :  { %1612 = vmatprep.subr.bf16.mxu0 %v4746_v16  ;;  %1784 = vmatprep.subr.bf16.mxu1 %v4749_v17  ;;  %v4833_v15 = vld [vmem:[#allocation8 + $0xfc] ss:$24 sps:$4 sm:$0xff]   ;;  %v4828_v16 = vld [vmem:[#allocation8 + $0xf0] ss:$24 sps:$4 sm:$0xff]  }
 0x108   :  { %v4831_v17 = vld [vmem:[#allocation8 + $0xf8] ss:$24 sps:$4 sm:$0xff]  }
 0x10a   :  { %1613 = vmatpush1.bf16.msra.mxu0 %v4744_v18  ;;  %1785 = vmatpush1.bf16.msra.mxu1 %v4747_v19  ;;  %v4836_v18 = vld [vmem:[#allocation8 + $0x124] ss:$24 sps:$4 sm:$0xff]  }
 0x10b   :  { %1625 = vmatprep.subr.bf16.mxu0 %v4752_v20  ;;  %1797 = vmatprep.subr.bf16.mxu1 %v4755_v21  ;;  %v4839_v19 = vld [vmem:[#allocation8 + $0x12c] ss:$24 sps:$4 sm:$0xff]   ;;  %v4834_v20 = vld [vmem:[#allocation8 + $0x120] ss:$24 sps:$4 sm:$0xff]  }
 0x10c   :  { %v4837_v21 = vld [vmem:[#allocation8 + $0x128] ss:$24 sps:$4 sm:$0xff]  }
 0x10d   :  { %1615 = vmatmul.mubr.bf16.vlgmr.msra.gmra.mrb[0].mxu0 %v3876_v26  ;;  %1787 = vmatmul.mubr.bf16.vlgmr.msra.gmra.mrb[0].mxu1 %v3876_v26  ;;  %v4840_v26 = vld [vmem:[#allocation8 + $0x150] ss:$24 sps:$4 sm:$0xff]  }
 0x10e   :  { %1626 = vmatpush1.bf16.msra.mxu0 %v4750_v24  ;;  %1798 = vmatpush1.bf16.msra.mxu1 %v4753_v25  ;;  %v4842_v24 = vld [vmem:[#allocation8 + $0x154] ss:$24 sps:$4 sm:$0xff]  }
 0x10f   :  { %1627 = vmatprep.subr.bf16.mxu0 %v4758_v27  ;;  %1799 = vmatprep.subr.bf16.mxu1 %v4761_v28  ;;  %v4845_v25 = vld [vmem:[#allocation8 + $0x15c] ss:$24 sps:$4 sm:$0xff]   ;;  %v4843_v27 = vld [vmem:[#allocation8 + $0x158] ss:$24 sps:$4 sm:$0xff]  }
 0x110   :  { %1657 = vmatprep.mubr.bf16.mxu0 %v5264_v48  ;;  %1829 = vmatprep.mubr.bf16.mxu1 %v5264_v48  ;;  %v4812_v48 = vld [vmem:[#allocation8 + $0x64] ss:$24 sps:$4 sm:$0xff]  }
 0x111   :  { %v4848_v28 = vld [vmem:[#allocation8 + $0x184] ss:$24 sps:$4 sm:$0xff]  }
 0x112   :  { %1628 = vmatpush1.bf16.msra.mxu0 %v4756_v29  ;;  %1800 = vmatpush1.bf16.msra.mxu1 %v4759_v30  ;;  %v4851_v29 = vld [vmem:[#allocation8 + $0x18c] ss:$24 sps:$4 sm:$0xff]   ;;  %v4846_v30 = vld [vmem:[#allocation8 + $0x180] ss:$24 sps:$4 sm:$0xff]  }
 0x113   :  { %1629 = vmatprep.subr.bf16.mxu0 %v4764_v31  ;;  %1801 = vmatprep.subr.bf16.mxu1 %v4767_v32  ;;  %v4849_v31 = vld [vmem:[#allocation8 + $0x188] ss:$24 sps:$4 sm:$0xff]   ;;  %v4854_v32 = vld [vmem:[#allocation8 + $0x1b4] ss:$24 sps:$4 sm:$0xff]  }
 0x116   :  { %1630 = vmatpush1.bf16.msra.mxu0 %v4762_v33  ;;  %1802 = vmatpush1.bf16.msra.mxu1 %v4765_v34  ;;  %v4857_v33 = vld [vmem:[#allocation8 + $0x1bc] ss:$24 sps:$4 sm:$0xff]   ;;  %v4852_v34 = vld [vmem:[#allocation8 + $0x1b0] ss:$24 sps:$4 sm:$0xff]  }
 0x117   :  { %1631 = vmatprep.subr.bf16.mxu0 %v4770_v22  ;;  %1803 = vmatprep.subr.bf16.mxu1 %v4773_v23  ;;  %v4855_v22 = vld [vmem:[#allocation8 + $0x1b8] ss:$24 sps:$4 sm:$0xff]   ;;  %v4860_v23 = vld [vmem:[#allocation8 + $0x1e4] ss:$24 sps:$4 sm:$0xff]  }
 0x11a   :  { %1632 = vmatpush1.bf16.msra.mxu0 %v4768_v35  ;;  %1804 = vmatpush1.bf16.msra.mxu1 %v4771_v36  ;;  %v4863_v35 = vld [vmem:[#allocation8 + $0x1ec] ss:$24 sps:$4 sm:$0xff]   ;;  %v4858_v36 = vld [vmem:[#allocation8 + $0x1e0] ss:$24 sps:$4 sm:$0xff]  }
 0x11b   :  { %1633 = vmatprep.subr.bf16.mxu0 %v4776_v37  ;;  %1805 = vmatprep.subr.bf16.mxu1 %v4779_v38  ;;  %v4861_v37 = vld [vmem:[#allocation8 + $0x1e8] ss:$24 sps:$4 sm:$0xff]   ;;  %v4866_v38 = vld [vmem:[#allocation8 + $0x214] ss:$24 sps:$4 sm:$0xff]  }
 0x11e   :  { %1634 = vmatpush1.bf16.msra.mxu0 %v4774_v39  ;;  %1806 = vmatpush1.bf16.msra.mxu1 %v4777_v40  ;;  %v4869_v39 = vld [vmem:[#allocation8 + $0x21c] ss:$24 sps:$4 sm:$0xff]   ;;  %v4864_v40 = vld [vmem:[#allocation8 + $0x210] ss:$24 sps:$4 sm:$0xff]  }
 0x11f   :  { %1635 = vmatprep.subr.bf16.mxu0 %v4782_v41  ;;  %1807 = vmatprep.subr.bf16.mxu1 %v4785_v42  ;;  %v4867_v41 = vld [vmem:[#allocation8 + $0x218] ss:$24 sps:$4 sm:$0xff]   ;;  %v4872_v42 = vld [vmem:[#allocation8 + $0x244] ss:$24 sps:$4 sm:$0xff]  }
 0x122   :  { %1636 = vmatpush1.bf16.msra.mxu0 %v4780_v43  ;;  %1808 = vmatpush1.bf16.msra.mxu1 %v4783_v44  ;;  %v4875_v43 = vld [vmem:[#allocation8 + $0x24c] ss:$24 sps:$4 sm:$0xff]   ;;  %v4870_v44 = vld [vmem:[#allocation8 + $0x240] ss:$24 sps:$4 sm:$0xff]  }
 0x123   :  { %1637 = vmatprep.subr.bf16.mxu0 %v4788_v45  ;;  %1809 = vmatprep.subr.bf16.mxu1 %v4791_v46  ;;  %v4873_v45 = vld [vmem:[#allocation8 + $0x248] ss:$24 sps:$4 sm:$0xff]   ;;  %v4878_v46 = vld [vmem:[#allocation8 + $0x274] ss:$24 sps:$4 sm:$0xff]  }
 0x126   :  { %1638 = vmatpush1.bf16.msra.mxu0 %v4786_v47  ;;  %1810 = vmatpush1.bf16.msra.mxu1 %v4789_v49  ;;  %v4881_v47 = vld [vmem:[#allocation8 + $0x27c] ss:$24 sps:$4 sm:$0xff]   ;;  %v4876_v49 = vld [vmem:[#allocation8 + $0x270] ss:$24 sps:$4 sm:$0xff]  }
 0x127   :  { %1639 = vmatprep.subr.bf16.mxu0 %v4794_v52  ;;  %1811 = vmatprep.subr.bf16.mxu1 %v4797_v53  ;;  %v1870_v52 = vshrl.u32 %v1869_v51, 7  ;;  %v4923_v51 = vld [vmem:[#allocation8 + $0x3cc] ss:$24 sps:$4 sm:$0xff]  }
 0x129   :  { %v1879_v53 = vsub.s32 2, %v1870_v52 }
 0x12a   :  { %1640 = vmatpush1.bf16.msra.mxu0 %v4792_v54  ;;  %1812 = vmatpush1.bf16.msra.mxu1 %v4795_v55  ;;  %v1867_v54 = vld [vmem:[%s5417_s2] sm:$0xf] }
 0x12b   :  { %3061 = vmatprep.subr.bf16.mxu0 %v4800_v58  ;;  %3147 = vmatprep.subr.bf16.mxu1 %v4803_v59  ;;  %v1880_v55 = vrot.slane %v1867_v54, %v1879_v53  ;;  %v4882_v58 = vld [vmem:[#allocation8 + $0x2a0] ss:$24 sps:$4 sm:$0xff]  }
 0x12c   :  { %v4885_v59 = vld [vmem:[#allocation8 + $0x2a8] ss:$24 sps:$4 sm:$0xff]  }
 0x12d   :  { %1658 = vmatmul.mubr.bf16.vlgmr.msra.gmra.mrb[0].mxu0 %v3878_v62  ;;  %1830 = vmatmul.mubr.bf16.vlgmr.msra.gmra.mrb[0].mxu1 %v3878_v62  ;;  %v4888_v62 = vld [vmem:[#allocation8 + $0x2d0] ss:$24 sps:$4 sm:$0xff]  }
 0x12e   :  { %3062 = vmatpush1.bf16.msra.mxu0 %v4798_v60  ;;  %3148 = vmatpush1.bf16.msra.mxu1 %v4801_v61  ;;  %v4890_v60 = vld [vmem:[#allocation8 + $0x2d4] ss:$24 sps:$4 sm:$0xff]   ;;  %v4921_v53 = vld [vmem:[#allocation8 + $0x3c8] ss:$24 sps:$4 sm:$0xff]  }
 0x12f   :  { %3063 = vmatprep.subr.bf16.mxu0 %v4806_v63  ;;  %3149 = vmatprep.subr.bf16.mxu1 %v4809_v0  ;;  %v4893_v61 = vld [vmem:[#allocation8 + $0x2dc] ss:$24 sps:$4 sm:$0xff]   ;;  %v4891_v63 = vld [vmem:[#allocation8 + $0x2d8] ss:$24 sps:$4 sm:$0xff]  }
 0x130   :  { %v4896_v0 = vld [vmem:[#allocation8 + $0x304] ss:$24 sps:$4 sm:$0xff]  }
 0x132   :  { %3064 = vmatpush1.bf16.msra.mxu0 %v4804_v1  ;;  %3150 = vmatpush1.bf16.msra.mxu1 %v4807_v2  ;;  %v4899_v1 = vld [vmem:[#allocation8 + $0x30c] ss:$24 sps:$4 sm:$0xff]   ;;  %v1871_v2 = vsub.s32 0, %v1870_v52 }
 0x133   :  { %3065 = vmatprep.subr.bf16.mxu0 %v4812_v48  ;;  %3151 = vmatprep.subr.bf16.mxu1 %v4815_v3  ;;  %v1875_v48 = vsub.s32 1, %v1870_v52  ;;  %v1883_v3 = vsub.s32 3, %v1870_v52  ;;  %v4918_v52 = vld [vmem:[#allocation8 + $0x3c0] ss:$24 sps:$4 sm:$0xff]  }
 0x136   :  { %3066 = vmatpush1.bf16.msra.mxu0 %v4810_v4  ;;  %3152 = vmatpush1.bf16.msra.mxu1 %v4813_v5  ;;  %v1872_v4 = vrot.slane %v1867_v54, %v1871_v2  ;;  %v1876_v5 = vrot.slane %v1867_v54, %v1875_v48  ;;  %v4944_v2 = vld [vmem:[#allocation8 + $0x484] ss:$24 sps:$4 sm:$0xff]  }
 0x137   :  { %3067 = vmatprep.subr.bf16.mxu0 %v4818_v6  ;;  %3153 = vmatprep.subr.bf16.mxu1 %v4821_v7  ;;  %v1884_v6 = vrot.slane %v1867_v54, %v1883_v3  ;;  %v4926_v54 = vld [vmem:[#allocation8 + $0x3f4] ss:$24 sps:$4 sm:$0xff]   ;;  %v4942_v3 = vld [vmem:[#allocation8 + $0x480] ss:$24 sps:$4 sm:$0xff]  }
 0x138   :  { %v4947_v48 = vld [vmem:[#allocation8 + $0x48c] ss:$24 sps:$4 sm:$0xff]  }
 0x13a   :  { %3068 = vmatpush1.bf16.msra.mxu0 %v4816_v8  ;;  %3154 = vmatpush1.bf16.msra.mxu1 %v4819_v9 }
 0x13b   :  { %3069 = vmatprep.subr.bf16.mxu0 %v4824_v10  ;;  %3155 = vmatprep.subr.bf16.mxu1 %v4827_v11 }
 0x13e   :  { %3070 = vmatpush1.bf16.msra.mxu0 %v4822_v12  ;;  %3156 = vmatpush1.bf16.msra.mxu1 %v4825_v13 }
 0x13f   :  { %3071 = vmatprep.subr.bf16.mxu0 %v4830_v14  ;;  %3157 = vmatprep.subr.bf16.mxu1 %v4833_v15 }
 0x142   :  { %3072 = vmatpush1.bf16.msra.mxu0 %v4828_v16  ;;  %3158 = vmatpush1.bf16.msra.mxu1 %v4831_v17 }
 0x143   :  { %3073 = vmatprep.subr.bf16.mxu0 %v4836_v18  ;;  %3159 = vmatprep.subr.bf16.mxu1 %v4839_v19 }
 0x146   :  { %3074 = vmatpush1.bf16.msra.mxu0 %v4834_v20  ;;  %3160 = vmatpush1.bf16.msra.mxu1 %v4837_v21 }
 0x147   :  { %3075 = vmatprep.subr.bf16.mxu0 %v4842_v24  ;;  %3161 = vmatprep.subr.bf16.mxu1 %v4845_v25 }
 0x14a   :  { %3076 = vmatpush1.bf16.msra.mxu0 %v4840_v26  ;;  %3162 = vmatpush1.bf16.msra.mxu1 %v4843_v27 }
 0x14b   :  { %3077 = vmatprep.subr.bf16.mxu0 %v4848_v28  ;;  %3163 = vmatprep.subr.bf16.mxu1 %v4851_v29 }
 0x14e   :  { %3078 = vmatpush1.bf16.msra.mxu0 %v4846_v30  ;;  %3164 = vmatpush1.bf16.msra.mxu1 %v4849_v31 }
 0x14f   :  { %3079 = vmatprep.subr.bf16.mxu0 %v4854_v32  ;;  %3165 = vmatprep.subr.bf16.mxu1 %v4857_v33 }
 0x152   :  { %3080 = vmatpush1.bf16.msra.mxu0 %v4852_v34  ;;  %3166 = vmatpush1.bf16.msra.mxu1 %v4855_v22 }
 0x153   :  { %3081 = vmatprep.subr.bf16.mxu0 %v4860_v23  ;;  %3167 = vmatprep.subr.bf16.mxu1 %v4863_v35  ;;  %v4894_v35 = vld [vmem:[#allocation8 + $0x300] ss:$24 sps:$4 sm:$0xff]  }
 0x156   :  { %3082 = vmatpush1.bf16.msra.mxu0 %v4858_v36  ;;  %3168 = vmatpush1.bf16.msra.mxu1 %v4861_v37  ;;  %v4897_v36 = vld [vmem:[#allocation8 + $0x308] ss:$24 sps:$4 sm:$0xff]   ;;  %v4902_v37 = vld [vmem:[#allocation8 + $0x334] ss:$24 sps:$4 sm:$0xff]  }
 0x157   :  { %3083 = vmatprep.subr.bf16.mxu0 %v4866_v38  ;;  %3169 = vmatprep.subr.bf16.mxu1 %v4869_v39  ;;  %v4905_v38 = vld [vmem:[#allocation8 + $0x33c] ss:$24 sps:$4 sm:$0xff]   ;;  %v4900_v39 = vld [vmem:[#allocation8 + $0x330] ss:$24 sps:$4 sm:$0xff]  }
 0x15a   :  { %3084 = vmatpush1.bf16.msra.mxu0 %v4864_v40  ;;  %3170 = vmatpush1.bf16.msra.mxu1 %v4867_v41  ;;  %v4903_v40 = vld [vmem:[#allocation8 + $0x338] ss:$24 sps:$4 sm:$0xff]   ;;  %v4908_v41 = vld [vmem:[#allocation8 + $0x364] ss:$24 sps:$4 sm:$0xff]  }
 0x15b   :  { %3085 = vmatprep.subr.bf16.mxu0 %v4872_v42  ;;  %3171 = vmatprep.subr.bf16.mxu1 %v4875_v43  ;;  %v4911_v42 = vld [vmem:[#allocation8 + $0x36c] ss:$24 sps:$4 sm:$0xff]   ;;  %v4906_v43 = vld [vmem:[#allocation8 + $0x360] ss:$24 sps:$4 sm:$0xff]  }
 0x15e   :  { %3086 = vmatpush1.bf16.msra.mxu0 %v4870_v44  ;;  %3172 = vmatpush1.bf16.msra.mxu1 %v4873_v45  ;;  %v4909_v44 = vld [vmem:[#allocation8 + $0x368] ss:$24 sps:$4 sm:$0xff]   ;;  %v4914_v45 = vld [vmem:[#allocation8 + $0x394] ss:$24 sps:$4 sm:$0xff]  }
 0x15f   :  { %3087 = vmatprep.subr.bf16.mxu0 %v4878_v46  ;;  %3173 = vmatprep.subr.bf16.mxu1 %v4881_v47  ;;  %v4917_v46 = vld [vmem:[#allocation8 + $0x39c] ss:$24 sps:$4 sm:$0xff]   ;;  %v4912_v47 = vld [vmem:[#allocation8 + $0x390] ss:$24 sps:$4 sm:$0xff]  }
 0x162   :  { %3088 = vmatpush1.bf16.msra.mxu0 %v4876_v49  ;;  %3174 = vmatpush1.bf16.msra.mxu1 %v4879_v50  ;;  %v4915_v49 = vld [vmem:[#allocation8 + $0x398] ss:$24 sps:$4 sm:$0xff]   ;;  %v4920_v50 = vld [vmem:[#allocation8 + $0x3c4] ss:$24 sps:$4 sm:$0xff]  }
 0x163   :  { %3089 = vmatprep.subr.bf16.mxu0 %v4884_v56  ;;  %3175 = vmatprep.subr.bf16.mxu1 %v4887_v57  ;;  %v4924_v56 = vld [vmem:[#allocation8 + $0x3f0] ss:$24 sps:$4 sm:$0xff]  }
 0x164   :  { %v4927_v57 = vld [vmem:[#allocation8 + $0x3f8] ss:$24 sps:$4 sm:$0xff]  }
 0x166   :  { %3090 = vmatpush1.bf16.msra.mxu0 %v4882_v58  ;;  %3176 = vmatpush1.bf16.msra.mxu1 %v4885_v59  ;;  %v4932_v58 = vld [vmem:[#allocation8 + $0x424] ss:$24 sps:$4 sm:$0xff]  }
 0x167   :  { %3091 = vmatprep.subr.bf16.mxu0 %v4890_v60  ;;  %3177 = vmatprep.subr.bf16.mxu1 %v4893_v61  ;;  %v4935_v59 = vld [vmem:[#allocation8 + $0x42c] ss:$24 sps:$4 sm:$0xff]   ;;  %v4930_v60 = vld [vmem:[#allocation8 + $0x420] ss:$24 sps:$4 sm:$0xff]  }
 0x168   :  { %v4933_v61 = vld [vmem:[#allocation8 + $0x428] ss:$24 sps:$4 sm:$0xff]  }
 0x16a   :  { %3092 = vmatpush1.bf16.msra.mxu0 %v4888_v62  ;;  %3178 = vmatpush1.bf16.msra.mxu1 %v4891_v63  ;;  %v4938_v62 = vld [vmem:[#allocation8 + $0x454] ss:$24 sps:$4 sm:$0xff]  }
 0x16b   :  { %3104 = vmatprep.subr.bf16.mxu0 %v4896_v0  ;;  %3190 = vmatprep.subr.bf16.mxu1 %v4899_v1  ;;  %v4941_v63 = vld [vmem:[#allocation8 + $0x45c] ss:$24 sps:$4 sm:$0xff]   ;;  %v4936_v0 = vld [vmem:[#allocation8 + $0x450] ss:$24 sps:$4 sm:$0xff]  }
 0x16c   :  { %v4939_v1 = vld [vmem:[#allocation8 + $0x458] ss:$24 sps:$4 sm:$0xff]  }
 0x200   :  { %v1659_v7 = vpop.f32.mrb[0].mxu0  ;;  %v1831_v8 = vpop.f32.mrb[0].mxu1 }
 0x201   :  { %v1889_v9 = vadd.f32 %v1872_v4, %v1659_v7  ;;  %v1891_v10 = vadd.f32 %v1880_v55, %v1831_v8  ;;  %v1661_v11 = vpop.f32.mrb[1].mxu0  ;;  %v1833_v12 = vpop.f32.mrb[1].mxu1  ;;  %v4948_v7 = vld [vmem:[#allocation8 + $0x4b0] ss:$24 sps:$4 sm:$0xff]  }
 0x202   :  { %v1890_v13 = vadd.f32 %v1876_v5, %v1661_v11  ;;  %v1892_v14 = vadd.f32 %v1884_v6, %v1833_v12  ;;  %v1663_v15 = vpop.f32.mrb[2].mxu0  ;;  %v1835_v16 = vpop.f32.mrb[2].mxu1  ;;  %v4951_v8 = vld [vmem:[#allocation8 + $0x4b8] ss:$24 sps:$4 sm:$0xff]   ;;  %v4957_v12 = vld [vmem:[#allocation8 + $0x4e8] ss:$24 sps:$4 sm:$0xff]  }
 0x203   :  { %v1893_v17 = vadd.f32 %v1872_v4, %v1663_v15  ;;  %v1895_v18 = vadd.f32 %v1880_v55, %v1835_v16  ;;  %v1665_v19 = vpop.f32.mrb[3].mxu0  ;;  %v1837_v20 = vpop.f32.mrb[3].mxu1  ;;  %v1897_v25 = vmax.f32 %v1889_v9, 0.0  ;;  %v1899_v26 = vmax.f32 %v1891_v10, 0.0  ;;  %v4929_v55 = vld [vmem:[#allocation8 + $0x3fc] ss:$24 sps:$4 sm:$0xff]  }
 0x204   :  { %v1894_v21 = vadd.f32 %v1876_v5, %v1665_v19  ;;  %v1896_v24 = vadd.f32 %v1884_v6, %v1837_v20  ;;  %v1898_v29 = vmax.f32 %v1890_v13, 0.0  ;;  %v1900_v30 = vmax.f32 %v1892_v14, 0.0  ;;  %v4945_v4 = vld [vmem:[#allocation8 + $0x488] ss:$24 sps:$4 sm:$0xff]   ;;  %v4950_v5 = vld [vmem:[#allocation8 + $0x4b4] ss:$24 sps:$4 sm:$0xff]  }
 0x205   :  { %v1901_v27 = vmax.f32 %v1893_v17, 0.0  ;;  %v1903_v28 = vmax.f32 %v1895_v18, 0.0  ;;  %v4953_v6 = vld [vmem:[#allocation8 + $0x4bc] ss:$24 sps:$4 sm:$0xff]   ;;  %v4959_v10 = vld [vmem:[#allocation8 + $0x4ec] ss:$24 sps:$4 sm:$0xff]  }
 0x206   :  { %v1902_v31 = vmax.f32 %v1894_v21, 0.0  ;;  %v1904_v32 = vmax.f32 %v1896_v24, 0.0  ;;  %v4956_v9 = vld [vmem:[#allocation8 + $0x4e4] ss:$24 sps:$4 sm:$0xff]   ;;  %v4954_v11 = vld [vmem:[#allocation8 + $0x4e0] ss:$24 sps:$4 sm:$0xff]  }
 0x207   :  { %v5380_v33 = vpack.c.bf16 %v1901_v27, %v1897_v25  ;;  %v5382_v34 = vpack.c.bf16 %v1903_v28, %v1899_v26  ;;  %v4962_v13 = vld [vmem:[#allocation8 + $0x514] ss:$24 sps:$4 sm:$0xff]   ;;  %v4960_v15 = vld [vmem:[#allocation8 + $0x510] ss:$24 sps:$4 sm:$0xff]   ;;  %v4968_v17 = vld [vmem:[#allocation8 + $0x544] ss:$24 sps:$4 sm:$0xff]  }
 0x208   :  { %v5384_v22 = vpack.c.bf16 %v1902_v31, %v1898_v29  ;;  %v5386_v23 = vpack.c.bf16 %v1904_v32, %v1900_v30  ;;  %v4965_v14 = vld [vmem:[#allocation8 + $0x51c] ss:$24 sps:$4 sm:$0xff]   ;;  %v4963_v16 = vld [vmem:[#allocation8 + $0x518] ss:$24 sps:$4 sm:$0xff]   ;;  %v4971_v18 = vld [vmem:[#allocation8 + $0x54c] ss:$24 sps:$4 sm:$0xff]  }
 0x209   :  { %v4966_v19 = vld [vmem:[#allocation8 + $0x540] ss:$24 sps:$4 sm:$0xff]   ;;  %v4974_v21 = vld [vmem:[#allocation8 + $0x574] ss:$24 sps:$4 sm:$0xff]   ;;  %v4972_v25 = vld [vmem:[#allocation8 + $0x570] ss:$24 sps:$4 sm:$0xff]  }
 0x20a   :  { %3093 = vmatprep.mubr.bf16.mxu0 %v5384_v22  ;;  %3179 = vmatprep.mubr.bf16.mxu1 %v5384_v22  ;;  %v4969_v20 = vld [vmem:[#allocation8 + $0x548] ss:$24 sps:$4 sm:$0xff]   ;;  %v4977_v24 = vld [vmem:[#allocation8 + $0x57c] ss:$24 sps:$4 sm:$0xff]   ;;  %v4975_v26 = vld [vmem:[#allocation8 + $0x578] ss:$24 sps:$4 sm:$0xff]  }
 0x20b   :  { %3094 = vmatmul.mubr.bf16.vlgmr.msra.gmra.mrb[4].mxu0 %v5380_v33  ;;  %3180 = vmatmul.mubr.bf16.vlgmr.msra.gmra.mrb[4].mxu1 %v5380_v33  ;;  %v4980_v27 = vld [vmem:[#allocation8 + $0x5a4] ss:$24 sps:$4 sm:$0xff]   ;;  %v4978_v29 = vld [vmem:[#allocation8 + $0x5a0] ss:$24 sps:$4 sm:$0xff]   ;;  %v4986_v31 = vld [vmem:[#allocation8 + $0x5d4] ss:$24 sps:$4 sm:$0xff]  }
 0x20c   :  { %3105 = vmatpush1.bf16.msra.mxu0 %v4894_v35  ;;  %3191 = vmatpush1.bf16.msra.mxu1 %v4897_v36  ;;  %v4983_v28 = vld [vmem:[#allocation8 + $0x5ac] ss:$24 sps:$4 sm:$0xff]   ;;  %v4981_v30 = vld [vmem:[#allocation8 + $0x5a8] ss:$24 sps:$4 sm:$0xff]   ;;  %v4989_v32 = vld [vmem:[#allocation8 + $0x5dc] ss:$24 sps:$4 sm:$0xff]  }
 0x20d   :  { %3136 = vmatprep.mubr.bf16.mxu0 %v5386_v23  ;;  %3222 = vmatprep.mubr.bf16.mxu1 %v5386_v23  ;;  %v4984_v35 = vld [vmem:[#allocation8 + $0x5d0] ss:$24 sps:$4 sm:$0xff]  }
 0x20e   :  { %3106 = vmatprep.subr.bf16.mxu0 %v4902_v37  ;;  %3192 = vmatprep.subr.bf16.mxu1 %v4905_v38  ;;  %v4987_v36 = vld [vmem:[#allocation8 + $0x5d8] ss:$24 sps:$4 sm:$0xff]   ;;  %v4992_v37 = vld [vmem:[#allocation8 + $0x14] ss:$24 sps:$4 sm:$0xff]  }
 0x20f   :  { %v4990_v38 = vld [vmem:[#allocation8 + $0x10] ss:$24 sps:$4 sm:$0xff]  }
 0x210   :  { %3107 = vmatpush1.bf16.msra.mxu0 %v4900_v39  ;;  %3193 = vmatpush1.bf16.msra.mxu1 %v4903_v40  ;;  %v4995_v39 = vld [vmem:[#allocation8 + $0x44] ss:$24 sps:$4 sm:$0xff]  }
 0x211   :  { %3108 = vmatprep.subr.bf16.mxu0 %v4908_v41  ;;  %3194 = vmatprep.subr.bf16.mxu1 %v4911_v42  ;;  %v5086_v40 = vld [vmem:[#allocation9 + $0x40] sm:$0xff]   ;;  %v5088_v42 = vld [vmem:[#allocation9 + $0x48] sm:$0xff]  }
 0x212   :  { %v5087_v41 = vld [vmem:[#allocation9] sm:$0xff]  }
 0x214   :  { %3109 = vmatpush1.bf16.msra.mxu0 %v4906_v43  ;;  %3195 = vmatpush1.bf16.msra.mxu1 %v4909_v44  ;;  %v4993_v43 = vld [vmem:[#allocation8 + $0x40] ss:$24 sps:$4 sm:$0xff]   ;;  %v4998_v44 = vld [vmem:[#allocation8 + $0x74] ss:$24 sps:$4 sm:$0xff]  }
 0x215   :  { %3110 = vmatprep.subr.bf16.mxu0 %v4914_v45  ;;  %3196 = vmatprep.subr.bf16.mxu1 %v4917_v46  ;;  %v5089_v45 = vld [vmem:[#allocation9 + $0x8] sm:$0xff]   ;;  %v5090_v46 = vld [vmem:[#allocation9 + $0x50] sm:$0xff]  }
 0x218   :  { %3111 = vmatpush1.bf16.msra.mxu0 %v4912_v47  ;;  %3197 = vmatpush1.bf16.msra.mxu1 %v4915_v49  ;;  %v4996_v47 = vld [vmem:[#allocation8 + $0x70] ss:$24 sps:$4 sm:$0xff]   ;;  %v5001_v49 = vld [vmem:[#allocation8 + $0xa4] ss:$24 sps:$4 sm:$0xff]  }
 0x219   :  { %3112 = vmatprep.subr.bf16.mxu0 %v4920_v50  ;;  %3198 = vmatprep.subr.bf16.mxu1 %v4923_v51  ;;  %v5091_v50 = vld [vmem:[#allocation9 + $0x10] sm:$0xff]   ;;  %v5092_v51 = vld [vmem:[#allocation9 + $0x58] sm:$0xff]  }
 0x21c   :  { %3113 = vmatpush1.bf16.msra.mxu0 %v4918_v52  ;;  %3199 = vmatpush1.bf16.msra.mxu1 %v4921_v53  ;;  %v4999_v52 = vld [vmem:[#allocation8 + $0xa0] ss:$24 sps:$4 sm:$0xff]  }
 0x21d   :  { %3114 = vmatprep.subr.bf16.mxu0 %v4926_v54  ;;  %3200 = vmatprep.subr.bf16.mxu1 %v4929_v55  ;;  %v5093_v53 = vld [vmem:[#allocation9 + $0x18] sm:$0xff]   ;;  %v5094_v54 = vld [vmem:[#allocation9 + $0x60] sm:$0xff]   ;;  %v5002_v55 = vld [vmem:[#allocation8 + $0xd0] ss:$24 sps:$4 sm:$0xff]  }
 0x220   :  { %3115 = vmatpush1.bf16.msra.mxu0 %v4924_v56  ;;  %3201 = vmatpush1.bf16.msra.mxu1 %v4927_v57  ;;  %v5007_v56 = vld [vmem:[#allocation8 + $0x104] ss:$24 sps:$4 sm:$0xff]  }
 0x221   :  { %3116 = vmatprep.subr.bf16.mxu0 %v4932_v58  ;;  %3202 = vmatprep.subr.bf16.mxu1 %v4935_v59  ;;  %v5095_v57 = vld [vmem:[#allocation9 + $0x20] sm:$0xff]   ;;  %v5096_v58 = vld [vmem:[#allocation9 + $0x68] sm:$0xff]  }
 0x222   :  { %v5005_v59 = vld [vmem:[#allocation8 + $0x100] ss:$24 sps:$4 sm:$0xff]  }
 0x224   :  { %3117 = vmatpush1.bf16.msra.mxu0 %v4930_v60  ;;  %3203 = vmatpush1.bf16.msra.mxu1 %v4933_v61  ;;  %v5010_v60 = vld [vmem:[#allocation8 + $0x134] ss:$24 sps:$4 sm:$0xff]  }
 0x225   :  { %3118 = vmatprep.subr.bf16.mxu0 %v4938_v62  ;;  %3204 = vmatprep.subr.bf16.mxu1 %v4941_v63  ;;  %v5097_v61 = vld [vmem:[#allocation9 + $0x28] sm:$0xff]   ;;  %v5013_v63 = vld [vmem:[#allocation8 + $0x164] ss:$24 sps:$4 sm:$0xff]  }
 0x226   :  { %v5008_v62 = vld [vmem:[#allocation8 + $0x130] ss:$24 sps:$4 sm:$0xff]  }
 0x228   :  { %3119 = vmatpush1.bf16.msra.mxu0 %v4936_v0  ;;  %3205 = vmatpush1.bf16.msra.mxu1 %v4939_v1  ;;  %v5011_v0 = vld [vmem:[#allocation8 + $0x160] ss:$24 sps:$4 sm:$0xff]   ;;  %v5016_v1 = vld [vmem:[#allocation8 + $0x194] ss:$24 sps:$4 sm:$0xff]  }
 0x229   :  { %3120 = vmatprep.subr.bf16.mxu0 %v4944_v2  ;;  %3206 = vmatprep.subr.bf16.mxu1 %v4947_v48  ;;  %v5014_v2 = vld [vmem:[#allocation8 + $0x190] ss:$24 sps:$4 sm:$0xff]   ;;  %v5019_v48 = vld [vmem:[#allocation8 + $0x1c4] ss:$24 sps:$4 sm:$0xff]  }
 0x22c   :  { %3121 = vmatpush1.bf16.msra.mxu0 %v4942_v3  ;;  %3207 = vmatpush1.bf16.msra.mxu1 %v4945_v4  ;;  %v5017_v3 = vld [vmem:[#allocation8 + $0x1c0] ss:$24 sps:$4 sm:$0xff]   ;;  %v5022_v4 = vld [vmem:[#allocation8 + $0x1f4] ss:$24 sps:$4 sm:$0xff]  }
 0x22d   :  { %3122 = vmatprep.subr.bf16.mxu0 %v4950_v5  ;;  %3208 = vmatprep.subr.bf16.mxu1 %v4953_v6  ;;  %v5020_v5 = vld [vmem:[#allocation8 + $0x1f0] ss:$24 sps:$4 sm:$0xff]   ;;  %v5025_v6 = vld [vmem:[#allocation8 + $0x224] ss:$24 sps:$4 sm:$0xff]  }
 0x230   :  { %3123 = vmatpush1.bf16.msra.mxu0 %v4948_v7  ;;  %3209 = vmatpush1.bf16.msra.mxu1 %v4951_v8  ;;  %v5023_v7 = vld [vmem:[#allocation8 + $0x220] ss:$24 sps:$4 sm:$0xff]   ;;  %v5028_v8 = vld [vmem:[#allocation8 + $0x254] ss:$24 sps:$4 sm:$0xff]  }
 0x231   :  { %3124 = vmatprep.subr.bf16.mxu0 %v4956_v9  ;;  %3210 = vmatprep.subr.bf16.mxu1 %v4959_v10  ;;  %v5026_v9 = vld [vmem:[#allocation8 + $0x250] ss:$24 sps:$4 sm:$0xff]   ;;  %v5031_v10 = vld [vmem:[#allocation8 + $0x284] ss:$24 sps:$4 sm:$0xff]  }
 0x234   :  { %3125 = vmatpush1.bf16.msra.mxu0 %v4954_v11  ;;  %3211 = vmatpush1.bf16.msra.mxu1 %v4957_v12  ;;  %v5029_v11 = vld [vmem:[#allocation8 + $0x280] ss:$24 sps:$4 sm:$0xff]   ;;  %v5034_v12 = vld [vmem:[#allocation8 + $0x2b4] ss:$24 sps:$4 sm:$0xff]  }
 0x235   :  { %3126 = vmatprep.subr.bf16.mxu0 %v4962_v13  ;;  %3212 = vmatprep.subr.bf16.mxu1 %v4965_v14  ;;  %v5032_v13 = vld [vmem:[#allocation8 + $0x2b0] ss:$24 sps:$4 sm:$0xff]   ;;  %v5037_v14 = vld [vmem:[#allocation8 + $0x2e4] ss:$24 sps:$4 sm:$0xff]  }
 0x238   :  { %3127 = vmatpush1.bf16.msra.mxu0 %v4960_v15  ;;  %3213 = vmatpush1.bf16.msra.mxu1 %v4963_v16  ;;  %v5035_v15 = vld [vmem:[#allocation8 + $0x2e0] ss:$24 sps:$4 sm:$0xff]   ;;  %v5040_v16 = vld [vmem:[#allocation8 + $0x314] ss:$24 sps:$4 sm:$0xff]  }
 0x239   :  { %3128 = vmatprep.subr.bf16.mxu0 %v4968_v17  ;;  %3214 = vmatprep.subr.bf16.mxu1 %v4971_v18  ;;  %v5038_v17 = vld [vmem:[#allocation8 + $0x310] ss:$24 sps:$4 sm:$0xff]   ;;  %v5043_v18 = vld [vmem:[#allocation8 + $0x344] ss:$24 sps:$4 sm:$0xff]  }
 0x23c   :  { %3129 = vmatpush1.bf16.msra.mxu0 %v4966_v19  ;;  %3215 = vmatpush1.bf16.msra.mxu1 %v4969_v20  ;;  %v5041_v19 = vld [vmem:[#allocation8 + $0x340] ss:$24 sps:$4 sm:$0xff]   ;;  %v5046_v20 = vld [vmem:[#allocation8 + $0x374] ss:$24 sps:$4 sm:$0xff]  }
 0x23d   :  { %3130 = vmatprep.subr.bf16.mxu0 %v4974_v21  ;;  %3216 = vmatprep.subr.bf16.mxu1 %v4977_v24  ;;  %v5044_v21 = vld [vmem:[#allocation8 + $0x370] ss:$24 sps:$4 sm:$0xff]   ;;  %v5049_v24 = vld [vmem:[#allocation8 + $0x3a4] ss:$24 sps:$4 sm:$0xff]  }
 0x240   :  { %3131 = vmatpush1.bf16.msra.mxu0 %v4972_v25  ;;  %3217 = vmatpush1.bf16.msra.mxu1 %v4975_v26  ;;  %v5047_v25 = vld [vmem:[#allocation8 + $0x3a0] ss:$24 sps:$4 sm:$0xff]   ;;  %v5052_v26 = vld [vmem:[#allocation8 + $0x3d4] ss:$24 sps:$4 sm:$0xff]  }
 0x241   :  { %3132 = vmatprep.subr.bf16.mxu0 %v4980_v27  ;;  %3218 = vmatprep.subr.bf16.mxu1 %v4983_v28  ;;  %v5050_v27 = vld [vmem:[#allocation8 + $0x3d0] ss:$24 sps:$4 sm:$0xff]   ;;  %v5055_v28 = vld [vmem:[#allocation8 + $0x404] ss:$24 sps:$4 sm:$0xff]  }
 0x244   :  { %3133 = vmatpush1.bf16.msra.mxu0 %v4978_v29  ;;  %3219 = vmatpush1.bf16.msra.mxu1 %v4981_v30  ;;  %v5098_v29 = vld [vmem:[#allocation9 + $0x70] sm:$0xff]  }
 0x245   :  { %3134 = vmatprep.subr.bf16.mxu0 %v4986_v31  ;;  %3220 = vmatprep.subr.bf16.mxu1 %v4989_v32  ;;  %v5099_v30 = vld [vmem:[#allocation9 + $0x30] sm:$0xff]   ;;  %v5100_v32 = vld [vmem:[#allocation9 + $0x78] sm:$0xff]  }
 0x246   :  { %v5056_v31 = vld [vmem:[#allocation8 + $0x430] ss:$24 sps:$4 sm:$0xff]  }
 0x248   :  { %3135 = vmatpush1.bf16.msra.mxu0 %v4984_v35  ;;  %3221 = vmatpush1.bf16.msra.mxu1 %v4987_v36  ;;  %v5061_v35 = vld [vmem:[#allocation8 + $0x464] ss:$24 sps:$4 sm:$0xff]  }
 0x249   :  { %3233 = vmatprep.subr.bf16.mxu0 %v4992_v37  ;;  %4344 = vmatprep.subr.bf16.mxu1 %v5086_v40  ;;  %v5101_v36 = vld [vmem:[#allocation9 + $0x38] sm:$0xff]   ;;  %v5062_v40 = vld [vmem:[#allocation8 + $0x490] ss:$24 sps:$4 sm:$0xff]  }
 0x24a   :  { %v5059_v37 = vld [vmem:[#allocation8 + $0x460] ss:$24 sps:$4 sm:$0xff]  }
 0x24b   :  { %3137 = vmatmul.mubr.bf16.vlgmr.msra.gmra.mrb[4].mxu0 %v5382_v34  ;;  %3223 = vmatmul.mubr.bf16.vlgmr.msra.gmra.mrb[4].mxu1 %v5382_v34 }
 0x24c   :  { %3234 = vmatpush1.bf16.msra.mxu0 %v4990_v38  ;;  %3265 = vmatprep.mubr.bf16.mxu0 %v5384_v22  ;;  %v5004_v22 = vld [vmem:[#allocation8 + $0xd4] ss:$24 sps:$4 sm:$0xff]   ;;  %v5102_v38 = vld [vmem:[#allocation9 + $0xc0] sm:$0xff]  }
 0x24d   :  { %3235 = vmatprep.subr.bf16.mxu0 %v4995_v39  ;;  %4345 = vmatpush3.bf16.msra.mxu1 %v5087_v41  ;;  %v5064_v39 = vld [vmem:[#allocation8 + $0x494] ss:$24 sps:$4 sm:$0xff]   ;;  %v5067_v41 = vld [vmem:[#allocation8 + $0x4c4] ss:$24 sps:$4 sm:$0xff]  }
 0x24e   :  { %4346 = vmatprep.subr.bf16.mxu1 %v5088_v42  ;;  %v5065_v42 = vld [vmem:[#allocation8 + $0x4c0] ss:$24 sps:$4 sm:$0xff]  }
 0x250   :  { %3236 = vmatpush1.bf16.msra.mxu0 %v4993_v43  ;;  %v5070_v43 = vld [vmem:[#allocation8 + $0x4f4] ss:$24 sps:$4 sm:$0xff]  }
 0x251   :  { %3237 = vmatprep.subr.bf16.mxu0 %v4998_v44  ;;  %4347 = vmatpush3.bf16.msra.mxu1 %v5089_v45  ;;  %v5068_v44 = vld [vmem:[#allocation8 + $0x4f0] ss:$24 sps:$4 sm:$0xff]   ;;  %v5073_v45 = vld [vmem:[#allocation8 + $0x524] ss:$24 sps:$4 sm:$0xff]  }
 0x252   :  { %4348 = vmatprep.subr.bf16.mxu1 %v5090_v46  ;;  %v5071_v46 = vld [vmem:[#allocation8 + $0x520] ss:$24 sps:$4 sm:$0xff]  }
 0x254   :  { %3238 = vmatpush1.bf16.msra.mxu0 %v4996_v47  ;;  %v5076_v47 = vld [vmem:[#allocation8 + $0x554] ss:$24 sps:$4 sm:$0xff]  }
 0x255   :  { %3239 = vmatprep.subr.bf16.mxu0 %v5001_v49  ;;  %4349 = vmatpush3.bf16.msra.mxu1 %v5091_v50  ;;  %v5074_v49 = vld [vmem:[#allocation8 + $0x550] ss:$24 sps:$4 sm:$0xff]   ;;  %v5079_v50 = vld [vmem:[#allocation8 + $0x584] ss:$24 sps:$4 sm:$0xff]  }
 0x256   :  { %4350 = vmatprep.subr.bf16.mxu1 %v5092_v51  ;;  %v5077_v51 = vld [vmem:[#allocation8 + $0x580] ss:$24 sps:$4 sm:$0xff]  }
 0x258   :  { %3240 = vmatpush1.bf16.msra.mxu0 %v4999_v52  ;;  %v5082_v52 = vld [vmem:[#allocation8 + $0x5b4] ss:$24 sps:$4 sm:$0xff]  }
 0x259   :  { %3241 = vmatprep.subr.bf16.mxu0 %v5004_v22  ;;  %4351 = vmatpush3.bf16.msra.mxu1 %v5093_v53  ;;  %v5080_v22 = vld [vmem:[#allocation8 + $0x5b0] ss:$24 sps:$4 sm:$0xff]   ;;  %v5085_v53 = vld [vmem:[#allocation8 + $0x5e4] ss:$24 sps:$4 sm:$0xff]  }
 0x25a   :  { %4352 = vmatprep.subr.bf16.mxu1 %v5094_v54  ;;  %v5083_v54 = vld [vmem:[#allocation8 + $0x5e0] ss:$24 sps:$4 sm:$0xff]  }
 0x25c   :  { %3242 = vmatpush1.bf16.msra.mxu0 %v5002_v55 }
 0x25d   :  { %3243 = vmatprep.subr.bf16.mxu0 %v5007_v56  ;;  %4353 = vmatpush3.bf16.msra.mxu1 %v5095_v57 }
 0x25e   :  { %4354 = vmatprep.subr.bf16.mxu1 %v5096_v58 }
 0x260   :  { %3244 = vmatpush1.bf16.msra.mxu0 %v5005_v59 }
 0x261   :  { %3245 = vmatprep.subr.bf16.mxu0 %v5010_v60  ;;  %4355 = vmatpush3.bf16.msra.mxu1 %v5097_v61 }
 0x262   :  { %4356 = vmatprep.subr.bf16.mxu1 %v5098_v29  ;;  %v5122_v29 = vld [vmem:[#allocation9 + $0x150] sm:$0xff]  }
 0x264   :  { %3246 = vmatpush1.bf16.msra.mxu0 %v5008_v62 }
 0x265   :  { %3247 = vmatprep.subr.bf16.mxu0 %v5013_v63  ;;  %4357 = vmatpush3.bf16.msra.mxu1 %v5099_v30  ;;  %v5124_v30 = vld [vmem:[#allocation9 + $0x158] sm:$0xff]  }
 0x266   :  { %4358 = vmatprep.subr.bf16.mxu1 %v5100_v32  ;;  %v5126_v32 = vld [vmem:[#allocation9 + $0x160] sm:$0xff]  }
 0x268   :  { %3248 = vmatpush1.bf16.msra.mxu0 %v5011_v0 }
 0x269   :  { %3249 = vmatprep.subr.bf16.mxu0 %v5016_v1  ;;  %4359 = vmatpush3.bf16.msra.mxu1 %v5101_v36  ;;  %v5128_v36 = vld [vmem:[#allocation9 + $0x168] sm:$0xff]  }
 0x26a   :  { %4366 = vmatprep.subr.bf16.mxu1 %v5102_v38  ;;  %v5130_v38 = vld [vmem:[#allocation9 + $0x170] sm:$0xff]  }
 0x26c   :  { %3250 = vmatpush1.bf16.msra.mxu0 %v5014_v2 }
 0x26d   :  { %3251 = vmatprep.subr.bf16.mxu0 %v5019_v48 }
 0x270   :  { %3252 = vmatpush1.bf16.msra.mxu0 %v5017_v3 }
 0x271   :  { %3253 = vmatprep.subr.bf16.mxu0 %v5022_v4 }
 0x274   :  { %3254 = vmatpush1.bf16.msra.mxu0 %v5020_v5 }
 0x275   :  { %3255 = vmatprep.subr.bf16.mxu0 %v5025_v6 }
 0x278   :  { %3256 = vmatpush1.bf16.msra.mxu0 %v5023_v7 }
 0x279   :  { %3257 = vmatprep.subr.bf16.mxu0 %v5028_v8 }
 0x27c   :  { %3258 = vmatpush1.bf16.msra.mxu0 %v5026_v9  ;;  %v5103_v9 = vld [vmem:[#allocation9 + $0x80] sm:$0xff]  }
 0x27d   :  { %3259 = vmatprep.subr.bf16.mxu0 %v5031_v10  ;;  %v5104_v10 = vld [vmem:[#allocation9 + $0xc8] sm:$0xff]  }
 0x280   :  { %3260 = vmatpush1.bf16.msra.mxu0 %v5029_v11  ;;  %v5105_v11 = vld [vmem:[#allocation9 + $0x88] sm:$0xff]  }
 0x281   :  { %3261 = vmatprep.subr.bf16.mxu0 %v5034_v12  ;;  %v5106_v12 = vld [vmem:[#allocation9 + $0xd0] sm:$0xff]  }
 0x284   :  { %3262 = vmatpush1.bf16.msra.mxu0 %v5032_v13  ;;  %v5107_v13 = vld [vmem:[#allocation9 + $0x90] sm:$0xff]  }
 0x285   :  { %3263 = vmatprep.subr.bf16.mxu0 %v5037_v14  ;;  %v5108_v14 = vld [vmem:[#allocation9 + $0xd8] sm:$0xff]  }
 0x288   :  { %3264 = vmatpush1.bf16.msra.mxu0 %v5035_v15  ;;  %v5109_v15 = vld [vmem:[#allocation9 + $0x98] sm:$0xff]  }
 0x289   :  { %3276 = vmatprep.subr.bf16.mxu0 %v5040_v16  ;;  %v5110_v16 = vld [vmem:[#allocation9 + $0xe0] sm:$0xff]  }
 0x28b   :  { %3266 = vmatmul.mubr.bf16.vlgmr.msra.gmra.mrb[8].mxu0 %v5380_v33  ;;  %v5053_v33 = vld [vmem:[#allocation8 + $0x400] ss:$24 sps:$4 sm:$0xff]  }
 0x28c   :  { %3277 = vmatpush1.bf16.msra.mxu0 %v5038_v17  ;;  %3308 = vmatprep.mubr.bf16.mxu0 %v5386_v23  ;;  %v5058_v23 = vld [vmem:[#allocation8 + $0x434] ss:$24 sps:$4 sm:$0xff]   ;;  %v5111_v17 = vld [vmem:[#allocation9 + $0xa0] sm:$0xff]  }
 0x28d   :  { %3278 = vmatprep.subr.bf16.mxu0 %v5043_v18  ;;  %v5112_v18 = vld [vmem:[#allocation9 + $0xe8] sm:$0xff]  }
 0x290   :  { %3279 = vmatpush1.bf16.msra.mxu0 %v5041_v19  ;;  %v5113_v19 = vld [vmem:[#allocation9 + $0xa8] sm:$0xff]  }
 0x291   :  { %3280 = vmatprep.subr.bf16.mxu0 %v5046_v20  ;;  %v5114_v20 = vld [vmem:[#allocation9 + $0xf0] sm:$0xff]  }
 0x294   :  { %3281 = vmatpush1.bf16.msra.mxu0 %v5044_v21  ;;  %v5115_v21 = vld [vmem:[#allocation9 + $0xb0] sm:$0xff]  }
 0x295   :  { %3282 = vmatprep.subr.bf16.mxu0 %v5049_v24  ;;  %v5116_v24 = vld [vmem:[#allocation9 + $0xf8] sm:$0xff]  }
 0x298   :  { %3283 = vmatpush1.bf16.msra.mxu0 %v5047_v25  ;;  %v5117_v25 = vld [vmem:[#allocation9 + $0xb8] sm:$0xff]  }
 0x299   :  { %3284 = vmatprep.subr.bf16.mxu0 %v5052_v26  ;;  %v5118_v26 = vld [vmem:[#allocation9 + $0x140] sm:$0xff]  }
 0x29c   :  { %3285 = vmatpush1.bf16.msra.mxu0 %v5050_v27  ;;  %v5119_v27 = vld [vmem:[#allocation9 + $0x100] sm:$0xff]  }
 0x29d   :  { %3286 = vmatprep.subr.bf16.mxu0 %v5055_v28  ;;  %v5120_v28 = vld [vmem:[#allocation9 + $0x148] sm:$0xff]  }
 0x2a0   :  { %3287 = vmatpush1.bf16.msra.mxu0 %v5053_v33  ;;  %v5121_v33 = vld [vmem:[#allocation9 + $0x108] sm:$0xff]  }
 0x2a1   :  { %3288 = vmatprep.subr.bf16.mxu0 %v5058_v23  ;;  %v5123_v23 = vld [vmem:[#allocation9 + $0x110] sm:$0xff]  }
 0x2a4   :  { %3289 = vmatpush1.bf16.msra.mxu0 %v5056_v31  ;;  %v5125_v31 = vld [vmem:[#allocation9 + $0x118] sm:$0xff]  }
 0x2a5   :  { %3290 = vmatprep.subr.bf16.mxu0 %v5061_v35  ;;  %v5127_v35 = vld [vmem:[#allocation9 + $0x120] sm:$0xff]  }
 0x2a8   :  { %3291 = vmatpush1.bf16.msra.mxu0 %v5059_v37  ;;  %v5129_v37 = vld [vmem:[#allocation9 + $0x128] sm:$0xff]  }
 0x2a9   :  { %3292 = vmatprep.subr.bf16.mxu0 %v5064_v39  ;;  %v5131_v39 = vld [vmem:[#allocation9 + $0x130] sm:$0xff]  }
 0x2ac   :  { %3293 = vmatpush1.bf16.msra.mxu0 %v5062_v40  ;;  %v5132_v40 = vld [vmem:[#allocation9 + $0x178] sm:$0xff]  }
 0x2ad   :  { %3294 = vmatprep.subr.bf16.mxu0 %v5067_v41  ;;  %v5133_v41 = vld [vmem:[#allocation9 + $0x138] sm:$0xff]  }
 0x2b0   :  { %3295 = vmatpush1.bf16.msra.mxu0 %v5065_v42 }
 0x2b1   :  { %3296 = vmatprep.subr.bf16.mxu0 %v5070_v43 }
 0x2b4   :  { %3297 = vmatpush1.bf16.msra.mxu0 %v5068_v44 }
 0x2b5   :  { %3298 = vmatprep.subr.bf16.mxu0 %v5073_v45 }
 0x2b8   :  { %3299 = vmatpush1.bf16.msra.mxu0 %v5071_v46 }
 0x2b9   :  { %3300 = vmatprep.subr.bf16.mxu0 %v5076_v47 }
 0x2bc   :  { %3301 = vmatpush1.bf16.msra.mxu0 %v5074_v49 }
 0x2bd   :  { %3302 = vmatprep.subr.bf16.mxu0 %v5079_v50 }
 0x2c0   :  { %3303 = vmatpush1.bf16.msra.mxu0 %v5077_v51 }
 0x2c1   :  { %3304 = vmatprep.subr.bf16.mxu0 %v5082_v52 }
 0x2c4   :  { %3305 = vmatpush1.bf16.msra.mxu0 %v5080_v22 }
 0x2c5   :  { %3306 = vmatprep.subr.bf16.mxu0 %v5085_v53 }
 0x2c8   :  { %3307 = vmatpush1.bf16.msra.mxu0 %v5083_v54 }
 0x2cb   :  { %3309 = vmatmul.mubr.bf16.vlgmr.msra.gmra.mrb[8].mxu0 %v5382_v34 }
 0x31e   :  { %v3138_v55 = vpop.f32.mrb[4].mxu0  ;;  %v3224_v56 = vpop.f32.mrb[4].mxu1 }
 0x31f   :  { %v3140_v57 = vpop.f32.mrb[5].mxu0  ;;  %v3226_v58 = vpop.f32.mrb[5].mxu1  ;;  %v3319_v61 = vmax.f32 %v3138_v55, 0.0  ;;  %v3321_v62 = vmax.f32 %v3224_v56, 0.0 }
 0x320   :  { %v3142_v59 = vpop.f32.mrb[6].mxu0  ;;  %v3228_v60 = vpop.f32.mrb[6].mxu1  ;;  %v3320_v48 = vmax.f32 %v3140_v57, 0.0  ;;  %v3322_v3 = vmax.f32 %v3226_v58, 0.0  ;;  %v4295_v58 = vld [vmem:[%s5420_s5] ss:$0 sm:$0xff] }
 0x321   :  { %v3325_v63 = vmax.f32 %v3142_v59, 0.0  ;;  %v3327_v0 = vmax.f32 %v3228_v60, 0.0  ;;  %v3144_v1 = vpop.f32.mrb[7].mxu0  ;;  %v3230_v2 = vpop.f32.mrb[7].mxu1  ;;  %s5222_s5 = scalar_lea.vmem %s3859_s28, 256 }
 0x322   :  { %v3326_v4 = vmax.f32 %v3144_v1, 0.0  ;;  %v3328_v5 = vmax.f32 %v3230_v2, 0.0  ;;  %p5223_p4 = scmp.ne.s32.totalorder %s3859_s28, %s5222_s5  ;;  %p5228_p6 = scmp.lt.s32.totalorder %s5222_s5, %s5222_s5 }
 0x323   :  { %v3331_v6 = vpack.c.bf16 %v3325_v63, %v3319_v61  ;;  %v3333_v7 = vpack.c.bf16 %v3327_v0, %v3321_v62 }
 0x324   :  { %v3332_v8 = vpack.c.bf16 %v3326_v4, %v3320_v48  ;;  %v3334_v34 = vpack.c.bf16 %v3328_v5, %v3322_v3  ;;  %p5229_p7 = por %p5228_p6, %p5227_p5 }
 0x326   :  { %3760 = vmatprep.mubr.bf16.mxu1 %v3332_v8  ;;  %p5230_p8 = pnand %p5229_p7, %p5223_p4 }
 0x327   :  { %3761 = vmatmul.mubr.bf16.vlgmr.msra.gmra.mrb[8].mxu1 %v3331_v6 }
 0x328   :  { %4367 = vmatpush3.bf16.msra.mxu1 %v5103_v9  ;;  %3801 = vmatprep.mubr.bf16.mxu1 %v3334_v34 }
 0x329   :  { %4368 = vmatprep.subr.bf16.mxu1 %v5104_v10 }
 0x32c   :  { %4369 = vmatpush3.bf16.msra.mxu1 %v5105_v11 }
 0x32d   :  { %4370 = vmatprep.subr.bf16.mxu1 %v5106_v12 }
 0x330   :  { %4371 = vmatpush3.bf16.msra.mxu1 %v5107_v13 }
 0x331   :  { %4372 = vmatprep.subr.bf16.mxu1 %v5108_v14 }
 0x334   :  { %4373 = vmatpush3.bf16.msra.mxu1 %v5109_v15 }
 0x335   :  { %4374 = vmatprep.subr.bf16.mxu1 %v5110_v16 }
 0x338   :  { %4375 = vmatpush3.bf16.msra.mxu1 %v5111_v17 }
 0x339   :  { %4376 = vmatprep.subr.bf16.mxu1 %v5112_v18 }
 0x33c   :  { %4377 = vmatpush3.bf16.msra.mxu1 %v5113_v19 }
 0x33d   :  { %4378 = vmatprep.subr.bf16.mxu1 %v5114_v20 }
 0x340   :  { %4379 = vmatpush3.bf16.msra.mxu1 %v5115_v21 }
 0x341   :  { %4380 = vmatprep.subr.bf16.mxu1 %v5116_v24 }
 0x344   :  { %4381 = vmatpush3.bf16.msra.mxu1 %v5117_v25 }
 0x345   :  { %4388 = vmatprep.subr.bf16.mxu1 %v5118_v26 }
 0x347   :  { %3802 = vmatmul.mubr.bf16.vlgmr.msra.gmra.mrb[12].mxu1 %v3333_v7 }
 0x348   :  { %4389 = vmatpush3.bf16.msra.mxu1 %v5119_v27 }
 0x349   :  { %4390 = vmatprep.subr.bf16.mxu1 %v5120_v28 }
 0x34c   :  { %4391 = vmatpush3.bf16.msra.mxu1 %v5121_v33 }
 0x34d   :  { %4392 = vmatprep.subr.bf16.mxu1 %v5122_v29 }
 0x350   :  { %4393 = vmatpush3.bf16.msra.mxu1 %v5123_v23 }
 0x351   :  { %4394 = vmatprep.subr.bf16.mxu1 %v5124_v30 }
 0x354   :  { %4395 = vmatpush3.bf16.msra.mxu1 %v5125_v31 }
 0x355   :  { %4396 = vmatprep.subr.bf16.mxu1 %v5126_v32 }
 0x358   :  { %4397 = vmatpush3.bf16.msra.mxu1 %v5127_v35 }
 0x359   :  { %4398 = vmatprep.subr.bf16.mxu1 %v5128_v36 }
 0x35c   :  { %4399 = vmatpush3.bf16.msra.mxu1 %v5129_v37 }
 0x35d   :  { %4400 = vmatprep.subr.bf16.mxu1 %v5130_v38 }
 0x360   :  { %4401 = vmatpush3.bf16.msra.mxu1 %v5131_v39 }
 0x361   :  { %4402 = vmatprep.subr.bf16.mxu1 %v5132_v40 }
 0x364   :  { %4403 = vmatpush3.bf16.msra.mxu1 %v5133_v41 }
 0x39e   :  { %v3310_v42 = vpop.f32.mrb[8].mxu0 }
 0x39f   :  { %v3312_v43 = vpop.f32.mrb[9].mxu0  ;;  %v3323_v45 = vmax.f32 %v3310_v42, 0.0 }
 0x3a0   :  { %v3314_v44 = vpop.f32.mrb[10].mxu0  ;;  %v3324_v49 = vmax.f32 %v3312_v43, 0.0 }
 0x3a1   :  { %v3329_v46 = vmax.f32 %v3314_v44, 0.0  ;;  %v3316_v47 = vpop.f32.mrb[11].mxu0 }
 0x3a2   :  { %v3330_v50 = vmax.f32 %v3316_v47, 0.0 }
 0x3a3   :  { %v3335_v51 = vpack.c.bf16 %v3329_v46, %v3323_v45 }
 0x3a4   :  { %v3336_v52 = vpack.c.bf16 %v3330_v50, %v3324_v49 }
 0x3a6   :  { %3842 = vmatprep.mubr.bf16.mxu1 %v3336_v52 }
 0x3a7   :  { %3843 = vmatmul.mubr.bf16.vlgmr.msra.gmra.mrb[16].mxu1 %v3335_v51 }
 0x3fa   :  { %v4360_v22 = vpop.f32.mrb[8].mxu1 }
 0x3fb   :  { %v4361_v53 = vpop.f32.mrb[9].mxu1 }
 0x3fc   :  { %v4362_v54 = vadd.f32 %v4361_v53, %v4360_v22  ;;  %v4363_v55 = vpop.f32.mrb[10].mxu1 }
 0x3fd   :  { %v4364_v56 = vpop.f32.mrb[11].mxu1 }
 0x3fe   :  { %v4365_v57 = vadd.f32 %v4364_v56, %v4363_v55  ;;  %v3763_v61 = vadd.f32 %v4362_v54, %v4295_v58 }
 0x400   :  { %v3766_v1 = vadd.f32 %v4365_v57, %v4295_v58 }
 0x41a   :  { %v4382_v59 = vpop.f32.mrb[12].mxu1 }
 0x41b   :  { %v4383_v60 = vpop.f32.mrb[13].mxu1 }
 0x41c   :  { %v4384_v62 = vadd.f32 %v4383_v60, %v4382_v59  ;;  %v4385_v63 = vpop.f32.mrb[14].mxu1 }
 0x41d   :  { %v4386_v0 = vpop.f32.mrb[15].mxu1 }
 0x41e   :  { %v3804_v2 = vadd.f32 %v4384_v62, %v3763_v61  ;;  %v4387_v48 = vadd.f32 %v4386_v0, %v4385_v63 }
 0x420   :  { %v3807_v3 = vadd.f32 %v4387_v48, %v3766_v1 }
 0x47a   :  { %v4404_v4 = vpop.f32.mrb[16].mxu1 }
 0x47b   :  { %v4405_v5 = vpop.f32.mrb[17].mxu1 }
 0x47c   :  { %v4406_v6 = vadd.f32 %v4405_v5, %v4404_v4  ;;  %v4407_v7 = vpop.f32.mrb[18].mxu1 }
 0x47d   :  { %v4408_v8 = vpop.f32.mrb[19].mxu1 }
 0x47e   :  { %v3845_v34 = vadd.f32 %v4406_v6, %v3804_v2  ;;  %v4409_v9 = vadd.f32 %v4408_v8, %v4407_v7 }
 0x480   :  { %3851 = vst [vmem:[#allocation11] sm:$0xff] %v3845_v34  ;;  %v3848_v10 = vadd.f32 %v4409_v9, %v3807_v3 }
 0x482   :  { %3852 = vst [vmem:[#allocation11 + $0x8] sm:$0xff] %v3848_v10 }
 0x483   :  { %5233 = shalt.err (!%p5230_p8)
}
 0x484   :  { %s5234_s7 = scalar_lea.hbm %s5421_s6, 256 }
 0x485   :  { %p5235_p9 = scmp.ne.s32.totalorder %s5421_s6, %s5234_s7  ;;  %p5238_p10 = scmp.lt.u32.totalorder %s5234_s7, %s5421_s6 }
 0x487   :  { %p5240_p11 = pnand %p5238_p10, %p5235_p9 }
 0x489   :  { %5243 = shalt.err (!%p5240_p11)
}
 0x48a   :  { %s5266_s11 = smov 128   ;;  %s5267_s12 = smov 8  }
 0x48b   :  { %3864 = dma.vmem_to_hbm [thread:$0]  %s3859_s28, 256, %s5421_s6, [#allocation5], %s5266_s11, %s5266_s11, %s5267_s12  }
 0x48c   :  { %5250 = dma.done.wait [#allocation5], 256  }
 0x48d   :  { %5251 = vsyncadd [#allocation5], 4294967040 }
 0x48e   :  { %3868 = vsyncpa [#allocation4], 1 }
 0x48f   :  { %3869 = vsyncpa [#allocation7], 1 }
 0x490   :  { %3870 = vsyncpa [#allocation10], 1 }
 0x491   :  { %3871 = vsyncpa [#allocation5], 1 }

</bundles_post_ra>
